<compile_context>
chip_gen: v5e
topology: v5e:2x2
jax: 0.10.0
libtpu: 0.0.40
codegen_flags: <defaults>
</compile_context>

<pallas_src>
import functools
import numpy as np

import jax
import jax.numpy as jnp
from jax.experimental import pallas as pl
from jax.experimental.pallas import tpu as pltpu

# ----------------------------------------------------------------------------
# Stand-in BEV grid configuration (pillarization of the point cloud).
VOXEL_H = 16
VOXEL_W = 16
PC_RANGE = (0.0, 0.0, 16.0, 16.0)  # xmin, ymin, xmax, ymax of the stand-in grid


# ----------------------------------------------------------------------------
# Fused prediction-heads kernel; TB BEV images per grid step.
#   shared: in-kernel reflect pad -> im2col -> one (TB*H*W, 9*Cin) x (9*Cin, 2*Ch)
#           matmul -> BN(eval, folded) -> ReLU
#   context head:   (Cctx, Ch) x (Ch, TB*H*W) matmul + bias        -> (Cctx, TB*H*W)
#   occupancy head: (1,    Ch) x (Ch, TB*H*W) matmul + bias -> sigmoid -> (1, TB*H*W)
def _heads_kernel(x_ref, w1_ref, scale_ref, shift_ref,
                  w2c_ref, b2c_ref, w2o_ref, b2o_ref,
                  ctx_ref, occ_ref, *, TB, H, W, Ch):
    Cin = x_ref.shape[-1]
    HW = H * W

    # Build one big im2col patch matrix for all TB images in this block.
    per_img = []
    for t in range(TB):                                        # static unroll
        x = x_ref[t]                                           # (H, W, Cin) f32
        # ReflectionPad2d(1) with static halo slices:
        # padded row -1 == row 1, padded row H == row H-2 (same for columns).
        xp = jnp.concatenate([x[1:2], x, x[H - 2:H - 1]], axis=0)           # (H+2, W, Cin)
        xp = jnp.concatenate([xp[:, 1:2], xp, xp[:, W - 2:W - 1]], axis=1)  # (H+2, W+2, Cin)
        taps = [xp[ky:ky + H, kx:kx + W, :].reshape(HW, Cin)
                for ky in range(3) for kx in range(3)]
        per_img.append(jnp.concatenate(taps, axis=-1).astype(jnp.bfloat16))  # (HW, 9*Cin)
    patches = per_img[0] if TB == 1 else jnp.concatenate(per_img, axis=0)    # (TB*HW, 9*Cin)

    # Both heads' conv1 at once: K = 9*Cin, N = 2*Ch.  f32 accumulation.
    acc = jnp.dot(patches, w1_ref[...],
                  preferred_element_type=jnp.float32)                        # (TB*HW, 2*Ch)

    # BatchNorm2d (eval) folded to scale/shift (conv1 bias folded in), ReLU.
    h = jnp.maximum(acc * scale_ref[...] + shift_ref[...], 0.0)              # (TB*HW, 2*Ch) f32

    # Channel-major for lane-dense outputs: transpose once, sublane-split heads.
    ht = jnp.transpose(h)                                                    # (2*Ch, TB*HW)
    h_ct = ht[:Ch, :].astype(jnp.bfloat16)                                   # (Ch, TB*HW)
    h_ot = ht[Ch:, :].astype(jnp.bfloat16)                                   # (Ch, TB*HW)

    # 1x1 convs as channel-major matmuls; outputs are already (Cout, TB*HW).
    y_c = jnp.dot(w2c_ref[...], h_ct,
                  preferred_element_type=jnp.float32) + b2c_ref[...]         # (Cctx, TB*HW)
    y_o = jax.nn.sigmoid(
        jnp.dot(w2o_ref[...], h_ot,
                preferred_element_type=jnp.float32) + b2o_ref[...])          # (1, TB*HW)

    # Lane-dense per-image stores (HW = 256 on the lane axis).
    for t in range(TB):                                        # static unroll
        ctx_ref[t] = y_c[:, t * HW:(t + 1) * HW]
        occ_ref[t] = y_o[:, t * HW:(t + 1) * HW]


def _choose_tb(bns, max_tb=8):
    """Largest divisor of bns <= max_tb that still leaves >= 2 grid steps."""
    best = 1
    for tb in range(2, min(bns // 2, max_tb) + 1):
        if bns % tb == 0:
            best = tb
    return best


def _run_heads(bev_nhwc, params):
    """bev_nhwc: (BNS, H, W, Cin) f32 -> ((BNS, Cctx, H*W), (BNS, 1, H*W)) f32."""
    BNS, H, W, Cin = bev_nhwc.shape
    Cctx, Ch = params["w2c_t"].shape
    HW = H * W
    TB = _choose_tb(BNS)

    # bf16 weights for the MXU (f32 accumulation); elementwise math stays f32.
    w1 = params["w1"].astype(jnp.bfloat16)          # (9*Cin, 2*Ch)
    w2c = params["w2c_t"].astype(jnp.bfloat16)      # (Cctx, Ch)
    w2o = params["w2o_t"].astype(jnp.bfloat16)      # (1, Ch)

    kernel = functools.partial(_heads_kernel, TB=TB, H=H, W=W, Ch=Ch)

    # TODO(synk): at production BEV resolutions, strip-tile H (with a 1-row
    # halo) and set vmem_limit_bytes so blocks fit v7x's 64 MiB VMEM.
    ctx, occ = pl.pallas_call(
        kernel,
        out_shape=(
            jax.ShapeDtypeStruct((BNS, Cctx, HW), jnp.float32),
            jax.ShapeDtypeStruct((BNS, 1, HW), jnp.float32),
        ),
        grid=(BNS // TB,),
        in_specs=[
            pl.BlockSpec((TB, H, W, Cin), lambda b: (b, 0, 0, 0)),
            pl.BlockSpec((9 * Cin, 2 * Ch), lambda b: (0, 0)),
            pl.BlockSpec((1, 2 * Ch), lambda b: (0, 0)),
            pl.BlockSpec((1, 2 * Ch), lambda b: (0, 0)),
            pl.BlockSpec((Cctx, Ch), lambda b: (0, 0)),
            pl.BlockSpec((Cctx, 1), lambda b: (0, 0)),
            pl.BlockSpec((1, Ch), lambda b: (0, 0)),
            pl.BlockSpec((1, 1), lambda b: (0, 0)),
        ],
        out_specs=(
            pl.BlockSpec((TB, Cctx, HW), lambda b: (b, 0, 0)),
            pl.BlockSpec((TB, 1, HW), lambda b: (b, 0, 0)),
        ),
        compiler_params=pltpu.CompilerParams(
            dimension_semantics=("parallel",)),   # shards across v7x dual TCs
    )(bev_nhwc, w1, params["scale"], params["shift"],
      w2c, params["b2c_t"], w2o, params["b2o_t"])
    return ctx, occ


# ----------------------------------------------------------------------------
# Deterministic parameter initialization (synthetic; shapes follow __init__).
# Weights for both heads are pre-folded/stacked into kernel-ready layouts.
def init_params(key, in_feats=4, mid_channels=32, out_channels_pts=80,
                occupancy_init=0.01):
    ks = jax.random.split(key, 3)
    Cmid = mid_channels
    Ch = mid_channels // 2
    eps = 1e-5  # PyTorch BatchNorm2d default
    params = {}

    # Stand-in pillar feature encoder (per-point linear + ReLU).
    params["pfn_w"] = 0.1 * jax.random.normal(ks[0], (in_feats, Cmid), jnp.float32)
    params["pfn_b"] = jnp.zeros((Cmid,), jnp.float32)

    def make_head(keys, cout, bias_fill=None):
        # conv1: 3x3, Cmid -> Ch   stored as (9, Cmid, Ch): [ky*3+kx, cin, cout]
        w1 = 0.1 * jax.random.normal(keys[0], (9, Cmid, Ch), jnp.float32)
        b1 = 0.01 * jax.random.normal(keys[1], (Ch,), jnp.float32)
        # BatchNorm2d(Ch), eval mode.
        gamma = 1.0 + 0.05 * jax.random.normal(keys[2], (Ch,), jnp.float32)
        beta = 0.05 * jax.random.normal(keys[3], (Ch,), jnp.float32)
        mean = 0.05 * jax.random.normal(keys[4], (Ch,), jnp.float32)
        var = jnp.abs(1.0 + 0.05 * jax.random.normal(keys[5], (Ch,), jnp.float32))
        # conv2: 1x1, Ch -> cout
        w2 = 0.1 * jax.random.normal(keys[6], (Ch, cout), jnp.float32)
        if bias_fill is None:
            b2 = 0.01 * jax.random.normal(keys[7], (cout,), jnp.float32)
        else:
            b2 = jnp.full((cout,), bias_fill, jnp.float32)
        eff_scale = gamma / jnp.sqrt(var + eps)
        eff_shift = beta + (b1 - mean) * eff_scale   # conv1 bias folded into BN
        return dict(w1=w1.reshape(9 * Cmid, Ch), scale=eff_scale,
                    shift=eff_shift, w2=w2, b2=b2)

    ctx = make_head(jax.random.split(ks[1], 8), out_channels_pts)
    # bias_init_with_prob(occupancy_init) = -log((1-p)/p)
    occ_bias = float(-np.log((1.0 - occupancy_init) / occupancy_init))
    occ = make_head(jax.random.split(ks[2], 8), 1, bias_fill=occ_bias)

    # Stack both heads' conv1 / BN into one set of kernel-ready tensors.
    params["w1"] = jnp.concatenate([ctx["w1"], occ["w1"]], axis=1)    # (9*Cmid, 2*Ch)
    params["scale"] = jnp.concatenate([ctx["scale"], occ["scale"]]).reshape(1, 2 * Ch)
    params["shift"] = jnp.concatenate([ctx["shift"], occ["shift"]]).reshape(1, 2 * Ch)
    # 1x1 convs stored channel-major (pre-transposed) for (Cout, H*W) outputs.
    params["w2c_t"] = ctx["w2"].T                                      # (Cctx, Ch)
    params["b2c_t"] = ctx["b2"].reshape(out_channels_pts, 1)
    params["w2o_t"] = occ["w2"].T                                      # (1, Ch)
    params["b2o_t"] = occ["b2"].reshape(1, 1)
    return params


# ----------------------------------------------------------------------------
# Forward pass (mirrors PtsBackbone.forward: all sweeps share the same weights,
# so B, cams and sweeps are folded into a single kernel batch axis).
def pts_backbone_forward(ptss, params):
    """ptss: (B, num_sweeps, num_cams, P, F)."""
    B, S, N, P, F = ptss.shape
    BN = B * N
    BNS = BN * S
    # (B, S, N, P, F) -> (B, N, S, P, F) -> (B*N*S, P, F) so that the flat
    # index is bn*S + s and the output reshapes directly to (B*N, S, ...).
    pts = jnp.transpose(ptss, (0, 2, 1, 3, 4)).reshape(BNS, P, F)

    # TODO(synk): stand-in for Voxelization / pts_voxel_encoder /
    # pts_middle_encoder / pts_backbone / pts_neck (builder submodules with no
    # config in this module's source): PFN-like per-point MLP + pillar
    # scatter-max -> (BNS, H, W, Cmid) BEV map, in plain JAX.
    emb = jnp.maximum(pts @ params["pfn_w"] + params["pfn_b"], 0.0)   # (BNS, P, Cmid)
    xs, ys = pts[..., 0], pts[..., 1]
    vx = (PC_RANGE[2] - PC_RANGE[0]) / VOXEL_W
    vy = (PC_RANGE[3] - PC_RANGE[1]) / VOXEL_H
    ix = jnp.clip(jnp.floor((xs - PC_RANGE[0]) / vx), 0, VOXEL_W - 1)
    iy = jnp.clip(jnp.floor((ys - PC_RANGE[1]) / vy), 0, VOXEL_H - 1)
    flat = (iy * VOXEL_W + ix).astype(jnp.int32)                      # (BNS, P)

    def scatter_max(e, idx):
        # init 0 (not -inf) is OK only because PFN embeddings are post-ReLU.
        return jnp.zeros((VOXEL_H * VOXEL_W, e.shape[-1]), e.dtype).at[idx].max(e)

    bev = jax.vmap(scatter_max)(emb, flat)                            # (BNS, HW, Cmid)
    bev = bev.reshape(BNS, VOXEL_H, VOXEL_W, -1)                      # NHWC

    # Fused Pallas heads: outputs are already channel-major (C, H*W).
    ctx_flat, occ_flat = _run_heads(bev, params)   # (BNS, Cctx, HW), (BNS, 1, HW)

    Cctx = ctx_flat.shape[1]
    ret_context = ctx_flat.reshape(BN, S, Cctx, VOXEL_H, VOXEL_W)
    ret_occupancy = occ_flat.reshape(BN, S, 1, VOXEL_H, VOXEL_W)
    return ret_context, ret_occupancy


# ----------------------------------------------------------------------------
if __name__ == "__main__":
    key = jax.random.PRNGKey(0)
    kp, kx = jax.random.split(key)

    # Small synthetic shapes: batch=2, sweeps=2, cams=1, points=128, feat=4.
    B, S, N, P, F = 2, 2, 1, 128, 4
    mid_channels = 32
    out_channels_pts = 80

    params = init_params(kp, in_feats=F, mid_channels=mid_channels,
                         out_channels_pts=out_channels_pts)
    # Points with x,y in the stand-in BEV range [0, 16).
    ptss = jax.random.uniform(kx, (B, S, N, P, F), jnp.float32) * 16.0

    ctx, occ = jax.jit(pts_backbone_forward)(ptss, params)
    jax.block_until_ready((ctx, occ))

    assert ctx.shape == (B * N, S, out_channels_pts, VOXEL_H, VOXEL_W), ctx.shape
    assert occ.shape == (B * N, S, 1, VOXEL_H, VOXEL_W), occ.shape
    assert bool(jnp.all((occ >= 0.0) & (occ <= 1.0)))
    assert bool(jnp.all(jnp.isfinite(ctx)))
    print("KERNEL_OK")
</pallas_src>

<mosaic_0001>
module attributes {stable_mosaic.version = 11 : i64} {
  func.func @_heads_kernel(%arg0: i32, %arg1: memref<2x16x16x32xf32, #tpu.memory_space<vmem>>, %arg2: memref<288x32xbf16, #tpu.memory_space<vmem>>, %arg3: memref<1x32xf32, #tpu.memory_space<vmem>>, %arg4: memref<1x32xf32, #tpu.memory_space<vmem>>, %arg5: memref<80x16xbf16, #tpu.memory_space<vmem>>, %arg6: memref<80x1xf32, #tpu.memory_space<vmem>>, %arg7: memref<1x16xbf16, #tpu.memory_space<vmem>>, %arg8: memref<1x1xf32, #tpu.memory_space<vmem>>, %arg9: memref<2x80x256xf32, #tpu.memory_space<vmem>>, %arg10: memref<2x1x256xf32, #tpu.memory_space<vmem>>) attributes {dimension_semantics = [#tpu.dimension_semantics<parallel>], iteration_bounds = array<i64: 2>, scalar_prefetch = 0 : i64, scratch_operands = 0 : i64, tpu.core_type = #tpu.core_type<tc>, window_params = [{transform_indices = @transform_0, window_bounds = array<i64: 2, 16, 16, 32>}, {pipeline_mode = #tpu.pipeline_mode<synchronous>, transform_indices = @transform_1, window_bounds = array<i64: 288, 32>}, {pipeline_mode = #tpu.pipeline_mode<synchronous>, transform_indices = @transform_2, window_bounds = array<i64: 1, 32>}, {pipeline_mode = #tpu.pipeline_mode<synchronous>, transform_indices = @transform_3, window_bounds = array<i64: 1, 32>}, {pipeline_mode = #tpu.pipeline_mode<synchronous>, transform_indices = @transform_4, window_bounds = array<i64: 80, 16>}, {pipeline_mode = #tpu.pipeline_mode<synchronous>, transform_indices = @transform_5, window_bounds = array<i64: 80, 1>}, {pipeline_mode = #tpu.pipeline_mode<synchronous>, transform_indices = @transform_6, window_bounds = array<i64: 1, 16>}, {pipeline_mode = #tpu.pipeline_mode<synchronous>, transform_indices = @transform_7, window_bounds = array<i64: 1, 1>}, {transform_indices = @transform_8, window_bounds = array<i64: 2, 80, 256>}, {transform_indices = @transform_9, window_bounds = array<i64: 2, 1, 256>}]} {
    %c0 = arith.constant 0 : index
    %c0_0 = arith.constant 0 : index
    %c0_1 = arith.constant 0 : index
    %c0_2 = arith.constant 0 : index
    %0 = vector.load %arg1[%c0, %c0_0, %c0_1, %c0_2] : memref<2x16x16x32xf32, #tpu.memory_space<vmem>>, vector<1x16x16x32xf32>
    %1 = vector.shape_cast %0 : vector<1x16x16x32xf32> to vector<16x16x32xf32>
    %2 = vector.extract_strided_slice %1 {offsets = [1, 0, 0], sizes = [1, 16, 32], strides = [1, 1, 1]} : vector<16x16x32xf32> to vector<1x16x32xf32>
    %3 = vector.extract_strided_slice %1 {offsets = [14, 0, 0], sizes = [1, 16, 32], strides = [1, 1, 1]} : vector<16x16x32xf32> to vector<1x16x32xf32>
    %4 = tpu.concatenate %2, %1, %3 in 0 : vector<1x16x32xf32>, vector<16x16x32xf32>, vector<1x16x32xf32> -> vector<18x16x32xf32>
    %5 = vector.extract_strided_slice %4 {offsets = [0, 1, 0], sizes = [18, 1, 32], strides = [1, 1, 1]} : vector<18x16x32xf32> to vector<18x1x32xf32>
    %6 = vector.extract_strided_slice %4 {offsets = [0, 14, 0], sizes = [18, 1, 32], strides = [1, 1, 1]} : vector<18x16x32xf32> to vector<18x1x32xf32>
    %7 = tpu.concatenate %5, %4, %6 in 1 : vector<18x1x32xf32>, vector<18x16x32xf32>, vector<18x1x32xf32> -> vector<18x18x32xf32>
    %8 = vector.extract_strided_slice %7 {offsets = [0, 0, 0], sizes = [16, 16, 32], strides = [1, 1, 1]} : vector<18x18x32xf32> to vector<16x16x32xf32>
    %9 = vector.shape_cast %8 : vector<16x16x32xf32> to vector<256x32xf32>
    %10 = vector.extract_strided_slice %7 {offsets = [0, 1, 0], sizes = [16, 16, 32], strides = [1, 1, 1]} : vector<18x18x32xf32> to vector<16x16x32xf32>
    %11 = vector.shape_cast %10 : vector<16x16x32xf32> to vector<256x32xf32>
    %12 = vector.extract_strided_slice %7 {offsets = [0, 2, 0], sizes = [16, 16, 32], strides = [1, 1, 1]} : vector<18x18x32xf32> to vector<16x16x32xf32>
    %13 = vector.shape_cast %12 : vector<16x16x32xf32> to vector<256x32xf32>
    %14 = vector.extract_strided_slice %7 {offsets = [1, 0, 0], sizes = [16, 16, 32], strides = [1, 1, 1]} : vector<18x18x32xf32> to vector<16x16x32xf32>
    %15 = vector.shape_cast %14 : vector<16x16x32xf32> to vector<256x32xf32>
    %16 = vector.extract_strided_slice %7 {offsets = [1, 1, 0], sizes = [16, 16, 32], strides = [1, 1, 1]} : vector<18x18x32xf32> to vector<16x16x32xf32>
    %17 = vector.shape_cast %16 : vector<16x16x32xf32> to vector<256x32xf32>
    %18 = vector.extract_strided_slice %7 {offsets = [1, 2, 0], sizes = [16, 16, 32], strides = [1, 1, 1]} : vector<18x18x32xf32> to vector<16x16x32xf32>
    %19 = vector.shape_cast %18 : vector<16x16x32xf32> to vector<256x32xf32>
    %20 = vector.extract_strided_slice %7 {offsets = [2, 0, 0], sizes = [16, 16, 32], strides = [1, 1, 1]} : vector<18x18x32xf32> to vector<16x16x32xf32>
    %21 = vector.shape_cast %20 : vector<16x16x32xf32> to vector<256x32xf32>
    %22 = vector.extract_strided_slice %7 {offsets = [2, 1, 0], sizes = [16, 16, 32], strides = [1, 1, 1]} : vector<18x18x32xf32> to vector<16x16x32xf32>
    %23 = vector.shape_cast %22 : vector<16x16x32xf32> to vector<256x32xf32>
    %24 = vector.extract_strided_slice %7 {offsets = [2, 2, 0], sizes = [16, 16, 32], strides = [1, 1, 1]} : vector<18x18x32xf32> to vector<16x16x32xf32>
    %25 = vector.shape_cast %24 : vector<16x16x32xf32> to vector<256x32xf32>
    %26 = tpu.concatenate %9, %11, %13, %15, %17, %19, %21, %23, %25 in 1 : vector<256x32xf32>, vector<256x32xf32>, vector<256x32xf32>, vector<256x32xf32>, vector<256x32xf32>, vector<256x32xf32>, vector<256x32xf32>, vector<256x32xf32>, vector<256x32xf32> -> vector<256x288xf32>
    %27 = arith.truncf %26 : vector<256x288xf32> to vector<256x288xbf16>
    %c1 = arith.constant 1 : index
    %c0_3 = arith.constant 0 : index
    %c0_4 = arith.constant 0 : index
    %c0_5 = arith.constant 0 : index
    %28 = vector.load %arg1[%c1, %c0_3, %c0_4, %c0_5] : memref<2x16x16x32xf32, #tpu.memory_space<vmem>>, vector<1x16x16x32xf32>
    %29 = vector.shape_cast %28 : vector<1x16x16x32xf32> to vector<16x16x32xf32>
    %30 = vector.extract_strided_slice %29 {offsets = [1, 0, 0], sizes = [1, 16, 32], strides = [1, 1, 1]} : vector<16x16x32xf32> to vector<1x16x32xf32>
    %31 = vector.extract_strided_slice %29 {offsets = [14, 0, 0], sizes = [1, 16, 32], strides = [1, 1, 1]} : vector<16x16x32xf32> to vector<1x16x32xf32>
    %32 = tpu.concatenate %30, %29, %31 in 0 : vector<1x16x32xf32>, vector<16x16x32xf32>, vector<1x16x32xf32> -> vector<18x16x32xf32>
    %33 = vector.extract_strided_slice %32 {offsets = [0, 1, 0], sizes = [18, 1, 32], strides = [1, 1, 1]} : vector<18x16x32xf32> to vector<18x1x32xf32>
    %34 = vector.extract_strided_slice %32 {offsets = [0, 14, 0], sizes = [18, 1, 32], strides = [1, 1, 1]} : vector<18x16x32xf32> to vector<18x1x32xf32>
    %35 = tpu.concatenate %33, %32, %34 in 1 : vector<18x1x32xf32>, vector<18x16x32xf32>, vector<18x1x32xf32> -> vector<18x18x32xf32>
    %36 = vector.extract_strided_slice %35 {offsets = [0, 0, 0], sizes = [16, 16, 32], strides = [1, 1, 1]} : vector<18x18x32xf32> to vector<16x16x32xf32>
    %37 = vector.shape_cast %36 : vector<16x16x32xf32> to vector<256x32xf32>
    %38 = vector.extract_strided_slice %35 {offsets = [0, 1, 0], sizes = [16, 16, 32], strides = [1, 1, 1]} : vector<18x18x32xf32> to vector<16x16x32xf32>
    %39 = vector.shape_cast %38 : vector<16x16x32xf32> to vector<256x32xf32>
    %40 = vector.extract_strided_slice %35 {offsets = [0, 2, 0], sizes = [16, 16, 32], strides = [1, 1, 1]} : vector<18x18x32xf32> to vector<16x16x32xf32>
    %41 = vector.shape_cast %40 : vector<16x16x32xf32> to vector<256x32xf32>
    %42 = vector.extract_strided_slice %35 {offsets = [1, 0, 0], sizes = [16, 16, 32], strides = [1, 1, 1]} : vector<18x18x32xf32> to vector<16x16x32xf32>
    %43 = vector.shape_cast %42 : vector<16x16x32xf32> to vector<256x32xf32>
    %44 = vector.extract_strided_slice %35 {offsets = [1, 1, 0], sizes = [16, 16, 32], strides = [1, 1, 1]} : vector<18x18x32xf32> to vector<16x16x32xf32>
    %45 = vector.shape_cast %44 : vector<16x16x32xf32> to vector<256x32xf32>
    %46 = vector.extract_strided_slice %35 {offsets = [1, 2, 0], sizes = [16, 16, 32], strides = [1, 1, 1]} : vector<18x18x32xf32> to vector<16x16x32xf32>
    %47 = vector.shape_cast %46 : vector<16x16x32xf32> to vector<256x32xf32>
    %48 = vector.extract_strided_slice %35 {offsets = [2, 0, 0], sizes = [16, 16, 32], strides = [1, 1, 1]} : vector<18x18x32xf32> to vector<16x16x32xf32>
    %49 = vector.shape_cast %48 : vector<16x16x32xf32> to vector<256x32xf32>
    %50 = vector.extract_strided_slice %35 {offsets = [2, 1, 0], sizes = [16, 16, 32], strides = [1, 1, 1]} : vector<18x18x32xf32> to vector<16x16x32xf32>
    %51 = vector.shape_cast %50 : vector<16x16x32xf32> to vector<256x32xf32>
    %52 = vector.extract_strided_slice %35 {offsets = [2, 2, 0], sizes = [16, 16, 32], strides = [1, 1, 1]} : vector<18x18x32xf32> to vector<16x16x32xf32>
    %53 = vector.shape_cast %52 : vector<16x16x32xf32> to vector<256x32xf32>
    %54 = tpu.concatenate %37, %39, %41, %43, %45, %47, %49, %51, %53 in 1 : vector<256x32xf32>, vector<256x32xf32>, vector<256x32xf32>, vector<256x32xf32>, vector<256x32xf32>, vector<256x32xf32>, vector<256x32xf32>, vector<256x32xf32>, vector<256x32xf32> -> vector<256x288xf32>
    %55 = arith.truncf %54 : vector<256x288xf32> to vector<256x288xbf16>
    %56 = tpu.concatenate %27, %55 in 0 : vector<256x288xbf16>, vector<256x288xbf16> -> vector<512x288xbf16>
    %c0_6 = arith.constant 0 : index
    %c0_7 = arith.constant 0 : index
    %57 = vector.load %arg2[%c0_6, %c0_7] : memref<288x32xbf16, #tpu.memory_space<vmem>>, vector<288x32xbf16>
    %cst = arith.constant dense<0.000000e+00> : vector<512x32xf32>
    %58 = tpu.matmul %56, %57, %cst {dimension_numbers = #tpu.dot_dimension_numbers<[1], [0], [0], [1], [0, 0, 1, 1], [], []>} : vector<512x288xbf16>, vector<288x32xbf16>, vector<512x32xf32> -> vector<512x32xf32>
    %c0_8 = arith.constant 0 : index
    %c0_9 = arith.constant 0 : index
    %59 = vector.load %arg3[%c0_8, %c0_9] : memref<1x32xf32, #tpu.memory_space<vmem>>, vector<1x32xf32>
    %60 = vector.broadcast %59 : vector<1x32xf32> to vector<512x32xf32>
    %61 = arith.mulf %58, %60 : vector<512x32xf32>
    %c0_10 = arith.constant 0 : index
    %c0_11 = arith.constant 0 : index
    %62 = vector.load %arg4[%c0_10, %c0_11] : memref<1x32xf32, #tpu.memory_space<vmem>>, vector<1x32xf32>
    %63 = vector.broadcast %62 : vector<1x32xf32> to vector<512x32xf32>
    %64 = arith.addf %61, %63 : vector<512x32xf32>
    %cst_12 = arith.constant 0.000000e+00 : f32
    %65 = vector.broadcast %cst_12 : f32 to vector<512x32xf32>
    %66 = arith.maximumf %64, %65 : vector<512x32xf32>
    %67 = tpu.transpose %66, [1, 0] : vector<512x32xf32> -> vector<32x512xf32>
    %68 = vector.extract_strided_slice %67 {offsets = [0, 0], sizes = [16, 512], strides = [1, 1]} : vector<32x512xf32> to vector<16x512xf32>
    %69 = arith.truncf %68 : vector<16x512xf32> to vector<16x512xbf16>
    %70 = vector.extract_strided_slice %67 {offsets = [16, 0], sizes = [16, 512], strides = [1, 1]} : vector<32x512xf32> to vector<16x512xf32>
    %71 = arith.truncf %70 : vector<16x512xf32> to vector<16x512xbf16>
    %c0_13 = arith.constant 0 : index
    %c0_14 = arith.constant 0 : index
    %72 = vector.load %arg5[%c0_13, %c0_14] : memref<80x16xbf16, #tpu.memory_space<vmem>>, vector<80x16xbf16>
    %cst_15 = arith.constant dense<0.000000e+00> : vector<80x512xf32>
    %73 = tpu.matmul %72, %69, %cst_15 {dimension_numbers = #tpu.dot_dimension_numbers<[1], [0], [0], [1], [0, 0, 1, 1], [], []>} : vector<80x16xbf16>, vector<16x512xbf16>, vector<80x512xf32> -> vector<80x512xf32>
    %c0_16 = arith.constant 0 : index
    %c0_17 = arith.constant 0 : index
    %74 = vector.load %arg6[%c0_16, %c0_17] : memref<80x1xf32, #tpu.memory_space<vmem>>, vector<80x1xf32>
    %75 = vector.broadcast %74 : vector<80x1xf32> to vector<80x512xf32>
    %76 = arith.addf %73, %75 : vector<80x512xf32>
    %c0_18 = arith.constant 0 : index
    %c0_19 = arith.constant 0 : index
    %77 = vector.load %arg7[%c0_18, %c0_19] : memref<1x16xbf16, #tpu.memory_space<vmem>>, vector<1x16xbf16>
    %cst_20 = arith.constant dense<0.000000e+00> : vector<1x512xf32>
    %78 = tpu.matmul %77, %71, %cst_20 {dimension_numbers = #tpu.dot_dimension_numbers<[1], [0], [0], [1], [0, 0, 1, 1], [], []>} : vector<1x16xbf16>, vector<16x512xbf16>, vector<1x512xf32> -> vector<1x512xf32>
    %c0_21 = arith.constant 0 : index
    %c0_22 = arith.constant 0 : index
    %79 = vector.load %arg8[%c0_21, %c0_22] : memref<1x1xf32, #tpu.memory_space<vmem>>, vector<1x1xf32>
    %80 = vector.broadcast %79 : vector<1x1xf32> to vector<1x512xf32>
    %81 = arith.addf %78, %80 : vector<1x512xf32>
    %82 = arith.negf %81 : vector<1x512xf32>
    %83 = math.exp %82 : vector<1x512xf32>
    %cst_23 = arith.constant 1.000000e+00 : f32
    %84 = vector.broadcast %cst_23 : f32 to vector<1x512xf32>
    %85 = arith.addf %84, %83 : vector<1x512xf32>
    %86 = arith.divf %84, %85 : vector<1x512xf32>
    %87 = vector.extract_strided_slice %76 {offsets = [0, 0], sizes = [80, 256], strides = [1, 1]} : vector<80x512xf32> to vector<80x256xf32>
    %c0_24 = arith.constant 0 : index
    %c0_25 = arith.constant 0 : index
    %c0_26 = arith.constant 0 : index
    %88 = vector.load %arg9[%c0_24, %c0_25, %c0_26] : memref<2x80x256xf32, #tpu.memory_space<vmem>>, vector<1x80x256xf32>
    %89 = vector.shape_cast %88 : vector<1x80x256xf32> to vector<80x256xf32>
    %90 = vector.shape_cast %87 : vector<80x256xf32> to vector<1x80x256xf32>
    tpu.vector_store %arg9[%c0_24, %c0_25, %c0_26], %90 {strides = array<i32>} : memref<2x80x256xf32, #tpu.memory_space<vmem>>, vector<1x80x256xf32>,
    %91 = vector.extract_strided_slice %86 {offsets = [0, 0], sizes = [1, 256], strides = [1, 1]} : vector<1x512xf32> to vector<1x256xf32>
    %c0_27 = arith.constant 0 : index
    %c0_28 = arith.constant 0 : index
    %c0_29 = arith.constant 0 : index
    %92 = vector.load %arg10[%c0_27, %c0_28, %c0_29] : memref<2x1x256xf32, #tpu.memory_space<vmem>>, vector<1x1x256xf32>
    %93 = vector.shape_cast %92 : vector<1x1x256xf32> to vector<1x256xf32>
    %94 = vector.shape_cast %91 : vector<1x256xf32> to vector<1x1x256xf32>
    tpu.vector_store %arg10[%c0_27, %c0_28, %c0_29], %94 {strides = array<i32>} : memref<2x1x256xf32, #tpu.memory_space<vmem>>, vector<1x1x256xf32>,
    %95 = vector.extract_strided_slice %76 {offsets = [0, 256], sizes = [80, 256], strides = [1, 1]} : vector<80x512xf32> to vector<80x256xf32>
    %c1_30 = arith.constant 1 : index
    %c0_31 = arith.constant 0 : index
    %c0_32 = arith.constant 0 : index
    %96 = vector.load %arg9[%c1_30, %c0_31, %c0_32] : memref<2x80x256xf32, #tpu.memory_space<vmem>>, vector<1x80x256xf32>
    %97 = vector.shape_cast %96 : vector<1x80x256xf32> to vector<80x256xf32>
    %98 = vector.shape_cast %95 : vector<80x256xf32> to vector<1x80x256xf32>
    tpu.vector_store %arg9[%c1_30, %c0_31, %c0_32], %98 {strides = array<i32>} : memref<2x80x256xf32, #tpu.memory_space<vmem>>, vector<1x80x256xf32>,
    %99 = vector.extract_strided_slice %86 {offsets = [0, 256], sizes = [1, 256], strides = [1, 1]} : vector<1x512xf32> to vector<1x256xf32>
    %c1_33 = arith.constant 1 : index
    %c0_34 = arith.constant 0 : index
    %c0_35 = arith.constant 0 : index
    %100 = vector.load %arg10[%c1_33, %c0_34, %c0_35] : memref<2x1x256xf32, #tpu.memory_space<vmem>>, vector<1x1x256xf32>
    %101 = vector.shape_cast %100 : vector<1x1x256xf32> to vector<1x256xf32>
    %102 = vector.shape_cast %99 : vector<1x256xf32> to vector<1x1x256xf32>
    tpu.vector_store %arg10[%c1_33, %c0_34, %c0_35], %102 {strides = array<i32>} : memref<2x1x256xf32, #tpu.memory_space<vmem>>, vector<1x1x256xf32>,
    return
  }
  func.func @transform_0(%arg0: i32) -> (i32, i32, i32, i32) {
    %c0_i32 = arith.constant 0 : i32
    %c0_i32_0 = arith.constant 0 : i32
    %c0_i32_1 = arith.constant 0 : i32
    %c0_i32_2 = arith.constant 0 : i32
    return %arg0, %c0_i32, %c0_i32_0, %c0_i32_1 : i32, i32, i32, i32
  }
  func.func @transform_1(%arg0: i32) -> (i32, i32) {
    %c0_i32 = arith.constant 0 : i32
    %c0_i32_0 = arith.constant 0 : i32
    %c0_i32_1 = arith.constant 0 : i32
    return %c0_i32, %c0_i32_0 : i32, i32
  }
  func.func @transform_2(%arg0: i32) -> (i32, i32) {
    %c0_i32 = arith.constant 0 : i32
    %c0_i32_0 = arith.constant 0 : i32
    %c0_i32_1 = arith.constant 0 : i32
    return %c0_i32, %c0_i32_0 : i32, i32
  }
  func.func @transform_3(%arg0: i32) -> (i32, i32) {
    %c0_i32 = arith.constant 0 : i32
    %c0_i32_0 = arith.constant 0 : i32
    %c0_i32_1 = arith.constant 0 : i32
    return %c0_i32, %c0_i32_0 : i32, i32
  }
  func.func @transform_4(%arg0: i32) -> (i32, i32) {
    %c0_i32 = arith.constant 0 : i32
    %c0_i32_0 = arith.constant 0 : i32
    %c0_i32_1 = arith.constant 0 : i32
    return %c0_i32, %c0_i32_0 : i32, i32
  }
  func.func @transform_5(%arg0: i32) -> (i32, i32) {
    %c0_i32 = arith.constant 0 : i32
    %c0_i32_0 = arith.constant 0 : i32
    %c0_i32_1 = arith.constant 0 : i32
    return %c0_i32, %c0_i32_0 : i32, i32
  }
  func.func @transform_6(%arg0: i32) -> (i32, i32) {
    %c0_i32 = arith.constant 0 : i32
    %c0_i32_0 = arith.constant 0 : i32
    %c0_i32_1 = arith.constant 0 : i32
    return %c0_i32, %c0_i32_0 : i32, i32
  }
  func.func @transform_7(%arg0: i32) -> (i32, i32) {
    %c0_i32 = arith.constant 0 : i32
    %c0_i32_0 = arith.constant 0 : i32
    %c0_i32_1 = arith.constant 0 : i32
    return %c0_i32, %c0_i32_0 : i32, i32
  }
  func.func @transform_8(%arg0: i32) -> (i32, i32, i32) {
    %c0_i32 = arith.constant 0 : i32
    %c0_i32_0 = arith.constant 0 : i32
    %c0_i32_1 = arith.constant 0 : i32
    return %arg0, %c0_i32, %c0_i32_0 : i32, i32, i32
  }
  func.func @transform_9(%arg0: i32) -> (i32, i32, i32) {
    %c0_i32 = arith.constant 0 : i32
    %c0_i32_0 = arith.constant 0 : i32
    %c0_i32_1 = arith.constant 0 : i32
    return %arg0, %c0_i32, %c0_i32_0 : i32, i32, i32
  }
}

</mosaic_0001>

<bundles_post_ra>
// kernel: pts_backbone_forward.1
= control target key start
LH: loop header
LB: loop body
LE: loop exit
PB: predicated region body
PF: predicated region fallthrough
CT: control target
= control target key end

     0   :  { %s6352_s11 = smov 0   ;;  %s10407_s0 = inlined_call_operand.vmem [shape: f32[4,16,16,32], index: 0, kind: input, shape index: {}]   ;;  %s10408_s1 = inlined_call_operand.vmem [shape: bf16[288,32], index: 1, kind: input, shape index: {}]   ;;  %s10409_s2 = inlined_call_operand.vmem [shape: f32[1,32], index: 2, kind: input, shape index: {}]   ;;  %s10410_s3 = inlined_call_operand.vmem [shape: f32[1,32], index: 3, kind: input, shape index: {}]   ;;  %s10411_s4 = inlined_call_operand.vmem [shape: bf16[80,16], index: 4, kind: input, shape index: {}]   ;;  %s10412_s5 = inlined_call_operand.vmem [shape: f32[80,1], index: 5, kind: input, shape index: {}]   ;;  %s10413_s6 = inlined_call_operand.vmem [shape: bf16[1,16], index: 6, kind: input, shape index: {}]   ;;  %s10414_s7 = inlined_call_operand.<no memory space> [shape: f32[1,1], index: 7, kind: input, shape index: {}]   ;;  %s10415_s8 = inlined_call_operand.vmem [shape: f32[4,80,256], index: 8, kind: output, shape index: {0}]   ;;  %s10416_s9 = inlined_call_operand.vmem [shape: f32[4,1,256], index: 9, kind: output, shape index: {1}]  }
   0x1   :  { %v15_v0 = vstv %s10414_s7 }
   0x2   :  { %16 = vst [vmem:[#allocation2] sm:$0x1] %v15_v0 }
   0x3 LB: > { %s5070_s12 = sadd.s32 4294967295, %s6293_s11   ;;  %p5074_p0 = scmp.ge.s32.totalorder %s6293_s11, 1  ;;  %s6293_s11 = sphi %s6352_s11, %s22_s11  }
   0x4   : > { %p294_p1 = scmp.lt.s32.totalorder %s6293_s11, 3 }
   0x6   : > { %p295_p2 = pnand %p5074_p0, %p294_p1 }
   0x8   : > { %298 = sbr.rel (%p295_p2) target bundleno = 1410 (0x582), region = 52 }
   0xd   : > { %s5075_s13 = sshll.u32 %s5070_s12, 1  ;;  %vm454_vm0 = vcmask 1040384   ;;  %vm644_vm1 = vcmask 1046528   ;;  %s6295_s17 = smov 32   ;;  %vm720_vm2 = vcmask 1045504   ;;  %vm1422_vm3 = vcmask 261120  }
   0xe   : > { %p338_p3 = scmp.lt.s32.totalorder %s5075_s13, 3  ;;  %s6296_s22 = smov 64   ;;  %vm1453_vm4 = vcmask 523264   ;;  %vm1484_vm5 = vcmask 785408   ;;  %vm4629_vm6 = vcmask 130048  }
   0xf   : > { %s6297_s23 = smov 96  }
  0x10   : > { %s11350_s13 = smov (!%p338_p3, %s5075_s13), 3 }
  0x11   : > { %s5289_s7 = sshll.u32 %s11350_s13, 8  ;;  %s5081_s28 = sshll.u32 %s11350_s13, 1 }
  0x12   : > { %s6366_s16 = scalar_lea.vmem %s10407_s0, %s5289_s7  ;;  %s10390_s10 = scalar_lea.vmem %s10416_s9, %s5081_s28 }
  0x13   : > { %v366_v1 = vld [vmem:[%s6366_s16 + $0x40] sm:$0xff]  ;;  %v367_v2 = vld [vmem:[%s6366_s16 + $0x48] sm:$0xff]  ;;  %v360_v9 = vld [vmem:[%s6366_s16 + $0x10] sm:$0xff] }
  0x14   : > { %v362_v3 = vld [vmem:[%s6366_s16 + $0x20] sm:$0xff]  ;;  %v410_v4 = vrot.slane %v366_v1, 1  ;;  %v467_v5 = vrot.slane %v366_v1, 7  ;;  %v468_v6 = vrot.slane %v367_v2, 7  ;;  %v554_v7 = vrot.slane %v367_v2, 5  ;;  %v363_v8 = vld [vmem:[%s6366_s16 + $0x28] sm:$0xff] }
  0x15   : > { %v408_v10 = vrot.slane %v362_v3, 1  ;;  %v461_v11 = vrot.slane %v362_v3, 7  ;;  %v462_v12 = vrot.slane %v363_v8, 7  ;;  %v552_v13 = vrot.slane %v363_v8, 5  ;;  %v361_v20 = vld [vmem:[%s6366_s16 + $0x18] sm:$0xff]  ;;  %v368_v26 = vld [vmem:[%s6366_s16 + $0x50] sm:$0xff] }
  0x16   : > { %v6374_v14 = vsel %vm454_vm0, %v467_v5, %v468_v6  ;;  %v6377_v15 = vsel %vm454_vm0, %v410_v4, %v467_v5  ;;  %v6380_v16 = vsel %vm454_vm0, %v468_v6, %v554_v7  ;;  %v406_v21 = vrot.slane %v360_v9, 1  ;;  %v369_v35 = vld [vmem:[%s6366_s16 + $0x58] sm:$0xff]  ;;  %v364_v44 = vld [vmem:[%s6366_s16 + $0x30] sm:$0xff]  ;;  %v358_v58 = vld [vmem:[%s6366_s16] sm:$0xff] }
  0x17   : > { %10706 = vst [vmem:[#allocation3_spill] sm:$0xff] %v6374_v14  ;;  %v665_v17 = vrot.slane %v6377_v15, 1  ;;  %v666_v18 = vrot.slane %v6374_v14, 1  ;;  %v668_v19 = vrot.slane %v6380_v16, 1  ;;  %v6387_v22 = vsel %vm454_vm0, %v461_v11, %v462_v12  ;;  %v365_v53 = vld [vmem:[%s6366_s16 + $0x38] sm:$0xff]  ;;  %v359_v3 = vld [vmem:[%s6366_s16 + $0x8] sm:$0xff] }
  0x18   : > { %10707 = vst [vmem:[#allocation4_spill] sm:$0xff] %v6377_v15  ;;  %v6390_v23 = vsel %vm454_vm0, %v408_v10, %v461_v11  ;;  %v6393_v24 = vsel %vm454_vm0, %v462_v12, %v552_v13  ;;  %v455_v25 = vrot.slane %v360_v9, 7  ;;  %v656_v30 = vrot.slane %v6387_v22, 1  ;;  %v374_v8 = vld [vmem:[%s6366_s16 + $0x80] sm:$0xff] }
  0x19   : > { %v6397_v27 = vsel %vm644_vm1, %v665_v17, %v666_v18  ;;  %v6400_v28 = vsel %vm644_vm1, %v666_v18, %v668_v19  ;;  %v655_v29 = vrot.slane %v6390_v23, 1  ;;  %v658_v32 = vrot.slane %v6393_v24, 1 }
  0x1a   : > { %10708 = vst [vmem:[#allocation5_spill] sm:$0xff] %v6397_v27  ;;  %v6406_v31 = vpack.i.bf16 %v6400_v28, %v6397_v27  ;;  %v456_v34 = vrot.slane %v361_v20, 7  ;;  %v550_v37 = vrot.slane %v361_v20, 5  ;;  %v6415_v38 = vsel %vm454_vm0, %v406_v21, %v455_v25  ;;  %v375_v20 = vld [vmem:[%s6366_s16 + $0x88] sm:$0xff] }
  0x1b   : > { %10709 = vst [vmem:[#allocation6_spill] sm:$0xff] %v6400_v28  ;;  %v6412_v36 = vsel %vm644_vm1, %v655_v29, %v656_v30  ;;  %v411_v39 = vrot.slane %v368_v26, 1  ;;  %v6420_v40 = vsel %vm644_vm1, %v656_v30, %v658_v32  ;;  %v645_v42 = vrot.slane %v6415_v38, 1  ;;  %v372_v30 = vld [vmem:[%s6366_s16 + $0x70] sm:$0xff] }
  0x1c   : > { %10710 = vst [vmem:[#allocation7_spill] sm:$0xff] %v6406_v31  ;;  %5363 = vrot.lane.b32.xlu2 %v6406_v31, %s6295_s17  ;;  %v6423_v41 = vsel %vm454_vm0, %v455_v25, %v456_v34  ;;  %v470_v43 = vrot.slane %v368_v26, 7  ;;  %v6429_v45 = vpack.i.bf16 %v6420_v40, %v6412_v36  ;;  %v6432_v46 = vsel %vm454_vm0, %v456_v34, %v550_v37  ;;  %v384_v28 = vld [vmem:[%s6366_s16 + $0xd0] sm:$0xff] }
  0x1d   : > { %10711 = vst [vmem:[#allocation8_spill] sm:$0xff] %v6412_v36  ;;  %v646_v47 = vrot.slane %v6423_v41, 1  ;;  %v471_v48 = vrot.slane %v369_v35, 7  ;;  %v648_v49 = vrot.slane %v6432_v46, 1  ;;  %v555_v51 = vrot.slane %v369_v35, 5  ;;  %v377_v36 = vld [vmem:[%s6366_s16 + $0x98] sm:$0xff] }
  0x1e   : > { %10712 = vst [vmem:[#allocation9_spill] sm:$0xff] %v6420_v40  ;;  %v6438_v52 = vsel %vm454_vm0, %v411_v39, %v470_v43  ;;  %5353 = vrot.lane.b32.xlu1 %v6429_v45, %s6295_s17  ;;  %v409_v57 = vrot.slane %v364_v44, 1  ;;  %v464_v62 = vrot.slane %v364_v44, 7  ;;  %v465_v1 = vrot.slane %v365_v53, 7 }
  0x1f   : > { %10713 = vst [vmem:[#allocation10_spill] sm:$0xff] %v6429_v45  ;;  %v6444_v54 = vsel %vm644_vm1, %v645_v42, %v646_v47  ;;  %v6447_v55 = vsel %vm454_vm0, %v470_v43, %v471_v48  ;;  %v670_v56 = vrot.slane %v6438_v52, 1  ;;  %v6452_v59 = vsel %vm644_vm1, %v646_v47, %v648_v49  ;;  %v373_v47 = vld [vmem:[%s6366_s16 + $0x78] sm:$0xff] }
  0x20   : > { %10714 = vst [vmem:[#allocation11_spill] sm:$0xff] %v6444_v54  ;;  %v6455_v60 = vsel %vm454_vm0, %v471_v48, %v555_v51  ;;  %v671_v61 = vrot.slane %v6447_v55, 1  ;;  %v6460_v63 = vpack.i.bf16 %v6452_v59, %v6444_v54  ;;  %v553_v2 = vrot.slane %v365_v53, 5 }
  0x21   : > { %10715 = vst [vmem:[#allocation12_spill] sm:$0xff] %v6452_v59  ;;  %v673_v0 = vrot.slane %v6455_v60, 1  ;;  %v6468_v5 = vsel %vm454_vm0, %v409_v57, %v464_v62  ;;  %v407_v6 = vrot.slane %v358_v58, 1  ;;  %v458_v7 = vrot.slane %v358_v58, 7 }
  0x22   : > { %10716 = vst [vmem:[#allocation13_spill] sm:$0xff] %v6460_v63  ;;  %v6465_v4 = vsel %vm644_vm1, %v670_v56, %v671_v61  ;;  %5343 = vrot.lane.b32.xlu0 %v6460_v63, %s6295_s17  ;;  %v6477_v10 = vsel %vm454_vm0, %v464_v62, %v465_v1  ;;  %v6480_v11 = vsel %vm454_vm0, %v465_v1, %v553_v2  ;;  %v660_v12 = vrot.slane %v6468_v5, 1  ;;  %v370_v62 = vld [vmem:[%s6366_s16 + $0x60] sm:$0xff] }
  0x23   : > { %10717 = vst [vmem:[#allocation14_spill] sm:$0xff] %v6465_v4  ;;  %v6474_v9 = vsel %vm644_vm1, %v671_v61, %v673_v0  ;;  %v661_v17 = vrot.slane %v6477_v10, 1  ;;  %v663_v18 = vrot.slane %v6480_v11, 1  ;;  %v459_v19 = vrot.slane %v359_v3, 7 }
  0x24   : > { %10718 = vst [vmem:[#allocation15_spill] sm:$0xff] %v6474_v9  ;;  %v6485_v13 = vpack.i.bf16 %v6474_v9, %v6465_v4  ;;  %v551_v21 = vrot.slane %v359_v3, 5  ;;  %v6491_v25 = vsel %vm454_vm0, %v407_v6, %v458_v7  ;;  %v414_v26 = vrot.slane %v374_v8, 1 }
  0x25   : > { %10720 = vst [vmem:[#allocation17_spill] sm:$0xff] %v6491_v25  ;;  %v479_v29 = vrot.slane %v374_v8, 7  ;;  %v6497_v32 = vsel %vm644_vm1, %v660_v12, %v661_v17  ;;  %v6500_v34 = vsel %vm644_vm1, %v661_v17, %v663_v18  ;;  %v6503_v35 = vsel %vm454_vm0, %v458_v7, %v459_v19  ;;  %v371_v17 = vld [vmem:[%s6366_s16 + $0x68] sm:$0xff] }
  0x26   : > { %10719 = vst [vmem:[#allocation16_spill] sm:$0xff] %v6485_v13  ;;  %5368 = vrot.lane.b32.xlu2 %v6485_v13, %s6295_s17  ;;  %v650_v37 = vrot.slane %v6491_v25, 1  ;;  %v6508_v39 = vpack.i.bf16 %v6500_v34, %v6497_v32  ;;  %v6511_v42 = vsel %vm454_vm0, %v459_v19, %v551_v21  ;;  %v651_v43 = vrot.slane %v6503_v35, 1 }
  0x27   : > { %10721 = vst [vmem:[#allocation18_spill] sm:$0xff] %v6497_v32  ;;  %v480_v44 = vrot.slane %v375_v20, 7  ;;  %v653_v48 = vrot.slane %v6511_v42, 1  ;;  %v558_v49 = vrot.slane %v375_v20, 5  ;;  %v6517_v51 = vsel %vm454_vm0, %v414_v26, %v479_v29  ;;  %v380_v26 = vld [vmem:[%s6366_s16 + $0xb0] sm:$0xff] }
  0x28   : > { %10722 = vst [vmem:[#allocation19_spill] sm:$0xff] %v6500_v34  ;;  %v413_v53 = vrot.slane %v372_v30, 1  ;;  %5358 = vrot.lane.b32.xlu1 %v6508_v39, %s6295_s17  ;;  %v6522_v56 = vsel %vm644_vm1, %v650_v37, %v651_v43  ;;  %v685_v58 = vrot.slane %v6517_v51, 1  ;;  %v476_v61 = vrot.slane %v372_v30, 7 }
  0x29   : > { %10723 = vst [vmem:[#allocation20_spill] sm:$0xff] %v6503_v35  ;;  %v6525_v57 = vsel %vm454_vm0, %v479_v29, %v480_v44  ;;  %v6530_v0 = vsel %vm644_vm1, %v651_v43, %v653_v48  ;;  %v6533_v1 = vsel %vm454_vm0, %v480_v44, %v558_v49  ;;  %v477_v3 = vrot.slane %v373_v47, 7 }
  0x2a   : > { %10724 = vst [vmem:[#allocation21_spill] sm:$0xff] %v6508_v39  ;;  %v686_v2 = vrot.slane %v6525_v57, 1  ;;  %v5347_v6 = vpack.i.bf16 %v6530_v0, %v6522_v56  ;;  %v688_v7 = vrot.slane %v6533_v1, 1  ;;  %v557_v8 = vrot.slane %v373_v47, 5 }
  0x2b   : > { %10725 = vst [vmem:[#allocation22_spill] sm:$0xff] %v6517_v51  ;;  %v6540_v12 = vsel %vm454_vm0, %v413_v53, %v476_v61  ;;  %v6547_v19 = vsel %vm454_vm0, %v476_v61, %v477_v3  ;;  %v412_v21 = vrot.slane %v370_v62, 1  ;;  %v473_v43 = vrot.slane %v370_v62, 7  ;;  %v381_v53 = vld [vmem:[%s6366_s16 + $0xb8] sm:$0xff]  ;;  %v378_v62 = vld [vmem:[%s6366_s16 + $0xa0] sm:$0xff] }
  0x2c   : > { %10726 = vst [vmem:[#allocation23_spill] sm:$0xff] %v6522_v56  ;;  %v6544_v18 = vsel %vm644_vm1, %v685_v58, %v686_v2  ;;  %v680_v20 = vrot.slane %v6540_v12, 1  ;;  %5348 = vrot.lane.b32.xlu0 %v5347_v6, %s6295_s17  ;;  %v6553_v29 = vsel %vm644_vm1, %v686_v2, %v688_v7  ;;  %v6556_v30 = vsel %vm454_vm0, %v477_v3, %v557_v8  ;;  %v386_v56 = vld [vmem:[%s6366_s16 + $0xe0] sm:$0xff] }
  0x2d   : > { %10727 = vst [vmem:[#allocation24_spill] sm:$0xff] %v6525_v57  ;;  %v681_v37 = vrot.slane %v6547_v19, 1  ;;  %v6561_v44 = vpack.i.bf16 %v6553_v29, %v6544_v18  ;;  %v683_v47 = vrot.slane %v6556_v30, 1  ;;  %v474_v48 = vrot.slane %v371_v17, 7 }
  0x2e   : > { %10728 = vst [vmem:[#allocation25_spill] sm:$0xff] %v6530_v0  ;;  %v556_v49 = vrot.slane %v371_v17, 5  ;;  %v6569_v61 = vsel %vm454_vm0, %v412_v21, %v473_v43  ;;  %v417_v2 = vrot.slane %v380_v26, 1  ;;  %v488_v3 = vrot.slane %v380_v26, 7 }
  0x2f   : > { %10729 = vst [vmem:[#allocation26_spill] sm:$0xff] %v6540_v12  ;;  %v6566_v58 = vsel %vm644_vm1, %v680_v20, %v681_v37  ;;  %5383 = vrot.lane.b32.xlu2 %v6561_v44, %s6295_s17  ;;  %v6575_v6 = vsel %vm644_vm1, %v681_v37, %v683_v47  ;;  %v6578_v7 = vsel %vm454_vm0, %v473_v43, %v474_v48  ;;  %v675_v17 = vrot.slane %v6569_v61, 1  ;;  %v379_v37 = vld [vmem:[%s6366_s16 + $0xa8] sm:$0xff] }
  0x30   : > { %10730 = vst [vmem:[#allocation27_spill] sm:$0xff] %v6544_v18  ;;  %v6581_v8 = vsel %vm454_vm0, %v474_v48, %v556_v49  ;;  %v6586_v20 = vpack.i.bf16 %v6575_v6, %v6566_v58  ;;  %v676_v21 = vrot.slane %v6578_v7, 1  ;;  %v489_v50 = vrot.slane %v381_v53, 7  ;;  %v376_v49 = vld [vmem:[%s6366_s16 + $0x90] sm:$0xff] }
  0x31   : > { %10731 = vst [vmem:[#allocation28_spill] sm:$0xff] %v6547_v19  ;;  %v678_v26 = vrot.slane %v6581_v8, 1  ;;  %v561_v47 = vrot.slane %v381_v53, 5  ;;  %v6592_v43 = vsel %vm454_vm0, %v417_v2, %v488_v3  ;;  %v416_v33 = vrot.slane %v378_v62, 1 }
  0x32   : > { %10732 = vst [vmem:[#allocation29_spill] sm:$0xff] %v6553_v29  ;;  %v485_v48 = vrot.slane %v378_v62, 7  ;;  %5378 = vrot.lane.b32.xlu1 %v6586_v20, %s6295_s17  ;;  %v6598_v4 = vsel %vm644_vm1, %v675_v17, %v676_v21  ;;  %v6604_v32 = vsel %vm454_vm0, %v488_v3, %v489_v50  ;;  %v700_v53 = vrot.slane %v6592_v43, 1  ;;  %v382_v29 = vld [vmem:[%s6366_s16 + $0xc0] sm:$0xff] }
  0x33   : > { %10733 = vst [vmem:[#allocation30_spill] sm:$0xff] %v6561_v44  ;;  %v6601_v9 = vsel %vm644_vm1, %v676_v21, %v678_v26  ;;  %v6612_v62 = vsel %vm454_vm0, %v489_v50, %v561_v47  ;;  %v701_v34 = vrot.slane %v6604_v32, 1  ;;  %v486_v17 = vrot.slane %v379_v37, 7  ;;  %v383_v44 = vld [vmem:[%s6366_s16 + $0xc8] sm:$0xff] }
  0x34   : > { %10734 = vst [vmem:[#allocation31_spill] sm:$0xff] %v6566_v58  ;;  %v6609_v2 = vpack.i.bf16 %v6601_v9, %v6598_v4  ;;  %v703_v21 = vrot.slane %v6612_v62, 1  ;;  %v560_v26 = vrot.slane %v379_v37, 5  ;;  %v6618_v3 = vsel %vm454_vm0, %v416_v33, %v485_v48 }
  0x35   : > { %10735 = vst [vmem:[#allocation32_spill] sm:$0xff] %v6569_v61  ;;  %v415_v40 = vrot.slane %v376_v49, 1  ;;  %v6626_v50 = vsel %vm454_vm0, %v485_v48, %v486_v17  ;;  %v695_v47 = vrot.slane %v6618_v3, 1  ;;  %v483_v58 = vrot.slane %v377_v36, 7 }
  0x36   : > { %10736 = vst [vmem:[#allocation33_spill] sm:$0xff] %v6575_v6  ;;  %5373 = vrot.lane.b32.xlu0 %v6609_v2, %s6295_s17  ;;  %v6631_v37 = vsel %vm644_vm1, %v701_v34, %v703_v21  ;;  %v6634_v33 = vsel %vm454_vm0, %v486_v17, %v560_v26  ;;  %v696_v0 = vrot.slane %v6626_v50, 1  ;;  %v559_v6 = vrot.slane %v377_v36, 5 }
  0x37   : > { %10737 = vst [vmem:[#allocation34_spill] sm:$0xff] %v6578_v7  ;;  %v698_v48 = vrot.slane %v6634_v33, 1  ;;  %v420_v26 = vrot.slane %v386_v56, 1  ;;  %v562_v13 = vrot.slane %v383_v44, 5  ;;  %v764_v31 = vrot.slane %v6533_v1, 2 }
  0x38   : > { %10738 = vst [vmem:[#allocation35_spill] sm:$0xff] %v6586_v20  ;;  %v727_v20 = vrot.slane %v6503_v35, 2  ;;  %v756_v1 = vrot.slane %v6540_v12, 2 }
  0x39   : > { %10739 = vst [vmem:[#allocation36_spill] sm:$0xff] %v6598_v4  ;;  %v6623_v4 = vsel %vm644_vm1, %v700_v53, %v701_v34  ;;  %v6647_v34 = vsel %vm644_vm1, %v695_v47, %v696_v0  ;;  %v6657_v36 = vsel %vm644_vm1, %v696_v0, %v698_v48  ;;  %v385_v0 = vld [vmem:[%s6366_s16 + $0xd8] sm:$0xff]  ;;  %v494_v48 = vrot.slane %v384_v28, 7 }
  0x3a   : > { %10740 = vst [vmem:[#allocation37_spill] sm:$0xff] %v6601_v9  ;;  %v482_v9 = vrot.slane %v376_v49, 7  ;;  %v6639_v53 = vpack.i.bf16 %v6631_v37, %v6623_v4  ;;  %v387_v49 = vld [vmem:[%s6366_s16 + $0xe8] sm:$0xff] }
  0x3b   : > { %10741 = vst [vmem:[#allocation38_spill] sm:$0xff] %v6609_v2  ;;  %v498_v59 = vrot.slane %v387_v49, 7  ;;  %v564_v18 = vrot.slane %v387_v49, 5  ;;  %v726_v2 = vrot.slane %v6491_v25, 2 }
  0x3c   : > { %10742 = vst [vmem:[#allocation39_spill] sm:$0xff] %v6618_v3  ;;  %v6643_v27 = vsel %vm454_vm0, %v415_v40, %v482_v9  ;;  %v6650_v17 = vsel %vm454_vm0, %v482_v9, %v483_v58  ;;  %5398 = vrot.lane.b32.xlu2 %v6639_v53, %s6295_s17  ;;  %v6660_v40 = vsel %vm454_vm0, %v483_v58, %v559_v6  ;;  %v5307_v9 = vld [vmem:[%s10408_s1 + $0x88] sm:$0xff] }
  0x3d   : > { %10743 = vst [vmem:[#allocation40_spill] sm:$0xff] %v6623_v4  ;;  %v690_v21 = vrot.slane %v6643_v27, 1  ;;  %v691_v47 = vrot.slane %v6650_v17, 1  ;;  %v497_v4 = vrot.slane %v386_v56, 7  ;;  %v693_v54 = vrot.slane %v6660_v40, 1  ;;  %4035 = vmatpush.bf16.msra.mxu2 %v5307_v9 }
  0x3e   : > { %10744 = vst [vmem:[#allocation41_spill] sm:$0xff] %v6626_v50  ;;  %v419_v56 = vrot.slane %v384_v28, 1 }
  0x3f   : > { %10745 = vst [vmem:[#allocation42_spill] sm:$0xff] %v6631_v37  ;;  %v6668_v37 = vpack.i.bf16 %v6657_v36, %v6647_v34  ;;  %v6673_v58 = vsel %vm644_vm1, %v690_v21, %v691_v47  ;;  %v6676_v6 = vsel %vm454_vm0, %v420_v26, %v497_v4  ;;  %v6685_v49 = vsel %vm454_vm0, %v497_v4, %v498_v59 }
  0x40   : > { %10746 = vst [vmem:[#allocation43_spill] sm:$0xff] %v6639_v53  ;;  %v715_v21 = vrot.slane %v6676_v6, 1  ;;  %v716_v28 = vrot.slane %v6685_v49, 1  ;;  %v495_v53 = vrot.slane %v385_v0, 7  ;;  %v418_v4 = vrot.slane %v382_v29, 1 }
  0x41   : > { %10747 = vst [vmem:[#allocation44_spill] sm:$0xff] %v6643_v27  ;;  %5393 = vrot.lane.b32.xlu1 %v6668_v37, %s6295_s17 }
  0x42   : > { %10748 = vst [vmem:[#allocation45_spill] sm:$0xff] %v6647_v34  ;;  %v6688_v34 = vsel %vm454_vm0, %v498_v59, %v564_v18  ;;  %v6704_v59 = vsel %vm644_vm1, %v715_v21, %v716_v28 }
  0x43   : > { %10749 = vst [vmem:[#allocation46_spill] sm:$0xff] %v6650_v17  ;;  %v718_v9 = vrot.slane %v6688_v34, 1 }
  0x44   : > { %10750 = vst [vmem:[#allocation47_spill] sm:$0xff] %v6657_v36  ;;  %v6682_v36 = vsel %vm644_vm1, %v691_v47, %v693_v54  ;;  %v563_v54 = vrot.slane %v385_v0, 5  ;;  %v6699_v47 = vsel %vm454_vm0, %v419_v56, %v494_v48 }
  0x45   : > { %10751 = vst [vmem:[#allocation48_spill] sm:$0xff] %v6668_v37  ;;  %v6693_v26 = vpack.i.bf16 %v6682_v36, %v6673_v58  ;;  %v491_v37 = vrot.slane %v382_v29, 7  ;;  %v6707_v18 = vsel %vm644_vm1, %v716_v28, %v718_v9 }
  0x46   : > { %10752 = vst [vmem:[#allocation49_spill] sm:$0xff] %v6673_v58  ;;  %v6710_v58 = vsel %vm454_vm0, %v494_v48, %v495_v53  ;;  %v6715_v0 = vpack.i.bf16 %v6707_v18, %v6704_v59  ;;  %v6718_v29 = vsel %vm454_vm0, %v495_v53, %v563_v54  ;;  %v5306_v48 = vld [vmem:[%s10408_s1 + $0x80] sm:$0xff] }
  0x47   : > { %10753 = vst [vmem:[#allocation50_spill] sm:$0xff] %v6676_v6  ;;  %5388 = vrot.lane.b32.xlu0 %v6693_v26, %s6295_s17  ;;  %v711_v56 = vrot.slane %v6710_v58, 1  ;;  %v713_v21 = vrot.slane %v6718_v29, 1  ;;  %v6723_v28 = vsel %vm454_vm0, %v418_v4, %v491_v37  ;;  %4036 = vmatpush.bf16.msra.mxu2 %v5306_v48  ;;  %v729_v48 = vrot.slane %v6511_v42, 2 }
  0x48   : > { %10754 = vst [vmem:[#allocation51_spill] sm:$0xff] %v6682_v36  ;;  %v710_v36 = vrot.slane %v6699_v47, 1  ;;  %5413 = vrot.lane.b32.xlu2 %v6715_v0, %s6295_s17  ;;  %v705_v54 = vrot.slane %v6723_v28, 1 }
  0x49   : > { %10755 = vst [vmem:[#allocation52_spill] sm:$0xff] %v6685_v49  ;;  %v6739_v4 = vsel %vm644_vm1, %v711_v56, %v713_v21  ;;  %v730_v42 = vsel %vm720_vm2, %v727_v20, %v729_v48 }
  0x4a   : > { %10756 = vst [vmem:[#allocation53_spill] sm:$0xff] %v6693_v26  ;;  %v492_v26 = vrot.slane %v383_v44, 7  ;;  %v6731_v53 = vsel %vm644_vm1, %v710_v36, %v711_v56  ;;  %v731_v44 = vrot.slane %v6390_v23, 2 }
  0x4b   : > { %10757 = vst [vmem:[#allocation54_spill] sm:$0xff] %v6699_v47  ;;  %v6748_v36 = vpack.i.bf16 %v6739_v4, %v6731_v53 }
  0x4c   : > { %10758 = vst [vmem:[#allocation55_spill] sm:$0xff] %v6704_v59  ;;  %v6734_v9 = vsel %vm454_vm0, %v491_v37, %v492_v26  ;;  %v6742_v59 = vsel %vm454_vm0, %v492_v26, %v562_v13  ;;  %v10768_v26 = vrot.slane %v6393_v24, 2 }
  0x4d   : > { %10759 = vst [vmem:[#allocation56_spill] sm:$0xff] %v6707_v18  ;;  %v706_v18 = vrot.slane %v6734_v9, 1  ;;  %v708_v37 = vrot.slane %v6742_v59, 1  ;;  %5408 = vrot.lane.b32.xlu1 %v6748_v36, %s6295_s17 }
  0x4e   : > { %10760 = vst [vmem:[#allocation57_spill] sm:$0xff] %v6710_v58 }
  0x4f   : > { %10761 = vst [vmem:[#allocation58_spill] sm:$0xff] %v6715_v0  ;;  %v732_v0 = vrot.slane %v6387_v22, 2  ;;  %v6754_v56 = vsel %vm644_vm1, %v705_v54, %v706_v18 }
  0x50   : > { %10762 = vst [vmem:[#allocation59_spill] sm:$0xff] %v6723_v28 }
  0x51   : > { %10763 = vst [vmem:[#allocation60_spill] sm:$0xff] %v6731_v53  ;;  %v6757_v13 = vsel %vm720_vm2, %v731_v44, %v732_v0  ;;  %v6762_v21 = vsel %vm720_vm2, %v732_v0, %v10768_v26  ;;  %v6768_v53 = vsel %vm644_vm1, %v706_v18, %v708_v37  ;;  %v728_v44 = vsel %vm720_vm2, %v726_v2, %v727_v20 }
  0x52   : > { %10764 = vst [vmem:[#allocation61_spill] sm:$0xff] %v6734_v9  ;;  %v6772_v54 = vpack.i.bf16 %v6762_v21, %v6757_v13  ;;  %v6778_v24 = vpack.i.bf16 %v6768_v53, %v6754_v56  ;;  %v722_v0 = vrot.slane %v6423_v41, 2  ;;  %v746_v26 = vrot.slane %v6438_v52, 2 }
  0x53   : > { %10765 = vst [vmem:[#allocation62_spill] sm:$0xff] %v6739_v4  ;;  %v721_v4 = vrot.slane %v6415_v38, 2  ;;  %v747_v18 = vrot.slane %v6447_v55, 2  ;;  %v749_v37 = vrot.slane %v6455_v60, 2  ;;  %v6787_v2 = vpack.i.bf16 %v730_v42, %v728_v44 }
  0x54   : > { %10766 = vst [vmem:[#allocation63_spill] sm:$0xff] %v6748_v36  ;;  %5403 = vrot.lane.b32.xlu0 %v6778_v24, %s6295_s17  ;;  %5428 = vrot.lane.b32.xlu2 %v6772_v54, %s6296_s22  ;;  %v10773_v20 = vrot.slane %v6432_v46, 2  ;;  %v742_v36 = vrot.slane %v6374_v14, 2  ;;  %v744_v60 = vrot.slane %v6380_v16, 2  ;;  %v737_v46 = vrot.slane %v6477_v10, 2 }
  0x55   : > { %10767 = vst [vmem:[#allocation64_spill] sm:$0xff] %v6754_v56  ;;  %v723_v56 = vsel %vm720_vm2, %v721_v4, %v722_v0  ;;  %v6802_v44 = vsel %vm720_vm2, %v747_v18, %v749_v37  ;;  %v736_v4 = vrot.slane %v6468_v5, 2  ;;  %5423 = vrot.lane.b32.xlu1 %v6787_v2, %s6296_s22  ;;  %v761_v37 = vrot.slane %v6517_v51, 2 }
  0x56   : > { %10769 = vst [vmem:[#allocation65_spill] sm:$0xff] %v6768_v53  ;;  %v725_v48 = vsel %vm720_vm2, %v722_v0, %v10773_v20  ;;  %v741_v53 = vrot.slane %v6377_v15, 2  ;;  %v739_v0 = vrot.slane %v6480_v11, 2  ;;  %v762_v20 = vrot.slane %v6525_v57, 2 }
  0x57   : > { %10770 = vst [vmem:[#allocation66_spill] sm:$0xff] %v6772_v54  ;;  %v6804_v42 = vpack.i.bf16 %v725_v48, %v723_v56  ;;  %v1614_v11 = vpack.c.bf16 %v723_v56, %v723_v56  ;;  %v6827_v39 = vsel %vm720_vm2, %v736_v4, %v737_v46  ;;  %v757_v56 = vrot.slane %v6547_v19, 2 }
  0x58   : > { %10771 = vst [vmem:[#allocation67_spill] sm:$0xff] %v6778_v24  ;;  %v6799_v24 = vsel %vm720_vm2, %v746_v26, %v747_v18  ;;  %v6816_v26 = vsel %vm720_vm2, %v741_v53, %v742_v36  ;;  %v6819_v18 = vsel %vm720_vm2, %v742_v36, %v744_v60  ;;  %v6830_v45 = vsel %vm720_vm2, %v737_v46, %v739_v0 }
  0x59   : > { %10772 = vst [vmem:[#allocation68_spill] sm:$0xff] %v6787_v2  ;;  %v6813_v16 = vpack.i.bf16 %v6802_v44, %v6799_v24  ;;  %v1616_v53 = vpack.c.bf16 %v725_v48, %v725_v48  ;;  %v6836_v36 = vpack.i.bf16 %v6819_v18, %v6816_v26  ;;  %v3051_v60 = vunpack.c.l.b16 %v1614_v11 }
  0x5a   : > { %v6841_v63 = vsel %vm720_vm2, %v761_v37, %v762_v20  ;;  %v6844_v4 = vsel %vm720_vm2, %v762_v20, %v764_v31  ;;  %v759_v48 = vrot.slane %v6556_v30, 2  ;;  %v6849_v0 = vpack.i.bf16 %v6830_v45, %v6827_v39 }
  0x5b   : > { %10774 = vst [vmem:[#allocation69_spill] sm:$0xff] %v6813_v16  ;;  %v3054_v46 = vunpack.c.l.b16 %v1616_v53  ;;  %v752_v54 = vrot.slane %v6578_v7, 2  ;;  %v754_v11 = vrot.slane %v6581_v8, 2  ;;  %v6858_v31 = vpack.i.bf16 %v6844_v4, %v6841_v63 }
  0x5c   : > { %5418 = vrot.lane.b32.xlu0 %v6804_v42, %s6296_s22  ;;  %5443 = vrot.lane.b32.xlu2 %v6813_v16, %s6296_s22  ;;  %10775 = vst [vmem:[#allocation70_spill] sm:$0xff] %v6841_v63  ;;  %v751_v16 = vrot.slane %v6569_v61, 2  ;;  %v6861_v30 = vsel %vm720_vm2, %v756_v1, %v757_v56  ;;  %v6864_v37 = vsel %vm720_vm2, %v757_v56, %v759_v48  ;;  %v776_v20 = vrot.slane %v6592_v43, 2 }
  0x5d   : > { %10776 = vst [vmem:[#allocation71_spill] sm:$0xff] %v6844_v4  ;;  %v3145_v2 = vpack.c.b16 %v3054_v46, %v3051_v60  ;;  %5438 = vrot.lane.b32.xlu1 %v6836_v36, %s6296_s22  ;;  %v777_v8 = vrot.slane %v6604_v32, 2  ;;  %v779_v53 = vrot.slane %v6612_v62, 2  ;;  %v6876_v1 = vsel %vm720_vm2, %v752_v54, %v754_v11 }
  0x5e   : > { %10777 = vst [vmem:[#allocation72_spill] sm:$0xff] %v6858_v31  ;;  %v6873_v60 = vsel %vm720_vm2, %v751_v16, %v752_v54  ;;  %v771_v56 = vrot.slane %v6618_v3, 2  ;;  %v772_v48 = vrot.slane %v6626_v50, 2  ;;  %v774_v62 = vrot.slane %v6634_v33, 2 }
  0x5f   : > { %10778 = vst [vmem:[#allocation73_spill] sm:$0xff] %v6861_v30  ;;  %5186 = vmatmul.msk.bf16.vlgmr.msra.gmra.mxu2 %vm1422_vm3, %v3145_v2  ;;  %v6884_v2 = vpack.i.bf16 %v6864_v37, %v6861_v30  ;;  %v6888_v46 = vsel %vm720_vm2, %v776_v20, %v777_v8  ;;  %v6891_v16 = vsel %vm720_vm2, %v777_v8, %v779_v53  ;;  %v766_v11 = vrot.slane %v6643_v27, 2 }
  0x60   : > { %10779 = vst [vmem:[#allocation74_spill] sm:$0xff] %v6864_v37  ;;  %v6895_v54 = vpack.i.bf16 %v6876_v1, %v6873_v60  ;;  %v6899_v4 = vsel %vm720_vm2, %v771_v56, %v772_v48  ;;  %v767_v63 = vrot.slane %v6650_v17, 2  ;;  %v1618_v33 = vpack.c.bf16 %v6757_v13, %v6757_v13 }
  0x61   : > { %10780 = vst [vmem:[#allocation75_spill] sm:$0xff] %v6884_v2  ;;  %v1620_v20 = vpack.c.bf16 %v6762_v21, %v6762_v21  ;;  %v6910_v8 = vpack.i.bf16 %v6891_v16, %v6888_v46  ;;  %v6913_v53 = vsel %vm720_vm2, %v772_v48, %v774_v62  ;;  %v769_v56 = vrot.slane %v6660_v40, 2 }
  0x62   : > { %10781 = vst [vmem:[#allocation76_spill] sm:$0xff] %v6888_v46  ;;  %v792_v37 = vrot.slane %v6685_v49, 2  ;;  %v794_v13 = vrot.slane %v6688_v34, 2  ;;  %v3057_v30 = vunpack.c.l.b16 %v1618_v33  ;;  %v6928_v40 = vpack.i.bf16 %v6913_v53, %v6899_v4 }
  0x63   : > { %10782 = vst [vmem:[#allocation77_spill] sm:$0xff] %v6891_v16  ;;  %v3060_v21 = vunpack.c.l.b16 %v1620_v20  ;;  %v6931_v48 = vsel %vm720_vm2, %v767_v63, %v769_v56  ;;  %v786_v34 = vrot.slane %v6699_v47, 2  ;;  %v787_v62 = vrot.slane %v6710_v58, 2 }
  0x64   : > { %5433 = vrot.lane.b32.xlu0 %v6849_v0, %s6296_s22  ;;  %5458 = vrot.lane.b32.xlu2 %v6858_v31, %s6296_s22  ;;  %v791_v31 = vrot.slane %v6676_v6, 2  ;;  %v789_v20 = vrot.slane %v6718_v29, 2  ;;  %v782_v56 = vrot.slane %v6734_v9, 2 }
  0x65   : > { %5453 = vrot.lane.b32.xlu1 %v6884_v2, %s6296_s22  ;;  %v6922_v2 = vsel %vm720_vm2, %v766_v11, %v767_v63  ;;  %v6939_v11 = vsel %vm720_vm2, %v792_v37, %v794_v13  ;;  %v3148_v16 = vpack.c.b16 %v3060_v21, %v3057_v30  ;;  %v6956_v29 = vsel %vm720_vm2, %v786_v34, %v787_v62 }
  0x66   : > { %v6936_v33 = vsel %vm720_vm2, %v791_v31, %v792_v37  ;;  %v6944_v46 = vpack.i.bf16 %v6931_v48, %v6922_v2  ;;  %v781_v31 = vrot.slane %v6723_v28, 2  ;;  %v784_v37 = vrot.slane %v6742_v59, 2 }
  0x67   : > { %v6950_v63 = vpack.i.bf16 %v6939_v11, %v6936_v33  ;;  %v6959_v30 = vsel %vm720_vm2, %v787_v62, %v789_v20  ;;  %v1622_v34 = vpack.c.bf16 %v6827_v39, %v6827_v39  ;;  %v6988_v20 = vpack.i.bf16 %v6387_v22, %v6390_v23 }
  0x68   : > { %v6968_v13 = vpack.i.bf16 %v6959_v30, %v6956_v29  ;;  %v6971_v59 = vsel %vm720_vm2, %v781_v31, %v782_v56  ;;  %v6974_v21 = vsel %vm720_vm2, %v782_v56, %v784_v37  ;;  %v5492_v37 = vpack.i.bf16 %v6503_v35, %v6491_v25 }
  0x69   : > { %10783 = vst [vmem:[#allocation78_spill] sm:$0xff] %v6974_v21  ;;  %v6982_v62 = vpack.i.bf16 %v6974_v21, %v6971_v59  ;;  %v3063_v31 = vunpack.c.l.b16 %v1622_v34  ;;  %v7006_v34 = vpack.i.bf16 %v6447_v55, %v6438_v52  ;;  %v7022_v25 = vpack.i.bf16 %v6477_v10, %v6468_v5 }
  0x6a   : > { %v7042_v35 = vpack.i.bf16 %v6578_v7, %v6569_v61 }
  0x6c   : > { %5448 = vrot.lane.b32.xlu0 %v6895_v54, %s6296_s22  ;;  %5473 = vrot.lane.b32.xlu2 %v6910_v8, %s6296_s22 }
  0x6d   : > { %5468 = vrot.lane.b32.xlu1 %v6928_v40, %s6296_s22 }
  0x6f   : > { %5187 = vmatmul.msk.bf16.gmra.mxu2 %vm1422_vm3, %v3148_v16  ;;  %v1624_v16 = vpack.c.bf16 %v6830_v45, %v6830_v45  ;;  %v6996_v45 = vpack.i.bf16 %v6423_v41, %v6415_v38 }
  0x71   : > { %v3066_v56 = vunpack.c.l.b16 %v1624_v16  ;;  %v7014_v16 = vpack.i.bf16 %v6374_v14, %v6377_v15 }
  0x73   : > { %v3151_v39 = vpack.c.b16 %v3066_v56, %v3063_v31  ;;  %v1626_v31 = vpack.c.bf16 %v6816_v26, %v6816_v26  ;;  %v1628_v56 = vpack.c.bf16 %v6819_v18, %v6819_v18  ;;  %v7038_v26 = vpack.i.bf16 %v6547_v19, %v6540_v12 }
  0x74   : > { %5463 = vrot.lane.b32.xlu0 %v6944_v46, %s6296_s22  ;;  %5488 = vrot.lane.b32.xlu2 %v6950_v63, %s6296_s22 }
  0x75   : > { %5483 = vrot.lane.b32.xlu1 %v6968_v13, %s6296_s22  ;;  %v3069_v15 = vunpack.c.l.b16 %v1626_v31  ;;  %v3072_v14 = vunpack.c.l.b16 %v1628_v56  ;;  %v7048_v31 = vpack.i.bf16 %v6604_v32, %v6592_v43 }
  0x76   : > { %v7000_v21 = vpop.permute.xlu2 %5363 }
  0x77   : > { %10784 = vst [vmem:[#allocation79_spill] sm:$0xff] %v7000_v21  ;;  %v3154_v18 = vpack.c.b16 %v3072_v14, %v3069_v15  ;;  %v7059_v14 = vpack.i.bf16 %v6626_v50, %v6618_v3  ;;  %v1630_v15 = vpack.c.bf16 %v6799_v24, %v6799_v24  ;;  %v1634_v24 = vpack.c.bf16 %v6873_v60, %v6873_v60 }
  0x78   : > { %v7097_v60 = vpack.i.bf16 %v6734_v9, %v6723_v28  ;;  %v10793_v28 = vld [vmem:[#allocation74_spill] sm:$0xff] }
  0x79   : > { %v3075_v3 = vunpack.c.l.b16 %v1630_v15  ;;  %v1640_v9 = vpack.c.bf16 %v10793_v28, %v10793_v28 }
  0x7c   : > { %5478 = vrot.lane.b32.xlu0 %v6982_v62, %s6296_s22  ;;  %5503 = vrot.lane.b32.xlu2 %v6988_v20, %s6297_s23 }
  0x7d   : > { %5498 = vrot.lane.b32.xlu1 %v6996_v45, %s6297_s23 }
  0x7f   : > { %5188 = vmatmul.msk.bf16.gmra.mxu2 %vm1422_vm3, %v3151_v39  ;;  %v7028_v39 = vpack.i.bf16 %v6525_v57, %v6517_v51  ;;  %v7067_v51 = vpack.i.bf16 %v6650_v17, %v6643_v27  ;;  %v7073_v57 = vpack.i.bf16 %v6685_v49, %v6676_v6  ;;  %v7087_v6 = vpack.i.bf16 %v6710_v58, %v6699_v47  ;;  %v389_v49 = vld [vmem:[%s6366_s16 + $0xf8] sm:$0xff] }
  0x80   : > { %v3081_v17 = vunpack.c.l.b16 %v1634_v24  ;;  %v501_v47 = vrot.slane %v389_v49, 7 }
  0x84   : > { %5493 = vrot.lane.b32.xlu0 %v5492_v37, %s6297_s23  ;;  %5518 = vrot.lane.b32.xlu2 %v7006_v34, %s6297_s23  ;;  %v7030_v37 = vpop.permute.xlu2 %5368 }
  0x85   : > { %5513 = vrot.lane.b32.xlu1 %v7014_v16, %s6297_s23 }
  0x8c   : > { %5508 = vrot.lane.b32.xlu0 %v7022_v25, %s6297_s23  ;;  %5533 = vrot.lane.b32.xlu2 %v7028_v39, %s6297_s23  ;;  %v7053_v56 = vpop.permute.xlu2 %5383 }
  0x8d   : > { %5528 = vrot.lane.b32.xlu1 %v7038_v26, %s6297_s23  ;;  %10785 = vst [vmem:[#allocation80_spill] sm:$0xff] %v7053_v56 }
  0x8f   : > { %5189 = vmatmul.msk.bf16.gmra.mxu2 %vm1422_vm3, %v3154_v18  ;;  %v1632_v18 = vpack.c.bf16 %v6802_v44, %v6802_v44  ;;  %v1636_v44 = vpack.c.bf16 %v6876_v1, %v6876_v1 }
  0x90   : > { %v7075_v12 = vpop.permute.xlu1 %5353 }
  0x91   : > { %v3078_v50 = vunpack.c.l.b16 %v1632_v18  ;;  %v388_v18 = vld [vmem:[%s6366_s16 + $0xf0] sm:$0xff]  ;;  %v3084_v19 = vunpack.c.l.b16 %v1636_v44 }
  0x92   : > { %v421_v61 = vrot.slane %v388_v18, 1  ;;  %v500_v7 = vrot.slane %v388_v18, 7  ;;  %v10790_v18 = vld [vmem:[#allocation66_spill] sm:$0xff] }
  0x93   : > { %v3157_v27 = vpack.c.b16 %v3078_v50, %v3075_v3  ;;  %v3160_v1 = vpack.c.b16 %v3084_v19, %v3081_v17 }
  0x94   : > { %5523 = vrot.lane.b32.xlu0 %v7042_v35, %s6297_s23  ;;  %5548 = vrot.lane.b32.xlu2 %v7048_v31, %s6297_s23  ;;  %v7093_v56 = vpop.permute.xlu0 %5343  ;;  %v7107_v3 = vsel %vm454_vm0, %v500_v7, %v501_v47  ;;  %v7110_v50 = vsel %vm454_vm0, %v421_v61, %v500_v7 }
  0x95   : > { %5543 = vrot.lane.b32.xlu1 %v7059_v14, %s6297_s23  ;;  %v7118_v24 = vpack.i.bf16 %v7107_v3, %v7110_v50 }
  0x96   : > { %v7089_v15 = vpop.permute.xlu2 %5398 }
  0x9a   : > { %v7112_v19 = vpop.permute.xlu1 %5358 }
  0x9c   : > { %5538 = vrot.lane.b32.xlu0 %v7067_v51, %s6297_s23  ;;  %5563 = vrot.lane.b32.xlu2 %v7073_v57, %s6297_s23 }
  0x9d   : > { %5558 = vrot.lane.b32.xlu1 %v7087_v6, %s6297_s23 }
  0x9e   : > { %v7122_v44 = vpop.permute.xlu0 %5348 }
  0x9f   : > { %5190 = vmatmul.msk.bf16.gmra.mxu2 %vm1422_vm3, %v3157_v27  ;;  %v10787_v27 = vld [vmem:[#allocation68_spill] sm:$0xff] }
  0xa2   : > { %v7114_v17 = vpop.permute.xlu2 %5413 }
  0xa3   : > { %10786 = vst [vmem:[#allocation81_spill] sm:$0xff] %v7114_v17  ;;  %v10792_v17 = vld [vmem:[#allocation73_spill] sm:$0xff] }
  0xa4   : > { %5553 = vrot.lane.b32.xlu0 %v7097_v60, %s6297_s23  ;;  %5578 = vrot.lane.b32.xlu2 %v6804_v42, %s6295_s17  ;;  %v7130_v7 = vpop.permute.xlu1 %5378 }
  0xa5   : > { %5573 = vrot.lane.b32.xlu1 %v10787_v27, %s6295_s17  ;;  %10788 = vst [vmem:[#allocation68_spill] sm:$0xff] %v7130_v7  ;;  %v10791_v27 = vld [vmem:[#allocation75_spill] sm:$0xff] }
  0xa8   : > { %v7134_v42 = vpop.permute.xlu0 %5373 }
  0xa9   : > { %10789 = vst [vmem:[#allocation82_spill] sm:$0xff] %v7134_v42  ;;  %v3090_v42 = vunpack.c.l.b16 %v1640_v9 }
  0xac   : > { %5568 = vrot.lane.b32.xlu0 %v7118_v24, %s6297_s23  ;;  %5593 = vrot.lane.b32.xlu2 %v6836_v36, %s6295_s17  ;;  %v1638_v36 = vpack.c.bf16 %v10792_v17, %v10792_v17 }
  0xad   : > { %5588 = vrot.lane.b32.xlu1 %v6849_v0, %s6295_s17 }
  0xae   : > { %v7128_v61 = vpop.permute.xlu2 %5428 }
  0xaf   : > { %5191 = vmatmul.msk.bf16.gmra.mxu2 %vm1422_vm3, %v3160_v1  ;;  %v3087_v1 = vunpack.c.l.b16 %v1638_v36  ;;  %v10799_v36 = vld [vmem:[#allocation72_spill] sm:$0xff] }
  0xb1   : > { %v3163_v17 = vpack.c.b16 %v3090_v42, %v3087_v1  ;;  %v836_v42 = vrot.slane %v7107_v3, 2  ;;  %v10800_v1 = vld [vmem:[#allocation70_spill] sm:$0xff] }
  0xb3   : > { %v7149_v0 = vpop.permute.xlu1 %5393 }
  0xb4   : > { %5583 = vrot.lane.b32.xlu0 %v10790_v18, %s6295_s17  ;;  %5608 = vrot.lane.b32.xlu2 %v10791_v27, %s6295_s17  ;;  %10795 = vst [vmem:[#allocation75_spill] sm:$0xff] %v7149_v0  ;;  %v10796_v18 = vld [vmem:[#allocation69_spill] sm:$0xff]  ;;  %v565_v27 = vrot.slane %v389_v49, 5  ;;  %v835_v49 = vrot.slane %v7110_v50, 2 }
  0xb5   : > { %5603 = vrot.lane.b32.xlu1 %v6895_v54, %s6295_s17 }
  0xb6   : > { %v7145_v7 = vpop.permute.xlu2 %5443  ;;  %v7165_v9 = vsel %vm454_vm0, %v501_v47, %v565_v27 }
  0xb7   : > { %10794 = vst [vmem:[#allocation66_spill] sm:$0xff] %v7145_v7  ;;  %v5095_v7 = vld [vmem:[%s6366_s16 + $0x168] sm:$0xff] }
  0xb9   : > { %v7153_v58 = vpop.permute.xlu0 %5388 }
  0xba   : > { %10797 = vst [vmem:[#allocation73_spill] sm:$0xff] %v7153_v58 }
  0xbc   : > { %5598 = vrot.lane.b32.xlu0 %v10796_v18, %s6295_s17  ;;  %5623 = vrot.lane.b32.xlu2 %v6928_v40, %s6295_s17  ;;  %v1642_v18 = vpack.c.bf16 %v10800_v1, %v10800_v1 }
  0xbd   : > { %5618 = vrot.lane.b32.xlu1 %v6944_v46, %s6295_s17  ;;  %v838_v46 = vrot.slane %v7165_v9, 2 }
  0xbe   : > { %v7157_v28 = vpop.permute.xlu2 %5458  ;;  %v3093_v0 = vunpack.c.l.b16 %v1642_v18 }
  0xbf   : > { %10798 = vst [vmem:[#allocation74_spill] sm:$0xff] %v7157_v28  ;;  %5192 = vmatmul.msk.bf16.gmra.mxu2 %vm1422_vm3, %v3163_v17  ;;  %v7162_v54 = vpop.permute.xlu1 %5408  ;;  %v10801_v17 = vld [vmem:[#allocation71_spill] sm:$0xff] }
  0xc0   : > { %v1644_v47 = vpack.c.bf16 %v10801_v17, %v10801_v17 }
  0xc2   : > { %v3096_v58 = vunpack.c.l.b16 %v1644_v47 }
  0xc4   : > { %5613 = vrot.lane.b32.xlu0 %v10799_v36, %s6295_s17  ;;  %5638 = vrot.lane.b32.xlu2 %v6968_v13, %s6295_s17  ;;  %v7185_v13 = vsel %vm720_vm2, %v835_v49, %v836_v42  ;;  %v7188_v36 = vsel %vm720_vm2, %v836_v42, %v838_v46  ;;  %v3166_v49 = vpack.c.b16 %v3096_v58, %v3093_v0 }
  0xc5   : > { %5633 = vrot.lane.b32.xlu1 %v6982_v62, %s6295_s17  ;;  %v5647_v1 = vpack.i.bf16 %v7188_v36, %v7185_v13  ;;  %v1648_v58 = vpack.c.bf16 %v6931_v48, %v6931_v48 }
  0xc6   : > { %v7172_v40 = vpop.permute.xlu0 %5403  ;;  %v7180_v27 = vpop.permute.xlu2 %5473 }
  0xc7   : > { %v7190_v28 = vpop.permute.xlu1 %5423  ;;  %v3102_v18 = vunpack.c.l.b16 %v1648_v58 }
  0xcc   : > { %5628 = vrot.lane.b32.xlu0 %v6910_v8, %s6295_s17  ;;  %5653 = vrot.lane.b32.xlu2 %v6996_v45, %s6296_s22  ;;  %v1646_v45 = vpack.c.bf16 %v6922_v2, %v6922_v2 }
  0xcd   : > { %5648 = vrot.lane.b32.xlu1 %v5647_v1, %s6295_s17 }
  0xce   : > { %v7198_v62 = vpop.permute.xlu0 %5418  ;;  %v7200_v17 = vpop.permute.xlu2 %5488  ;;  %v3099_v46 = vunpack.c.l.b16 %v1646_v45 }
  0xcf   : > { %10802 = vst [vmem:[#allocation69_spill] sm:$0xff] %v7200_v17  ;;  %5193 = vmatmul.msk.bf16.gmra.mxu2 %vm1422_vm3, %v3166_v49  ;;  %v7204_v42 = vpop.permute.xlu1 %5438  ;;  %v10811_v49 = vld [vmem:[#allocation13_spill] sm:$0xff] }
  0xd0   : > { %10803 = vst [vmem:[#allocation72_spill] sm:$0xff] %v7204_v42  ;;  %v3169_v2 = vpack.c.b16 %v3102_v18, %v3099_v46  ;;  %v10814_v18 = vld [vmem:[#allocation10_spill] sm:$0xff] }
  0xd4   : > { %5643 = vrot.lane.b32.xlu0 %v6950_v63, %s6295_s17  ;;  %5668 = vrot.lane.b32.xlu2 %v7014_v16, %s6296_s22 }
  0xd5   : > { %5663 = vrot.lane.b32.xlu1 %v7022_v25, %s6296_s22 }
  0xd6   : > { %v7210_v8 = vpop.permute.xlu0 %5433  ;;  %v7216_v0 = vpop.permute.xlu2 %5503 }
  0xd7   : > { %v7220_v47 = vpop.permute.xlu1 %5453 }
  0xd8   : > { %10804 = vst [vmem:[#allocation70_spill] sm:$0xff] %v7220_v47 }
  0xdc   : > { %5658 = vrot.lane.b32.xlu0 %v6988_v20, %s6296_s22  ;;  %5683 = vrot.lane.b32.xlu2 %v7038_v26, %s6296_s22  ;;  %v1650_v26 = vpack.c.bf16 %v6899_v4, %v6899_v4 }
  0xdd   : > { %5678 = vrot.lane.b32.xlu1 %v7042_v35, %s6296_s22  ;;  %v1652_v35 = vpack.c.bf16 %v6913_v53, %v6913_v53 }
  0xde   : > { %v7226_v63 = vpop.permute.xlu0 %5448  ;;  %v7228_v16 = vpop.permute.xlu2 %5518  ;;  %v3105_v45 = vunpack.c.l.b16 %v1650_v26  ;;  %v10816_v26 = vld [vmem:[#allocation76_spill] sm:$0xff] }
  0xdf   : > { %10805 = vst [vmem:[#allocation71_spill] sm:$0xff] %v7226_v63  ;;  %5194 = vmatmul.msk.bf16.gmra.mxu2 %vm1422_vm3, %v3169_v2  ;;  %v7233_v25 = vpop.permute.xlu1 %5468  ;;  %v5087_v63 = vld [vmem:[%s6366_s16 + $0x128] sm:$0xff] }
  0xe0   : > { %10806 = vst [vmem:[#allocation83_spill] sm:$0xff] %v7228_v16  ;;  %v5082_v16 = vld [vmem:[%s6366_s16 + $0x100] sm:$0xff] }
  0xe1   : > { %10807 = vst [vmem:[#allocation84_spill] sm:$0xff] %v7233_v25 }
  0xe2   : > { %v7239_v48 = vpop.f32.mrf.mxu2 }
  0xe3   : > { %10808 = vst [vmem:[#allocation85_spill] sm:$0xff] %v7239_v48  ;;  %v5084_v48 = vld [vmem:[%s6366_s16 + $0x110] sm:$0xff] }
  0xe4   : > { %5673 = vrot.lane.b32.xlu0 %v7006_v34, %s6296_s22  ;;  %5698 = vrot.lane.b32.xlu2 %v7067_v51, %s6296_s22  ;;  %v3108_v34 = vunpack.c.l.b16 %v1652_v35  ;;  %v1654_v35 = vpack.c.bf16 %v10816_v26, %v10816_v26 }
  0xe5   : > { %5693 = vrot.lane.b32.xlu1 %v10811_v49, %s6297_s23  ;;  %v10817_v49 = vld [vmem:[#allocation77_spill] sm:$0xff] }
  0xe6   : > { %v7241_v20 = vpop.permute.xlu0 %5463  ;;  %v7247_v1 = vpop.permute.xlu2 %5533  ;;  %v3172_v53 = vpack.c.b16 %v3108_v34, %v3105_v45  ;;  %v1656_v45 = vpack.c.bf16 %v10817_v49, %v10817_v49  ;;  %v1666_v49 = vpack.c.bf16 %v6936_v33, %v6936_v33  ;;  %v5356_v33 = vunpack.i.h.bf16 %v7075_v12 }
  0xe7   : > { %10809 = vst [vmem:[#allocation86_spill] sm:$0xff] %v7241_v20  ;;  %v7251_v58 = vpop.permute.xlu1 %5483  ;;  %v5088_v20 = vld [vmem:[%s6366_s16 + $0x130] sm:$0xff] }
  0xe8   : > { %10810 = vst [vmem:[#allocation87_spill] sm:$0xff] %v7247_v1 }
  0xea   : > { %v7257_v51 = vpop.f32.mrf.mxu2 }
  0xeb   : > { %10812 = vst [vmem:[#allocation13_spill] sm:$0xff] %v7257_v51 }
  0xec   : > { %5688 = vrot.lane.b32.xlu0 %v7028_v39, %s6296_s22  ;;  %5713 = vrot.lane.b32.xlu2 %v7048_v31, %s6296_s22 }
  0xed   : > { %5708 = vrot.lane.b32.xlu1 %v10814_v18, %s6297_s23  ;;  %v3111_v18 = vunpack.c.l.b16 %v1654_v35  ;;  %v1664_v35 = vpack.c.bf16 %v6959_v30, %v6959_v30  ;;  %v5355_v30 = vunpack.i.l.bf16 %v7075_v12 }
  0xee   : > { %v7259_v4 = vpop.permute.xlu0 %5478  ;;  %v7261_v46 = vpop.permute.xlu2 %5548 }
  0xef   : > { %10813 = vst [vmem:[#allocation88_spill] sm:$0xff] %v7261_v46  ;;  %5195 = vmatmul.msk.bf16.gmra.mxu2 %vm1422_vm3, %v3172_v53  ;;  %v7266_v2 = vpop.permute.xlu1 %5498  ;;  %v10818_v53 = vld [vmem:[#allocation21_spill] sm:$0xff]  ;;  %v5360_v46 = vunpack.i.l.bf16 %v7112_v19 }
  0xf2   : > { %v7272_v39 = vpop.f32.mrf.mxu2 }
  0xf3   : > { %10815 = vst [vmem:[#allocation10_spill] sm:$0xff] %v7272_v39  ;;  %v5371_v39 = vunpack.i.h.bf16 %v7030_v37 }
  0xf4   : > { %5703 = vrot.lane.b32.xlu0 %v7059_v14, %s6296_s22  ;;  %5728 = vrot.lane.b32.xlu2 %v7087_v6, %s6296_s22  ;;  %v3114_v14 = vunpack.c.l.b16 %v1656_v45  ;;  %v1668_v6 = vpack.c.bf16 %v6939_v11, %v6939_v11  ;;  %v1662_v45 = vpack.c.bf16 %v6956_v29, %v6956_v29  ;;  %v7313_v29 = vunpack.c.l.b16 %v1666_v49 }
  0xf5   : > { %5723 = vrot.lane.b32.xlu1 %v10818_v53, %s6297_s23  ;;  %v7325_v12 = vsel %vm1422_vm3, %v6447_v55, %v5371_v39  ;;  %v1427_v39 = vsel %vm1422_vm3, %v6390_v23, %v5355_v30  ;;  %v1724_v30 = vrot.slane %v5084_v48, 1 }
  0xf6   : > { %v7274_v31 = vpop.permute.xlu0 %5493  ;;  %v7280_v34 = vpop.permute.xlu2 %5563  ;;  %v3175_v11 = vpack.c.b16 %v3114_v14, %v3111_v18  ;;  %v7315_v18 = vunpack.c.l.b16 %v1664_v35  ;;  %v5400_v14 = vunpack.i.l.bf16 %v7089_v15  ;;  %10822 = vst [vmem:[#allocation89_spill] sm:$0xff] %v7325_v12  ;;  %v5346_v35 = vunpack.i.h.bf16 %v7093_v56  ;;  %v10850_v12 = vld [vmem:[#allocation63_spill] sm:$0xff] }
  0xf7   : > { %v7284_v51 = vpop.permute.xlu1 %5513 }
  0xf8   : > { %10819 = vst [vmem:[#allocation76_spill] sm:$0xff] %v7284_v51 }
  0xfa   : > { %v7292_v26 = vpop.f32.mrf.mxu2 }
  0xfb   : > { %10820 = vst [vmem:[#allocation77_spill] sm:$0xff] %v7292_v26  ;;  %v5401_v26 = vunpack.i.h.bf16 %v7089_v15  ;;  %v5345_v15 = vunpack.i.l.bf16 %v7093_v56  ;;  %v10826_v56 = vld [vmem:[#allocation35_spill] sm:$0xff] }
  0xfc   : > { %5718 = vrot.lane.b32.xlu0 %v7097_v60, %s6296_s22  ;;  %5743 = vrot.lane.b32.xlu2 %v7118_v24, %s6296_s22  ;;  %v5370_v60 = vunpack.i.l.bf16 %v7030_v37  ;;  %v7306_v24 = vunpack.c.l.b16 %v1668_v6  ;;  %v7317_v37 = vunpack.c.l.b16 %v1662_v45  ;;  %v5361_v45 = vunpack.i.h.bf16 %v7112_v19  ;;  %v5085_v6 = vld [vmem:[%s6366_s16 + $0x118] sm:$0xff] }
  0xfd   : > { %5738 = vrot.lane.b32.xlu1 %v7073_v57, %s6296_s22  ;;  %v7342_v55 = vsel %vm1422_vm3, %v6604_v32, %v5401_v26  ;;  %v10829_v26 = vld [vmem:[#allocation78_spill] sm:$0xff]  ;;  %v1867_v25 = vrot.slane %v5085_v6, 5  ;;  %v7371_v19 = vsel %vm1422_vm3, %v6415_v38, %v5345_v15  ;;  %v5431_v38 = vunpack.i.h.bf16 %v7128_v61 }
  0xfe   : > { %v7300_v53 = vpop.permute.xlu0 %5508  ;;  %v7304_v17 = vpop.permute.xlu2 %5578  ;;  %v7329_v57 = vsel %vm1422_vm3, %v6438_v52, %v5370_v60  ;;  %v1428_v52 = vsel %vm1422_vm3, %v6387_v22, %v5356_v33  ;;  %v1658_v22 = vpack.c.bf16 %v6971_v59, %v6971_v59  ;;  %v1660_v23 = vpack.c.bf16 %v10829_v26, %v10829_v26 }
  0xff   : > { %10821 = vst [vmem:[#allocation21_spill] sm:$0xff] %v7300_v53  ;;  %5196 = vmatmul.msk.bf16.gmra.mxu2 %vm1422_vm3, %v3175_v11  ;;  %v7331_v49 = vpop.permute.xlu1 %5528  ;;  %v10825_v11 = vld [vmem:[#allocation7_spill] sm:$0xff]  ;;  %v7375_v59 = vsel %vm1422_vm3, %v6477_v10, %v5361_v45  ;;  %v5350_v26 = vunpack.i.l.bf16 %v7122_v44  ;;  %v1672_v45 = vpack.c.bf16 %v7188_v36, %v7188_v36 }
 0x100   : > { %10823 = vst [vmem:[#allocation90_spill] sm:$0xff] %v7329_v57  ;;  %v3117_v15 = vunpack.c.l.b16 %v1658_v22  ;;  %v3120_v10 = vunpack.c.l.b16 %v1660_v23  ;;  %v10833_v23 = vld [vmem:[#allocation20_spill] sm:$0xff] }
 0x101   : > { %10824 = vst [vmem:[#allocation91_spill] sm:$0xff] %v7331_v49  ;;  %v10834_v49 = vld [vmem:[#allocation17_spill] sm:$0xff] }
 0x102   : > { %v7350_v60 = vpop.f32.mrf.mxu2 }
 0x103   : > { %10827 = vst [vmem:[#allocation7_spill] sm:$0xff] %v7350_v60  ;;  %v1773_v60 = vrot.slane %v5085_v6, 7  ;;  %v10830_v6 = vld [vmem:[#allocation38_spill] sm:$0xff] }
 0x104   : > { %5733 = vrot.lane.b32.xlu0 %v10825_v11, %s6297_s23  ;;  %5758 = vrot.lane.b32.xlu2 %v10826_v56, %s6297_s23  ;;  %v7354_v11 = vsel %vm1422_vm3, %v6592_v43, %v5400_v14  ;;  %v1772_v56 = vrot.slane %v5084_v48, 7  ;;  %v7367_v43 = vsel %vm1422_vm3, %v6423_v41, %v5346_v35  ;;  %v5351_v14 = vunpack.i.h.bf16 %v7122_v44  ;;  %v5089_v41 = vld [vmem:[%s6366_s16 + $0x138] sm:$0xff] }
 0x105   : > { %v5430_v48 = vunpack.i.l.bf16 %v7128_v61  ;;  %5753 = vrot.lane.b32.xlu1 %v10830_v6, %s6297_s23  ;;  %v7386_v35 = vsel %vm1422_vm3, %v6468_v5, %v5360_v46  ;;  %v7400_v47 = vsel %vm454_vm0, %v1773_v60, %v1867_v25  ;;  %v10832_v5 = vld [vmem:[#allocation16_spill] sm:$0xff]  ;;  %v1727_v61 = vrot.slane %v5088_v20, 1 }
 0x106   : > { %v7357_v32 = vpop.permute.xlu0 %5523  ;;  %v7363_v33 = vpop.permute.xlu2 %5593  ;;  %v7394_v44 = vsel %vm454_vm0, %v1772_v56, %v1773_v60  ;;  %v7397_v6 = vsel %vm454_vm0, %v1724_v30, %v1772_v56  ;;  %v1781_v46 = vrot.slane %v5088_v20, 7  ;;  %v1782_v22 = vrot.slane %v5089_v41, 7  ;;  %v10836_v25 = vld [vmem:[#allocation48_spill] sm:$0xff] }
 0x107   : > { %10828 = vst [vmem:[#allocation35_spill] sm:$0xff] %v7357_v32  ;;  %v7391_v1 = vpop.permute.xlu1 %5543  ;;  %v1870_v36 = vrot.slane %v5089_v41, 5  ;;  %v7410_v30 = vsel %vm1422_vm3, %v10834_v49, %v5350_v26  ;;  %v7413_v56 = vsel %vm1453_vm4, %v1427_v39, %v5430_v48  ;;  %v1961_v20 = vrot.slane %v7397_v6, 1 }
 0x108   : > { %10831 = vst [vmem:[#allocation78_spill] sm:$0xff] %v7391_v1  ;;  %v7406_v1 = vsel %vm1422_vm3, %v10833_v23, %v5351_v14  ;;  %v1962_v41 = vrot.slane %v7394_v44, 1  ;;  %v1964_v14 = vrot.slane %v7400_v47, 1  ;;  %v5086_v23 = vld [vmem:[%s6366_s16 + $0x120] sm:$0xff]  ;;  %v7425_v49 = vsel %vm1453_vm4, %v1428_v52, %v5431_v38  ;;  %v10845_v52 = vld [vmem:[#allocation53_spill] sm:$0xff] }
 0x109   : > { %10835 = vst [vmem:[#allocation38_spill] sm:$0xff] %v7413_v56  ;;  %v7427_v26 = vunpack.c.l.b16 %v1672_v45  ;;  %v1670_v39 = vpack.c.bf16 %v7185_v13, %v7185_v13  ;;  %v798_v38 = vrot.slane %v7110_v50, 1  ;;  %v1726_v45 = vrot.slane %v5086_v23, 1 }
 0x10a   : > { %10838 = vst [vmem:[#allocation20_spill] sm:$0xff] %v7425_v49  ;;  %v1778_v13 = vrot.slane %v5086_v23, 7  ;;  %v1779_v32 = vrot.slane %v5087_v63, 7  ;;  %v1873_v56 = vrot.slane %v5095_v7, 5 }
 0x10b   : > { %10839 = vst [vmem:[#allocation17_spill] sm:$0xff] %v7427_v26  ;;  %v5090_v26 = vld [vmem:[%s6366_s16 + $0x140] sm:$0xff] }
 0x10c   : > { %5748 = vrot.lane.b32.xlu0 %v10832_v5, %s6297_s23  ;;  %5773 = vrot.lane.b32.xlu2 %v10836_v25, %s6297_s23  ;;  %v3178_v5 = vpack.c.b16 %v3120_v10, %v3117_v15  ;;  %v7433_v25 = vpop.f32.mrf.mxu2  ;;  %v7436_v15 = vsel %vm454_vm0, %v1781_v46, %v1782_v22  ;;  %v7439_v10 = vsel %vm454_vm0, %v1727_v61, %v1781_v46  ;;  %v799_v46 = vrot.slane %v7107_v3, 1 }
 0x10d   : > { %10841 = vst [vmem:[#allocation92_spill] sm:$0xff] %v7433_v25  ;;  %5768 = vrot.lane.b32.xlu1 %v10845_v52, %s6297_s23  ;;  %v7449_v25 = vsel %vm644_vm1, %v1961_v20, %v1962_v41  ;;  %v7452_v61 = vsel %vm644_vm1, %v1962_v41, %v1964_v14  ;;  %v1976_v50 = vrot.slane %v7439_v10, 1  ;;  %v1977_v23 = vrot.slane %v7436_v15, 1  ;;  %v5083_v41 = vld [vmem:[%s6366_s16 + $0x108] sm:$0xff] }
 0x10e   : > { %v7417_v60 = vpop.permute.xlu0 %5538  ;;  %v7431_v48 = vpop.permute.xlu2 %5608  ;;  %10842 = vst [vmem:[#allocation93_spill] sm:$0xff] %v7436_v15  ;;  %v7464_v14 = vunpack.c.l.b16 %v1670_v39  ;;  %v7476_v20 = vsel %vm454_vm0, %v1726_v45, %v1778_v13  ;;  %v7483_v39 = vpack.i.bf16 %v7452_v61, %v7449_v25 }
 0x10f   : > { %10837 = vst [vmem:[#allocation16_spill] sm:$0xff] %v7417_v60  ;;  %v7442_v60 = vsel %vm454_vm0, %v1782_v22, %v1870_v36  ;;  %5197 = vmatmul.msk.bf16.gmra.mxu2 %vm1422_vm3, %v3178_v5  ;;  %v801_v22 = vrot.slane %v7165_v9, 1  ;;  %v7456_v36 = vpop.permute.xlu1 %5558  ;;  %v1869_v5 = vrot.slane %v5087_v63, 5  ;;  %v10849_v9 = vld [vmem:[#allocation30_spill] sm:$0xff]  ;;  %v7473_v63 = vsel %vm454_vm0, %v1778_v13, %v1779_v32 }
 0x110   : > { %10840 = vst [vmem:[#allocation48_spill] sm:$0xff] %v7431_v48  ;;  %v1979_v52 = vrot.slane %v7442_v60, 1  ;;  %v7496_v45 = vsel %vm644_vm1, %v1976_v50, %v1977_v23 }
 0x111   : > { %10843 = vst [vmem:[#allocation94_spill] sm:$0xff] %v7439_v10  ;;  %v7489_v57 = vsel %vm644_vm1, %v799_v46, %v801_v22  ;;  %v7502_v49 = vsel %vm454_vm0, %v1779_v32, %v1869_v5  ;;  %v1775_v22 = vrot.slane %v5082_v16, 7  ;;  %v1791_v5 = vrot.slane %v5095_v7, 7 }
 0x112   : > { %10844 = vst [vmem:[#allocation95_spill] sm:$0xff] %v7442_v60  ;;  %v7499_v13 = vsel %vm644_vm1, %v1977_v23, %v1979_v52  ;;  %v1868_v23 = vrot.slane %v5083_v41, 5 }
 0x113   : > { %10846 = vst [vmem:[#allocation53_spill] sm:$0xff] %v7449_v25  ;;  %v1725_v25 = vrot.slane %v5082_v16, 1 }
 0x114   : > { %10847 = vst [vmem:[#allocation96_spill] sm:$0xff] %v7452_v61  ;;  %5763 = vrot.lane.b32.xlu0 %v10849_v9, %s6297_s23  ;;  %5788 = vrot.lane.b32.xlu2 %v10850_v12, %s6297_s23  ;;  %v7486_v9 = vsel %vm644_vm1, %v798_v38, %v799_v46  ;;  %v5094_v12 = vld [vmem:[%s6366_s16 + $0x160] sm:$0xff]  ;;  %v5092_v61 = vld [vmem:[%s6366_s16 + $0x150] sm:$0xff]  ;;  %v1971_v38 = vrot.slane %v7476_v20, 1  ;;  %v1972_v46 = vrot.slane %v7473_v63, 1  ;;  %v7510_v50 = vpop.f32.mrf.mxu2 }
 0x115   : > { %10848 = vst [vmem:[#allocation97_spill] sm:$0xff] %v7456_v36  ;;  %v1776_v36 = vrot.slane %v5083_v41, 7  ;;  %v1730_v52 = vrot.slane %v5094_v12, 1  ;;  %v1790_v32 = vrot.slane %v5094_v12, 7  ;;  %v1729_v60 = vrot.slane %v5092_v61, 1 }
 0x116   : > { %10851 = vst [vmem:[#allocation30_spill] sm:$0xff] %v7473_v63  ;;  %v7479_v3 = vpop.permute.xlu0 %5553  ;;  %v7493_v21 = vpop.permute.xlu2 %5623  ;;  %v1787_v15 = vrot.slane %v5092_v61, 7  ;;  %v5797_v16 = vpack.i.bf16 %v7489_v57, %v7486_v9  ;;  %v1974_v63 = vrot.slane %v7502_v49, 1  ;;  %v7523_v41 = vpack.i.bf16 %v7499_v13, %v7496_v45 }
 0x117   : > { %10852 = vst [vmem:[#allocation63_spill] sm:$0xff] %v7476_v20  ;;  %v7512_v20 = vpop.permute.xlu1 %5573  ;;  %v7526_v7 = vsel %vm644_vm1, %v1971_v38, %v1972_v46  ;;  %v7529_v61 = vsel %vm454_vm0, %v1775_v22, %v1776_v36  ;;  %v7532_v12 = vsel %vm454_vm0, %v1725_v25, %v1775_v22  ;;  %v7545_v38 = vsel %vm454_vm0, %v1730_v52, %v1790_v32 }
 0x118   : > { %10853 = vst [vmem:[#allocation98_spill] sm:$0xff] %v7479_v3  ;;  %v5093_v3 = vld [vmem:[%s6366_s16 + $0x158] sm:$0xff]  ;;  %v7550_v25 = vsel %vm454_vm0, %v1791_v5, %v1873_v56  ;;  %v7553_v22 = vsel %vm454_vm0, %v1729_v60, %v1787_v15  ;;  %v1966_v56 = vrot.slane %v7532_v12, 1  ;;  %v1967_v60 = vrot.slane %v7529_v61, 1 }
 0x119   : > { %10854 = vst [vmem:[#allocation99_spill] sm:$0xff] %v7483_v39  ;;  %v1788_v48 = vrot.slane %v5093_v3, 7  ;;  %v1872_v10 = vrot.slane %v5093_v3, 5  ;;  %v7537_v3 = vsel %vm454_vm0, %v1776_v36, %v1868_v23  ;;  %v1784_v36 = vrot.slane %v5090_v26, 7 }
 0x11a   : > { %10855 = vst [vmem:[#allocation100_spill] sm:$0xff] %v7486_v9 }
 0x11b   : > { %10856 = vst [vmem:[#allocation101_spill] sm:$0xff] %v7489_v57  ;;  %v7564_v52 = vsel %vm454_vm0, %v1788_v48, %v1872_v10  ;;  %v1991_v57 = vrot.slane %v7545_v38, 1 }
 0x11c   : > { %10857 = vst [vmem:[#allocation102_spill] sm:$0xff] %v7493_v21  ;;  %v10860_v21 = vld [vmem:[#allocation67_spill] sm:$0xff]  ;;  %5803 = vrot.lane.b32.xlu2 %v7483_v39, %s6295_s17 }
 0x11d   : > { %10858 = vst [vmem:[#allocation103_spill] sm:$0xff] %v7496_v45  ;;  %5783 = vrot.lane.b32.xlu1 %v10860_v21, %s6297_s23  ;;  %v5091_v21 = vld [vmem:[%s6366_s16 + $0x148] sm:$0xff] }
 0x11e   : > { %10859 = vst [vmem:[#allocation104_spill] sm:$0xff] %v7499_v13  ;;  %v7542_v13 = vsel %vm454_vm0, %v1790_v32, %v1791_v5  ;;  %v7547_v45 = vpop.permute.xlu0 %5568  ;;  %v1785_v23 = vrot.slane %v5091_v21, 7  ;;  %v7555_v9 = vpop.permute.xlu2 %5638  ;;  %v1728_v32 = vrot.slane %v5090_v26, 1  ;;  %v1969_v5 = vrot.slane %v7537_v3, 1 }
 0x11f   : > { %10861 = vst [vmem:[#allocation67_spill] sm:$0xff] %v7510_v50  ;;  %v10863_v50 = vld [vmem:[#allocation43_spill] sm:$0xff]  ;;  %v1871_v10 = vrot.slane %v5091_v21, 5 }
 0x120   : > { %10862 = vst [vmem:[#allocation105_spill] sm:$0xff] %v7512_v20  ;;  %5778 = vrot.lane.b32.xlu0 %v10863_v50, %s6297_s23  ;;  %v3181_v50 = vpack.c.b16 %v7315_v18, %v7317_v37  ;;  %v7558_v18 = vsel %vm644_vm1, %v1972_v46, %v1974_v63  ;;  %v7561_v37 = vsel %vm454_vm0, %v1787_v15, %v1788_v48  ;;  %v1992_v63 = vrot.slane %v7542_v13, 1  ;;  %v7582_v20 = vpop.permute.xlu1 %5588 }
 0x121   : > { %10864 = vst [vmem:[#allocation43_spill] sm:$0xff] %v7523_v41  ;;  %v1994_v15 = vrot.slane %v7550_v25, 1  ;;  %v1986_v48 = vrot.slane %v7553_v22, 1  ;;  %v1987_v26 = vrot.slane %v7561_v37, 1  ;;  %v1989_v46 = vrot.slane %v7564_v52, 1 }
 0x122   : > { %10865 = vst [vmem:[#allocation106_spill] sm:$0xff] %v7526_v7  ;;  %5198 = vmatmul.msk.bf16.gmra.mxu2 %vm1422_vm3, %v3181_v50  ;;  %v7580_v39 = vsel %vm454_vm0, %v1784_v36, %v1785_v23  ;;  %v10880_v50 = vunpack.i.h.bf16 %v7162_v54 }
 0x123   : > { %10866 = vst [vmem:[#allocation107_spill] sm:$0xff] %v7529_v61  ;;  %v10883_v61 = vld [vmem:[#allocation54_spill] sm:$0xff] }
 0x124   : > { %10867 = vst [vmem:[#allocation108_spill] sm:$0xff] %v7532_v12  ;;  %5818 = vrot.lane.b32.xlu2 %v7523_v41, %s6295_s17  ;;  %v5405_v41 = vunpack.i.l.bf16 %v7172_v40 }
 0x125   : > { %10868 = vst [vmem:[#allocation109_spill] sm:$0xff] %v7537_v3  ;;  %5798 = vrot.lane.b32.xlu1 %v5797_v16, %s6297_s23  ;;  %v7584_v16 = vpop.f32.mrf.mxu2  ;;  %v10881_v3 = vld [vmem:[#allocation57_spill] sm:$0xff] }
 0x126   : > { %10869 = vst [vmem:[#allocation110_spill] sm:$0xff] %v7542_v13 }
 0x127   : > { %10870 = vst [vmem:[#allocation111_spill] sm:$0xff] %v7545_v38 }
 0x128   : > { %10871 = vst [vmem:[#allocation112_spill] sm:$0xff] %v7547_v45  ;;  %v5100_v45 = vld [vmem:[%s6366_s16 + $0x190] sm:$0xff] }
 0x129   : > { %10872 = vst [vmem:[#allocation113_spill] sm:$0xff] %v7550_v25  ;;  %v1733_v38 = vrot.slane %v5100_v45, 1  ;;  %v7587_v25 = vsel %vm454_vm0, %v1728_v32, %v1784_v36  ;;  %v1799_v13 = vrot.slane %v5100_v45, 7  ;;  %v7605_v45 = vpack.i.bf16 %v7558_v18, %v7526_v7  ;;  %v5098_v36 = vld [vmem:[%s6366_s16 + $0x180] sm:$0xff]  ;;  %v7625_v32 = vpop.permute.xlu0 %5583 }
 0x12a   : > { %10873 = vst [vmem:[#allocation114_spill] sm:$0xff] %v7553_v22  ;;  %v1796_v7 = vrot.slane %v5098_v36, 7 }
 0x12b   : > { %10874 = vst [vmem:[#allocation115_spill] sm:$0xff] %v7555_v9  ;;  %v5101_v9 = vld [vmem:[%s6366_s16 + $0x198] sm:$0xff] }
 0x12c   : > { %10875 = vst [vmem:[#allocation116_spill] sm:$0xff] %v7558_v18  ;;  %v1800_v21 = vrot.slane %v5101_v9, 7  ;;  %v1876_v22 = vrot.slane %v5101_v9, 5  ;;  %v7608_v9 = vsel %vm644_vm1, %v1966_v56, %v1967_v60  ;;  %v7628_v56 = vsel %vm644_vm1, %v1986_v48, %v1987_v26  ;;  %v5099_v48 = vld [vmem:[%s6366_s16 + $0x188] sm:$0xff]  ;;  %v5096_v18 = vld [vmem:[%s6366_s16 + $0x170] sm:$0xff] }
 0x12d   : > { %10876 = vst [vmem:[#allocation117_spill] sm:$0xff] %v7561_v37  ;;  %v7593_v37 = vsel %vm1422_vm3, %v10881_v3, %v10880_v50  ;;  %v7620_v3 = vsel %vm644_vm1, %v1992_v63, %v1994_v15  ;;  %5813 = vrot.lane.b32.xlu1 %v7605_v45, %s6295_s17 }
 0x12e   : > { %10877 = vst [vmem:[#allocation118_spill] sm:$0xff] %v7564_v52  ;;  %v10882_v52 = vunpack.i.l.bf16 %v7162_v54  ;;  %v7614_v54 = vsel %vm644_vm1, %v1967_v60, %v1969_v5  ;;  %v1981_v60 = vrot.slane %v7587_v25, 1  ;;  %v7635_v5 = vpop.permute.xlu2 %5653  ;;  %v7644_v15 = vsel %vm454_vm0, %v1800_v21, %v1876_v22 }
 0x12f   : > { %10878 = vst [vmem:[#allocation119_spill] sm:$0xff] %v7582_v20 }
 0x130   : > { %10879 = vst [vmem:[#allocation120_spill] sm:$0xff] %v7584_v16  ;;  %v7599_v12 = vsel %vm1422_vm3, %v10883_v61, %v10882_v52  ;;  %v10884_v16 = vld [vmem:[#allocation58_spill] sm:$0xff]  ;;  %v7617_v61 = vsel %vm644_vm1, %v1991_v57, %v1992_v63  ;;  %v7623_v52 = vsel %vm454_vm0, %v1785_v23, %v1871_v10  ;;  %v1982_v57 = vrot.slane %v7580_v39, 1 }
 0x131   : > { %5793 = vrot.lane.b32.xlu0 %v10884_v16, %s6297_s23  ;;  %10885 = vst [vmem:[#allocation57_spill] sm:$0xff] %v7605_v45  ;;  %v7631_v16 = vsel %vm644_vm1, %v1987_v26, %v1989_v46  ;;  %v7638_v63 = vsel %vm454_vm0, %v1799_v13, %v1800_v21  ;;  %v7641_v23 = vsel %vm454_vm0, %v1733_v38, %v1799_v13  ;;  %v1732_v10 = vrot.slane %v5098_v36, 1  ;;  %v5297_v21 = vld [vmem:[%s10408_s1 + $0x38] sm:$0xff]  ;;  %v7676_v45 = vpop.permute.xlu1 %5603 }
 0x132   : > { %10886 = vst [vmem:[#allocation54_spill] sm:$0xff] %v7608_v9  ;;  %v5406_v26 = vunpack.i.h.bf16 %v7172_v40  ;;  %v5807_v46 = vpack.i.bf16 %v7614_v54, %v7608_v9  ;;  %v1984_v50 = vrot.slane %v7623_v52, 1  ;;  %v5476_v13 = vunpack.i.h.bf16 %v7180_v27  ;;  %v7670_v40 = vld [vmem:[%s10408_s1 + $0x78] sm:$0xff]  ;;  %3691 = vmatpush.bf16.msra.mxu0 %v5297_v21  ;;  %5313 = vmatpush.bf16.msra.mxu3 %v5297_v21 }
 0x133   : > { %10887 = vst [vmem:[#allocation58_spill] sm:$0xff] %v7614_v54  ;;  %v7658_v38 = vpack.i.bf16 %v7620_v3, %v7617_v61  ;;  %v7662_v22 = vpack.i.bf16 %v7631_v16, %v7628_v56  ;;  %v2006_v36 = vrot.slane %v7641_v23, 1  ;;  %v2007_v54 = vrot.slane %v7638_v63, 1  ;;  %v5097_v9 = vld [vmem:[%s6366_s16 + $0x178] sm:$0xff]  ;;  %3860 = vmatpush.bf16.msra.mxu1 %v7670_v40 }
 0x134   : > { %10888 = vst [vmem:[#allocation121_spill] sm:$0xff] %v7617_v61  ;;  %v2009_v61 = vrot.slane %v7644_v15, 1  ;;  %v7682_v20 = vsel %vm454_vm0, %v1732_v10, %v1796_v7 }
 0x135   : > { %10889 = vst [vmem:[#allocation122_spill] sm:$0xff] %v7620_v3  ;;  %v1797_v3 = vrot.slane %v5099_v48, 7  ;;  %5833 = vrot.lane.b32.xlu2 %v7658_v38, %s6295_s17  ;;  %5828 = vrot.lane.b32.xlu1 %v7662_v22, %s6295_s17 }
 0x136   : > { %10890 = vst [vmem:[#allocation123_spill] sm:$0xff] %v7625_v32  ;;  %v1793_v32 = vrot.slane %v5096_v18, 7  ;;  %v7708_v21 = vsel %vm644_vm1, %v2007_v54, %v2009_v61  ;;  %v5426_v61 = vunpack.i.h.bf16 %v7190_v28 }
 0x137   : > { %10891 = vst [vmem:[#allocation124_spill] sm:$0xff] %v7628_v56  ;;  %v7679_v56 = vsel %vm644_vm1, %v1981_v60, %v1982_v57  ;;  %v1731_v60 = vrot.slane %v5096_v18, 1  ;;  %v7705_v18 = vsel %vm644_vm1, %v2006_v36, %v2007_v54  ;;  %v5425_v36 = vunpack.i.l.bf16 %v7190_v28 }
 0x138   : > { %10892 = vst [vmem:[#allocation125_spill] sm:$0xff] %v7631_v16  ;;  %v1875_v16 = vrot.slane %v5099_v48, 5  ;;  %v7695_v48 = vpop.f32.mrf.mxu2 }
 0x139   : > { %10893 = vst [vmem:[#allocation126_spill] sm:$0xff] %v7638_v63  ;;  %5808 = vrot.lane.b32.xlu0 %v5807_v46, %s6295_s17  ;;  %v7687_v63 = vsel %vm644_vm1, %v1982_v57, %v1984_v50  ;;  %v1874_v57 = vrot.slane %v5097_v9, 5  ;;  %v7702_v50 = vpop.permute.xlu0 %5598 }
 0x13a   : > { %10894 = vst [vmem:[#allocation127_spill] sm:$0xff] %v7641_v23  ;;  %v7690_v23 = vsel %vm454_vm0, %v1796_v7, %v1797_v3  ;;  %v7698_v10 = vsel %vm454_vm0, %v1797_v3, %v1875_v16  ;;  %v5475_v7 = vunpack.i.l.bf16 %v7180_v27  ;;  %v10909_v16 = vld [vmem:[#allocation59_spill] sm:$0xff]  ;;  %v7721_v27 = vsel %vm1453_vm4, %v7342_v55, %v5476_v13 }
 0x13b   : > { %10895 = vst [vmem:[#allocation128_spill] sm:$0xff] %v7644_v15  ;;  %v2001_v15 = vrot.slane %v7682_v20, 1  ;;  %v2002_v46 = vrot.slane %v7690_v23, 1  ;;  %v7742_v55 = vpack.i.bf16 %v7708_v21, %v7705_v18 }
 0x13c   : > { %10896 = vst [vmem:[#allocation129_spill] sm:$0xff] %v7658_v38 }
 0x13d   : > { %10897 = vst [vmem:[#allocation130_spill] sm:$0xff] %v7662_v22  ;;  %v7745_v13 = vsel %vm644_vm1, %v2001_v15, %v2002_v46  ;;  %v5420_v15 = vunpack.i.l.bf16 %v7198_v62  ;;  %5848 = vrot.lane.b32.xlu2 %v7742_v55, %s6295_s17  ;;  %v10941_v22 = vld [vmem:[#allocation27_spill] sm:$0xff] }
 0x13e   : > { %10898 = vst [vmem:[#allocation131_spill] sm:$0xff] %v7676_v45  ;;  %v1794_v45 = vrot.slane %v5097_v9, 7  ;;  %v7723_v9 = vpop.permute.xlu2 %5668 }
 0x13f   : > { %10899 = vst [vmem:[#allocation132_spill] sm:$0xff] %v7679_v56 }
 0x140   : > { %10900 = vst [vmem:[#allocation133_spill] sm:$0xff] %v7682_v20  ;;  %v10908_v20 = vld [vmem:[#allocation61_spill] sm:$0xff]  ;;  %v7726_v54 = vsel %vm454_vm0, %v1793_v32, %v1794_v45 }
 0x141   : > { %10901 = vst [vmem:[#allocation134_spill] sm:$0xff] %v7687_v63  ;;  %v7713_v3 = vsel %vm1422_vm3, %v10908_v20, %v5406_v26  ;;  %v7732_v20 = vpack.i.bf16 %v7687_v63, %v7679_v56  ;;  %v5106_v26 = vld [vmem:[%s6366_s16 + $0x1c0] sm:$0xff]  ;;  %v7762_v63 = vpop.permute.xlu1 %5618 }
 0x142   : > { %10902 = vst [vmem:[#allocation135_spill] sm:$0xff] %v7690_v23  ;;  %v7717_v23 = vsel %vm1422_vm3, %v10909_v16, %v5405_v41  ;;  %v7735_v41 = vsel %vm454_vm0, %v1731_v60, %v1793_v32  ;;  %v7751_v16 = vsel %vm454_vm0, %v1794_v45, %v1874_v57  ;;  %v7755_v32 = vsel %vm1453_vm4, %v7354_v11, %v5475_v7  ;;  %v7775_v57 = vld [vmem:[%s10408_s1 + $0x70] sm:$0xff] }
 0x143   : > { %10903 = vst [vmem:[#allocation136_spill] sm:$0xff] %v7695_v48  ;;  %v2004_v48 = vrot.slane %v7698_v10, 1  ;;  %v5421_v60 = vunpack.i.h.bf16 %v7198_v62  ;;  %v1996_v56 = vrot.slane %v7735_v41, 1  ;;  %v7767_v45 = vpack.c.b16 %v7306_v24, %v7313_v29  ;;  %5823 = vrot.lane.b32.xlu0 %v7732_v20, %s6295_s17  ;;  %3861 = vmatpush.bf16.msra.mxu1 %v7775_v57 }
 0x144   : > { %10904 = vst [vmem:[#allocation137_spill] sm:$0xff] %v7698_v10  ;;  %v1736_v11 = vrot.slane %v5106_v26, 1  ;;  %v7779_v62 = vsel %vm1453_vm4, %v7410_v30, %v5425_v36  ;;  %v7783_v7 = vsel %vm1453_vm4, %v7406_v1, %v5426_v61  ;;  %v1808_v29 = vrot.slane %v5106_v26, 7  ;;  %v5104_v36 = vld [vmem:[%s6366_s16 + $0x1b0] sm:$0xff] }
 0x145   : > { %10905 = vst [vmem:[#allocation138_spill] sm:$0xff] %v7702_v50  ;;  %v7748_v28 = vsel %vm644_vm1, %v2002_v46, %v2004_v48  ;;  %v1999_v48 = vrot.slane %v7751_v16, 1  ;;  %v5296_v46 = vld [vmem:[%s10408_s1 + $0x30] sm:$0xff]  ;;  %5199 = vmatmul.msk.bf16.gmra.mxu2 %vm1422_vm3, %v7767_v45  ;;  %v5436_v26 = vunpack.i.h.bf16 %v7210_v8 }
 0x146   : > { %10906 = vst [vmem:[#allocation139_spill] sm:$0xff] %v7705_v18  ;;  %v1997_v18 = vrot.slane %v7726_v54, 1  ;;  %v7789_v24 = vpack.i.bf16 %v7748_v28, %v7745_v13  ;;  %3692 = vmatpush.bf16.msra.mxu0 %v5296_v46  ;;  %5314 = vmatpush.bf16.msra.mxu3 %v5296_v46  ;;  %v10940_v50 = vld [vmem:[#allocation29_spill] sm:$0xff] }
 0x147   : > { %10907 = vst [vmem:[#allocation140_spill] sm:$0xff] %v7708_v21  ;;  %v5107_v21 = vld [vmem:[%s6366_s16 + $0x1c8] sm:$0xff] }
 0x148   : > { %10910 = vst [vmem:[#allocation61_spill] sm:$0xff] %v7723_v9  ;;  %v7794_v10 = vsel %vm644_vm1, %v1996_v56, %v1997_v18  ;;  %v7797_v30 = vsel %vm644_vm1, %v1997_v18, %v1999_v48  ;;  %v1809_v1 = vrot.slane %v5107_v21, 7  ;;  %v1879_v61 = vrot.slane %v5107_v21, 5  ;;  %v5295_v18 = vld [vmem:[%s10408_s1 + $0x28] sm:$0xff]  ;;  %5843 = vrot.lane.b32.xlu1 %v7789_v24, %s6295_s17 }
 0x149   : > { %10911 = vst [vmem:[#allocation59_spill] sm:$0xff] %v7726_v54  ;;  %v7811_v56 = vsel %vm454_vm0, %v1736_v11, %v1808_v29  ;;  %v7818_v21 = vsel %vm1453_vm4, %v7371_v19, %v5420_v15  ;;  %v7835_v19 = vld [vmem:[%s10408_s1 + $0x68] sm:$0xff]  ;;  %v7839_v15 = vpack.i.bf16 %v7797_v30, %v7794_v10  ;;  %v5505_v54 = vunpack.i.l.bf16 %v7216_v0 }
 0x14a   : > { %10912 = vst [vmem:[#allocation141_spill] sm:$0xff] %v7732_v20  ;;  %v7826_v48 = vsel %vm454_vm0, %v1808_v29, %v1809_v1  ;;  %v7829_v11 = vsel %vm454_vm0, %v1809_v1, %v1879_v61  ;;  %v5506_v61 = vunpack.i.h.bf16 %v7216_v0  ;;  %3693 = vmatpush.bf16.msra.mxu0 %v5295_v18  ;;  %3862 = vmatpush.bf16.msra.mxu1 %v7835_v19  ;;  %v5566_v20 = vunpack.i.h.bf16 %v7280_v34 }
 0x14b   : > { %10913 = vst [vmem:[#allocation142_spill] sm:$0xff] %v7735_v41  ;;  %v2022_v29 = vrot.slane %v7826_v48, 1  ;;  %v2024_v46 = vrot.slane %v7829_v11, 1  ;;  %v5102_v41 = vld [vmem:[%s6366_s16 + $0x1a0] sm:$0xff]  ;;  %5315 = vmatpush.bf16.msra.mxu3 %v5295_v18  ;;  %5838 = vrot.lane.b32.xlu0 %v7839_v15, %s6295_s17 }
 0x14c   : > { %10914 = vst [vmem:[#allocation143_spill] sm:$0xff] %v7742_v55  ;;  %v7808_v55 = vpop.permute.xlu0 %5613  ;;  %v1802_v18 = vrot.slane %v5102_v41, 7 }
 0x14d   : > { %10915 = vst [vmem:[#allocation144_spill] sm:$0xff] %v7745_v13  ;;  %v5435_v13 = vunpack.i.l.bf16 %v7210_v8  ;;  %v7823_v8 = vpop.permute.xlu2 %5683  ;;  %v5616_v0 = vunpack.i.h.bf16 %v7808_v55 }
 0x14e   : > { %10916 = vst [vmem:[#allocation145_spill] sm:$0xff] %v7748_v28  ;;  %v7804_v28 = vsel %vm1453_vm4, %v7367_v43, %v5421_v60  ;;  %v7821_v60 = vpop.f32.mrf.mxu2  ;;  %v2021_v43 = vrot.slane %v7811_v56, 1 }
 0x14f   : > { %10917 = vst [vmem:[#allocation146_spill] sm:$0xff] %v7751_v16  ;;  %v1735_v16 = vrot.slane %v5104_v36, 1  ;;  %v1534_v42 = vsel %vm1422_vm3, %v10940_v50, %v5616_v0 }
 0x150   : > { %10918 = vst [vmem:[#allocation147_spill] sm:$0xff] %v7789_v24  ;;  %v7860_v1 = vsel %vm644_vm1, %v2021_v43, %v2022_v29 }
 0x151   : > { %10919 = vst [vmem:[#allocation148_spill] sm:$0xff] %v7794_v10  ;;  %v7853_v10 = vsel %vm1453_vm4, %v7375_v59, %v5436_v26 }
 0x152   : > { %10920 = vst [vmem:[#allocation149_spill] sm:$0xff] %v7797_v30  ;;  %v7857_v30 = vsel %vm1453_vm4, %v7386_v35, %v5435_v13  ;;  %v5294_v35 = vld [vmem:[%s10408_s1 + $0x20] sm:$0xff] }
 0x153   : > { %10921 = vst [vmem:[#allocation150_spill] sm:$0xff] %v7811_v56  ;;  %v7863_v56 = vpop.permute.xlu1 %5633  ;;  %v7875_v13 = vld [vmem:[%s10408_s1 + $0x60] sm:$0xff]  ;;  %3694 = vmatpush.bf16.msra.mxu0 %v5294_v35  ;;  %5316 = vmatpush.bf16.msra.mxu3 %v5294_v35 }
 0x154   : > { %10922 = vst [vmem:[#allocation151_spill] sm:$0xff] %v7821_v60  ;;  %v5105_v60 = vld [vmem:[%s6366_s16 + $0x1b8] sm:$0xff]  ;;  %3863 = vmatpush.bf16.msra.mxu1 %v7875_v13 }
 0x155   : > { %10923 = vst [vmem:[#allocation152_spill] sm:$0xff] %v7823_v8  ;;  %v1806_v24 = vrot.slane %v5105_v60, 7  ;;  %v1878_v59 = vrot.slane %v5105_v60, 5  ;;  %v5103_v60 = vld [vmem:[%s6366_s16 + $0x1a8] sm:$0xff]  ;;  %v7895_v8 = vpop.permute.xlu0 %5628 }
 0x156   : > { %10924 = vst [vmem:[#allocation153_spill] sm:$0xff] %v7826_v48  ;;  %v1805_v48 = vrot.slane %v5104_v36, 7  ;;  %v5615_v36 = vunpack.i.l.bf16 %v7808_v55 }
 0x157   : > { %10925 = vst [vmem:[#allocation154_spill] sm:$0xff] %v7829_v11  ;;  %v7866_v11 = vsel %vm644_vm1, %v2022_v29, %v2024_v46  ;;  %v1734_v29 = vrot.slane %v5102_v41, 1  ;;  %v7892_v38 = vsel %vm454_vm0, %v1806_v24, %v1878_v59  ;;  %v7910_v41 = vsel %vm1484_vm5, %v7804_v28, %v5506_v61 }
 0x158   : > { %10926 = vst [vmem:[#allocation155_spill] sm:$0xff] %v7839_v15  ;;  %v7882_v26 = vpack.i.bf16 %v7866_v11, %v7860_v1  ;;  %v7885_v43 = vsel %vm454_vm0, %v1735_v16, %v1805_v48  ;;  %v7889_v46 = vsel %vm454_vm0, %v1805_v48, %v1806_v24  ;;  %v2019_v16 = vrot.slane %v7892_v38, 1  ;;  %v5293_v48 = vld [vmem:[%s10408_s1 + $0x18] sm:$0xff] }
 0x159   : > { %10927 = vst [vmem:[#allocation156_spill] sm:$0xff] %v7853_v10  ;;  %v2016_v55 = vrot.slane %v7885_v43, 1  ;;  %v7906_v24 = vsel %vm1484_vm5, %v7818_v21, %v5505_v54  ;;  %v5486_v59 = vunpack.i.h.bf16 %v7251_v58  ;;  %v1877_v15 = vrot.slane %v5103_v60, 5  ;;  %3695 = vmatpush.bf16.msra.mxu0 %v5293_v48  ;;  %5317 = vmatpush.bf16.msra.mxu3 %v5293_v48 }
 0x15a   : > { %10928 = vst [vmem:[#allocation157_spill] sm:$0xff] %v7857_v30  ;;  %5863 = vrot.lane.b32.xlu2 %v7882_v26, %s6295_s17  ;;  %v1533_v10 = vsel %vm1422_vm3, %v10941_v22, %v5615_v36  ;;  %v5480_v22 = vunpack.i.l.bf16 %v7259_v4  ;;  %v5109_v30 = vld [vmem:[%s6366_s16 + $0x1d8] sm:$0xff] }
 0x15b   : > { %10929 = vst [vmem:[#allocation158_spill] sm:$0xff] %v7860_v1  ;;  %v5485_v1 = vunpack.i.l.bf16 %v7251_v58  ;;  %v7928_v58 = vsel %vm454_vm0, %v1734_v29, %v1802_v18 }
 0x15c   : > { %10930 = vst [vmem:[#allocation159_spill] sm:$0xff] %v7866_v11  ;;  %v2017_v11 = vrot.slane %v7889_v46, 1  ;;  %v2011_v29 = vrot.slane %v7928_v58, 1 }
 0x15d   : > { %10931 = vst [vmem:[#allocation160_spill] sm:$0xff] %v7882_v26  ;;  %v5481_v26 = vunpack.i.h.bf16 %v7259_v4  ;;  %v7963_v4 = vld [vmem:[%s10408_s1 + $0x50] sm:$0xff]  ;;  %v7991_v48 = vpop.permute.xlu0 %5643 }
 0x15e   : > { %10932 = vst [vmem:[#allocation161_spill] sm:$0xff] %v7885_v43  ;;  %v5699_v43 = vpop.permute.xlu2 %5698  ;;  %v7922_v54 = vsel %vm644_vm1, %v2016_v55, %v2017_v11  ;;  %v7925_v61 = vsel %vm644_vm1, %v2017_v11, %v2019_v16  ;;  %v7941_v11 = vpop.f32.mrf.mxu2  ;;  %v5645_v9 = vunpack.i.l.bf16 %v7991_v48 }
 0x15f   : > { %10933 = vst [vmem:[#allocation162_spill] sm:$0xff] %v7889_v46  ;;  %v1803_v46 = vrot.slane %v5103_v60, 7  ;;  %v7936_v35 = vpack.i.bf16 %v7925_v61, %v7922_v54  ;;  %v5701_v0 = vunpack.i.h.bf16 %v5699_v43  ;;  %v7952_v16 = vpop.permute.xlu1 %5648 }
 0x160   : > { %10934 = vst [vmem:[#allocation163_spill] sm:$0xff] %v7892_v38  ;;  %v7919_v38 = vld [vmem:[%s10408_s1 + $0x58] sm:$0xff] }
 0x161   : > { %10935 = vst [vmem:[#allocation164_spill] sm:$0xff] %v7906_v24  ;;  %v7939_v55 = vsel %vm454_vm0, %v1802_v18, %v1803_v46  ;;  %v7944_v60 = vsel %vm454_vm0, %v1803_v46, %v1877_v15  ;;  %5858 = vrot.lane.b32.xlu1 %v7936_v35, %s6295_s17  ;;  %v5700_v18 = vunpack.i.l.bf16 %v5699_v43  ;;  %v5110_v15 = vld [vmem:[%s6366_s16 + $0x1e0] sm:$0xff]  ;;  %3864 = vmatpush.bf16.msra.mxu1 %v7919_v38  ;;  %v5292_v46 = vld [vmem:[%s10408_s1 + $0x10] sm:$0xff] }
 0x162   : > { %10936 = vst [vmem:[#allocation165_spill] sm:$0xff] %v7910_v41  ;;  %v2012_v50 = vrot.slane %v7939_v55, 1  ;;  %v2014_v36 = vrot.slane %v7944_v60, 1  ;;  %v7967_v43 = vsel %vm1453_vm4, %v7593_v37, %v5486_v59  ;;  %v2039_v37 = vrot.slane %v7400_v47, 2  ;;  %3696 = vmatpush.bf16.msra.mxu0 %v5292_v46  ;;  %5318 = vmatpush.bf16.msra.mxu3 %v5292_v46  ;;  %v10980_v41 = vld [vmem:[#allocation109_spill] sm:$0xff] }
 0x163   : > { %10937 = vst [vmem:[#allocation166_spill] sm:$0xff] %v7922_v54  ;;  %v2036_v54 = vrot.slane %v7397_v6, 2  ;;  %v1480_v59 = vsel %vm1453_vm4, %v7599_v12, %v5485_v1  ;;  %v7999_v47 = vsel %vm1453_vm4, %v7717_v23, %v5480_v22  ;;  %v8018_v23 = vld [vmem:[%s10408_s1 + $0x48] sm:$0xff]  ;;  %v5495_v22 = vunpack.i.l.bf16 %v7274_v31 }
 0x164   : > { %10938 = vst [vmem:[#allocation167_spill] sm:$0xff] %v7925_v61  ;;  %v5500_v61 = vunpack.i.l.bf16 %v7266_v2 }
 0x165   : > { %10939 = vst [vmem:[#allocation168_spill] sm:$0xff] %v7928_v58  ;;  %v7980_v58 = vsel %vm1453_vm4, %v1533_v10, %v5700_v18  ;;  %v5291_v10 = vld [vmem:[%s10408_s1 + $0x8] sm:$0xff]  ;;  %3865 = vmatpush.bf16.msra.mxu1 %v7963_v4 }
 0x166   : > { %10942 = vst [vmem:[#allocation29_spill] sm:$0xff] %v7936_v35  ;;  %v7974_v35 = vsel %vm1453_vm4, %v1534_v42, %v5701_v0  ;;  %v1738_v0 = vrot.slane %v5110_v15, 1  ;;  %v8012_v18 = vpop.permute.xlu2 %5713  ;;  %3697 = vmatpush.bf16.msra.mxu0 %v5291_v10  ;;  %5319 = vmatpush.bf16.msra.mxu3 %v5291_v10 }
 0x167   : > { %10943 = vst [vmem:[#allocation27_spill] sm:$0xff] %v7939_v55  ;;  %v7977_v55 = vsel %vm644_vm1, %v2012_v50, %v2014_v36  ;;  %v5108_v36 = vld [vmem:[%s6366_s16 + $0x1d0] sm:$0xff] }
 0x168   : > { %10944 = vst [vmem:[#allocation169_spill] sm:$0xff] %v7941_v11  ;;  %v7971_v11 = vsel %vm644_vm1, %v2011_v29, %v2012_v50  ;;  %v5501_v29 = vunpack.i.h.bf16 %v7266_v2  ;;  %v5111_v50 = vld [vmem:[%s6366_s16 + $0x1e8] sm:$0xff]  ;;  %v8003_v2 = vsel %vm1453_vm4, %v7713_v3, %v5481_v26  ;;  %v5496_v3 = vunpack.i.h.bf16 %v7274_v31 }
 0x169   : > { %10945 = vst [vmem:[#allocation170_spill] sm:$0xff] %v7944_v60  ;;  %v2037_v60 = vrot.slane %v7394_v44, 2  ;;  %v7989_v42 = vpack.i.bf16 %v7977_v55, %v7971_v11  ;;  %v1811_v46 = vrot.slane %v5108_v36, 7  ;;  %3866 = vmatpush.bf16.msra.mxu1 %v8018_v23 }
 0x16a   : > { %10946 = vst [vmem:[#allocation171_spill] sm:$0xff] %v7971_v11  ;;  %v1815_v11 = vrot.slane %v5111_v50, 7 }
 0x16b   : > { %10947 = vst [vmem:[#allocation172_spill] sm:$0xff] %v7974_v35  ;;  %v8006_v12 = vsel %vm720_vm2, %v2036_v54, %v2037_v60  ;;  %v8009_v1 = vsel %vm720_vm2, %v2037_v60, %v2039_v37  ;;  %5853 = vrot.lane.b32.xlu0 %v7989_v42, %s6295_s17  ;;  %v1814_v54 = vrot.slane %v5110_v15, 7  ;;  %v8029_v60 = vsel %vm1484_vm5, %v7779_v62, %v5500_v61  ;;  %v8053_v35 = vpop.permute.xlu1 %5663 }
 0x16c   : > { %10948 = vst [vmem:[#allocation173_spill] sm:$0xff] %v7977_v55  ;;  %v8025_v26 = vpack.i.bf16 %v8009_v1, %v8006_v12  ;;  %v5565_v37 = vunpack.i.l.bf16 %v7280_v34  ;;  %v1881_v55 = vrot.slane %v5111_v50, 5  ;;  %v1737_v15 = vrot.slane %v5108_v36, 1  ;;  %v8051_v50 = vpop.f32.mrf.mxu2 }
 0x16d   : > { %10949 = vst [vmem:[#allocation174_spill] sm:$0xff] %v7980_v58  ;;  %v8042_v62 = vsel %vm1484_vm5, %v7783_v7, %v5501_v29  ;;  %v8045_v31 = vsel %vm454_vm0, %v1814_v54, %v1815_v11  ;;  %v5290_v7 = vld [vmem:[%s10408_s1] sm:$0xff]  ;;  %v1880_v36 = vrot.slane %v5109_v30, 5 }
 0x16e   : > { %10950 = vst [vmem:[#allocation175_spill] sm:$0xff] %v7989_v42  ;;  %5878 = vrot.lane.b32.xlu2 %v8025_v26, %s6296_s22  ;;  %v8038_v42 = vsel %vm454_vm0, %v1738_v0, %v1814_v54  ;;  %v8048_v61 = vsel %vm454_vm0, %v1815_v11, %v1881_v55  ;;  %v8062_v29 = vld [vmem:[%s10408_s1 + $0x40] sm:$0xff]  ;;  %v2032_v55 = vrot.slane %v8045_v31, 1  ;;  %v1812_v0 = vrot.slane %v5109_v30, 7  ;;  %3698 = vmatpush.bf16.msra.mxu0 %v5290_v7 }
 0x16f   : > { %10951 = vst [vmem:[#allocation176_spill] sm:$0xff] %v8003_v2  ;;  %v2031_v34 = vrot.slane %v8038_v42, 1  ;;  %v2034_v11 = vrot.slane %v8048_v61, 1  ;;  %v8068_v54 = vsel %vm1484_vm5, %v7818_v21, %v5495_v22  ;;  %v8078_v58 = vsel %vm454_vm0, %v1737_v15, %v1811_v46  ;;  %v8101_v15 = vpop.permute.xlu2 %5728  ;;  %3867 = vmatpush.bf16.msra.mxu1 %v8062_v29  ;;  %5320 = vmatpush.bf16.msra.mxu3 %v5290_v7  ;;  %v10982_v2 = vld [vmem:[#allocation12_spill] sm:$0xff] }
 0x170   : > { %10952 = vst [vmem:[#allocation177_spill] sm:$0xff] %v8012_v18  ;;  %v8087_v10 = vsel %vm454_vm0, %v1811_v46, %v1812_v0  ;;  %v8090_v21 = vsel %vm454_vm0, %v1812_v0, %v1880_v36  ;;  %v5581_v0 = vunpack.i.h.bf16 %v7304_v17  ;;  %v5580_v36 = vunpack.i.l.bf16 %v7304_v17  ;;  %v10968_v46 = vld [vmem:[#allocation17_spill] sm:$0xff]  ;;  %v10984_v18 = vld [vmem:[#allocation11_spill] sm:$0xff] }
 0x171   : > { %10953 = vst [vmem:[#allocation178_spill] sm:$0xff] %v8038_v42  ;;  %v8075_v42 = vsel %vm1484_vm5, %v1480_v59, %v5565_v37  ;;  %v8084_v30 = vsel %vm644_vm1, %v2032_v55, %v2034_v11  ;;  %v2027_v22 = vrot.slane %v8087_v10, 1  ;;  %v2029_v37 = vrot.slane %v8090_v21, 1 }
 0x172   : > { %10954 = vst [vmem:[#allocation179_spill] sm:$0xff] %v8045_v31  ;;  %v8081_v31 = vsel %vm644_vm1, %v2031_v34, %v2032_v55  ;;  %v8106_v34 = vsel %vm1484_vm5, %v7967_v43, %v5566_v20  ;;  %v5510_v11 = vunpack.i.l.bf16 %v7300_v53  ;;  %v5596_v43 = vunpack.i.h.bf16 %v7363_v33  ;;  %v10969_v55 = vld [vmem:[#allocation94_spill] sm:$0xff] }
 0x173   : > { %10955 = vst [vmem:[#allocation180_spill] sm:$0xff] %v8048_v61  ;;  %v8096_v59 = vpack.i.bf16 %v8084_v30, %v8081_v31  ;;  %v8119_v20 = vsel %vm644_vm1, %v2027_v22, %v2029_v37  ;;  %5321 = vmatpush.bf16.msrb.mxu3 %v7670_v40  ;;  %v3187_v17 = vpack.c.b16 %v10968_v46, %v7464_v14  ;;  %v10972_v37 = vld [vmem:[#allocation95_spill] sm:$0xff]  ;;  %v8134_v40 = vpop.permute.xlu1 %5678  ;;  %v10975_v14 = vld [vmem:[#allocation30_spill] sm:$0xff]  ;;  %v2049_v61 = vrot.slane %v7502_v49, 2 }
 0x174   : > { %10956 = vst [vmem:[#allocation181_spill] sm:$0xff] %v8051_v50  ;;  %v8072_v50 = vsel %vm1484_vm5, %v7804_v28, %v5496_v3  ;;  %v8092_v28 = vpop.permute.xlu0 %5658  ;;  %v2026_v3 = vrot.slane %v8078_v58, 1  ;;  %v2047_v46 = vrot.slane %v10975_v14, 2  ;;  %v8151_v24 = vpop.f32.mrf.mxu2  ;;  %v8157_v49 = vsel %vm1422_vm3, %v10982_v2, %v5581_v0 }
 0x175   : > { %10957 = vst [vmem:[#allocation182_spill] sm:$0xff] %v8075_v42  ;;  %5873 = vrot.lane.b32.xlu1 %v8096_v59, %s6295_s17  ;;  %v2054_v42 = vrot.slane %v10972_v37, 2  ;;  %5200 = vmatmul.msk.bf16.gmra.mxu2 %vm1422_vm3, %v3187_v17 }
 0x176   : > { %10958 = vst [vmem:[#allocation183_spill] sm:$0xff] %v8078_v58 }
 0x177   : > { %10959 = vst [vmem:[#allocation184_spill] sm:$0xff] %v8081_v31  ;;  %v8116_v31 = vsel %vm644_vm1, %v2026_v3, %v2027_v22  ;;  %v10970_v3 = vld [vmem:[#allocation48_spill] sm:$0xff]  ;;  %5322 = vmatpush.bf16.msrb.mxu3 %v7775_v57  ;;  %v8171_v57 = vsel %vm720_vm2, %v2047_v46, %v2049_v61  ;;  %v5744_v0 = vpop.permute.xlu2 %5743 }
 0x178   : > { %10960 = vst [vmem:[#allocation185_spill] sm:$0xff] %v8084_v30  ;;  %v8125_v7 = vpack.i.bf16 %v8119_v20, %v8116_v31  ;;  %v2051_v30 = vrot.slane %v10969_v55, 2 }
 0x179   : > { %10961 = vst [vmem:[#allocation186_spill] sm:$0xff] %v8087_v10 }
 0x17a   : > { %10962 = vst [vmem:[#allocation187_spill] sm:$0xff] %v8090_v21  ;;  %v5611_v21 = vunpack.i.h.bf16 %v10970_v3  ;;  %5868 = vrot.lane.b32.xlu0 %v8125_v7, %s6295_s17 }
 0x17b   : > { %10963 = vst [vmem:[#allocation188_spill] sm:$0xff] %v8096_v59  ;;  %v5595_v59 = vunpack.i.l.bf16 %v7363_v33  ;;  %v10976_v33 = vld [vmem:[#allocation108_spill] sm:$0xff]  ;;  %5323 = vmatpush.bf16.msrb.mxu3 %v7835_v19 }
 0x17c   : > { %10964 = vst [vmem:[#allocation189_spill] sm:$0xff] %v8106_v34  ;;  %v10971_v34 = vld [vmem:[#allocation93_spill] sm:$0xff]  ;;  %v2041_v51 = vrot.slane %v10976_v33, 2 }
 0x17d   : > { %10965 = vst [vmem:[#allocation190_spill] sm:$0xff] %v8116_v31  ;;  %v2052_v22 = vrot.slane %v10971_v34, 2 }
 0x17e   : > { %10966 = vst [vmem:[#allocation191_spill] sm:$0xff] %v8119_v20  ;;  %v10974_v20 = vld [vmem:[#allocation63_spill] sm:$0xff] }
 0x17f   : > { %10967 = vst [vmem:[#allocation192_spill] sm:$0xff] %v8125_v7  ;;  %v2046_v31 = vrot.slane %v10974_v20, 2  ;;  %v8144_v10 = vsel %vm720_vm2, %v2051_v30, %v2052_v22  ;;  %v8147_v37 = vsel %vm720_vm2, %v2052_v22, %v2054_v42  ;;  %v2044_v7 = vrot.slane %v10980_v41, 2  ;;  %v5674_v22 = vpop.permute.xlu0 %5673  ;;  %5324 = vmatpush.bf16.msrb.mxu3 %v7875_v13 }
 0x180   : > { %10973 = vst [vmem:[#allocation17_spill] sm:$0xff] %v8134_v40  ;;  %v10979_v40 = vld [vmem:[#allocation107_spill] sm:$0xff]  ;;  %v8161_v30 = vpack.i.bf16 %v8147_v37, %v8144_v10  ;;  %v8168_v41 = vsel %vm1422_vm3, %v10984_v18, %v5580_v36  ;;  %v10990_v36 = vld [vmem:[#allocation33_spill] sm:$0xff] }
 0x181   : > { %10977 = vst [vmem:[#allocation94_spill] sm:$0xff] %v8144_v10  ;;  %v2042_v58 = vrot.slane %v10979_v40, 2  ;;  %v8164_v42 = vsel %vm720_vm2, %v2046_v31, %v2047_v46  ;;  %v5646_v10 = vunpack.i.h.bf16 %v7991_v48  ;;  %v10987_v31 = vld [vmem:[#allocation38_spill] sm:$0xff]  ;;  %v10992_v46 = vld [vmem:[#allocation105_spill] sm:$0xff] }
 0x182   : > { %10978 = vst [vmem:[#allocation48_spill] sm:$0xff] %v8147_v37  ;;  %5893 = vrot.lane.b32.xlu2 %v8161_v30, %s6296_s22  ;;  %v8182_v18 = vpack.i.bf16 %v8171_v57, %v8164_v42  ;;  %v8186_v61 = vsel %vm1484_vm5, %v10987_v31, %v5510_v11  ;;  %v5575_v37 = vunpack.i.l.bf16 %v10992_v46  ;;  %v5676_v11 = vunpack.i.h.bf16 %v5674_v22  ;;  %v10995_v48 = vld [vmem:[#allocation114_spill] sm:$0xff] }
 0x183   : > { %10981 = vst [vmem:[#allocation93_spill] sm:$0xff] %v8151_v24  ;;  %v2043_v17 = vsel %vm720_vm2, %v2041_v51, %v2042_v58  ;;  %v2045_v2 = vsel %vm720_vm2, %v2042_v58, %v2044_v7  ;;  %v10985_v24 = vld [vmem:[#allocation6_spill] sm:$0xff]  ;;  %v10989_v51 = vld [vmem:[#allocation5_spill] sm:$0xff]  ;;  %v8192_v7 = vsel %vm1422_vm3, %v10990_v36, %v5611_v21  ;;  %v5655_v21 = vunpack.i.l.bf16 %v7635_v5  ;;  %5325 = vmatpush.bf16.msrb.mxu3 %v7919_v38 }
 0x184   : > { %10983 = vst [vmem:[#allocation95_spill] sm:$0xff] %v8161_v30  ;;  %v1526_v53 = vsel %vm1422_vm3, %v10985_v24, %v5596_v43  ;;  %v1525_v58 = vsel %vm1422_vm3, %v10989_v51, %v5595_v59  ;;  %v5610_v24 = vunpack.i.l.bf16 %v10970_v3  ;;  %v5882_v43 = vpack.i.bf16 %v2045_v2, %v2043_v17  ;;  %5888 = vrot.lane.b32.xlu1 %v8182_v18, %s6296_s22  ;;  %v5694_v17 = vpop.permute.xlu1 %5693  ;;  %v10993_v2 = vld [vmem:[#allocation56_spill] sm:$0xff] }
 0x185   : > { %10986 = vst [vmem:[#allocation63_spill] sm:$0xff] %v8182_v18  ;;  %v5576_v30 = vunpack.i.h.bf16 %v10992_v46  ;;  %v5656_v59 = vunpack.i.h.bf16 %v7635_v5  ;;  %v5621_v31 = vunpack.i.h.bf16 %v7762_v63  ;;  %v5675_v3 = vunpack.i.l.bf16 %v5674_v22  ;;  %v10998_v18 = vld [vmem:[#allocation55_spill] sm:$0xff]  ;;  %5201 = vmatmul.msk.bf16.gmra.mxu2 %vm1422_vm3, %v7767_v45 }
 0x186   : > { %10988 = vst [vmem:[#allocation30_spill] sm:$0xff] %v8186_v61  ;;  %v1546_v19 = vsel %vm1422_vm3, %v10993_v2, %v5646_v10  ;;  %5883 = vrot.lane.b32.xlu0 %v5882_v43, %s6296_s22  ;;  %v8208_v51 = vsel %vm1453_vm4, %v1526_v53, %v5676_v11  ;;  %v2061_v36 = vrot.slane %v10995_v48, 2  ;;  %v10997_v61 = vld [vmem:[#allocation117_spill] sm:$0xff]  ;;  %v2056_v5 = vrot.slane %v7587_v25, 2  ;;  %v8233_v48 = vpop.f32.mrf.mxu2 }
 0x187   : > { %10991 = vst [vmem:[#allocation107_spill] sm:$0xff] %v8192_v7  ;;  %v8212_v46 = vsel %vm1453_vm4, %v1525_v58, %v5675_v3  ;;  %v10651_v7 = vrot.slane %v10997_v61, 2  ;;  %v2057_v22 = vrot.slane %v7580_v39, 2  ;;  %v1545_v10 = vsel %vm1422_vm3, %v10998_v18, %v5645_v9  ;;  %v8235_v9 = vpop.permute.xlu2 %5758  ;;  %5326 = vmatpush.bf16.msrb.mxu3 %v7963_v4 }
 0x188   : > { %10994 = vst [vmem:[#allocation109_spill] sm:$0xff] %v8208_v51  ;;  %v2059_v2 = vrot.slane %v7623_v52, 2  ;;  %v5746_v53 = vunpack.i.h.bf16 %v5744_v0  ;;  %v5745_v11 = vunpack.i.l.bf16 %v5744_v0  ;;  %v8221_v51 = vpop.permute.xlu0 %5688  ;;  %v5620_v58 = vunpack.i.l.bf16 %v7762_v63 }
 0x189   : > { %10996 = vst [vmem:[#allocation12_spill] sm:$0xff] %v8212_v46  ;;  %v5636_v3 = vunpack.i.h.bf16 %v7863_v56  ;;  %v8228_v46 = vsel %vm720_vm2, %v2061_v36, %v10651_v7  ;;  %v8231_v13 = vsel %vm720_vm2, %v2056_v5, %v2057_v22  ;;  %v5635_v52 = vunpack.i.l.bf16 %v7863_v56 }
 0x18a   : > { %10999 = vst [vmem:[#allocation11_spill] sm:$0xff] %v8228_v46  ;;  %5908 = vrot.lane.b32.xlu2 %v5882_v43, %s6295_s17  ;;  %v5902_v63 = vpack.i.bf16 %v7397_v6, %v8228_v46  ;;  %v8242_v0 = vsel %vm720_vm2, %v2057_v22, %v2059_v2  ;;  %v5696_v18 = vunpack.i.h.bf16 %v5694_v17  ;;  %v8249_v5 = vsel %vm1453_vm4, %v1545_v10, %v5745_v11  ;;  %v11003_v43 = vld [vmem:[#allocation31_spill] sm:$0xff]  ;;  %v11004_v22 = vld [vmem:[#allocation25_spill] sm:$0xff]  ;;  %v11006_v10 = vld [vmem:[#allocation98_spill] sm:$0xff] }
 0x18b   : > { %11000 = vst [vmem:[#allocation6_spill] sm:$0xff] %v8233_v48  ;;  %v8246_v36 = vpack.i.bf16 %v8242_v0, %v8231_v13  ;;  %v8252_v7 = vsel %vm1453_vm4, %v1546_v19, %v5746_v53  ;;  %v5695_v56 = vunpack.i.l.bf16 %v5694_v17  ;;  %v8257_v48 = vsel %vm1422_vm3, %v11003_v43, %v5610_v24  ;;  %v11007_v53 = vld [vmem:[#allocation51_spill] sm:$0xff]  ;;  %5327 = vmatpush.bf16.msrb.mxu3 %v8018_v23 }
 0x18c   : > { %11001 = vst [vmem:[#allocation38_spill] sm:$0xff] %v8235_v9  ;;  %v1518_v2 = vsel %vm1422_vm3, %v11004_v22, %v5576_v30  ;;  %v11005_v9 = vld [vmem:[#allocation23_spill] sm:$0xff]  ;;  %5903 = vrot.lane.b32.xlu1 %v5902_v63, %s6296_s22  ;;  %v1536_v24 = vsel %vm1422_vm3, %v11007_v53, %v5621_v31  ;;  %v5709_v11 = vpop.permute.xlu1 %5708  ;;  %v11008_v30 = vld [vmem:[#allocation49_spill] sm:$0xff]  ;;  %v11010_v31 = vld [vmem:[#allocation64_spill] sm:$0xff]  ;;  %v5917_v45 = vpack.i.bf16 %v10979_v40, %v10976_v33 }
 0x18d   : > { %11002 = vst [vmem:[#allocation5_spill] sm:$0xff] %v8242_v0  ;;  %v1517_v46 = vsel %vm1422_vm3, %v11005_v9, %v5575_v37  ;;  %v5631_v0 = vunpack.i.h.bf16 %v7895_v8  ;;  %v1550_v38 = vsel %vm1453_vm4, %v1518_v2, %v5656_v59  ;;  %v1535_v22 = vsel %vm1422_vm3, %v11008_v30, %v5620_v58 }
 0x18e   : > { %v1549_v17 = vsel %vm1453_vm4, %v1517_v46, %v5655_v21  ;;  %v2928_v37 = vpack.c.bf16 %v8009_v1, %v8009_v1  ;;  %5898 = vrot.lane.b32.xlu0 %v8246_v36, %s6296_s22  ;;  %v11009_v21 = vld [vmem:[#allocation65_spill] sm:$0xff]  ;;  %v1541_v46 = vsel %vm1422_vm3, %v11010_v31, %v5635_v52  ;;  %v1582_v58 = vsel %vm1484_vm5, %v1550_v38, %v5696_v18  ;;  %v11011_v1 = vld [vmem:[#allocation42_spill] sm:$0xff] }
 0x18f   : > { %v8281_v59 = vsel %vm1422_vm3, %v11009_v21, %v5636_v3  ;;  %v1581_v9 = vsel %vm1484_vm5, %v1549_v17, %v5695_v56  ;;  %v1540_v63 = vsel %vm1422_vm3, %v11011_v1, %v5631_v0  ;;  %v5630_v2 = vunpack.i.l.bf16 %v7895_v8  ;;  %v5774_v17 = vpop.permute.xlu2 %5773  ;;  %v11012_v0 = vld [vmem:[#allocation99_spill] sm:$0xff]  ;;  %5328 = vmatpush.bf16.msrb.mxu3 %v8062_v29 }
 0x190   : > { %v5704_v53 = vpop.permute.xlu0 %5703  ;;  %v1613_v3 = vpack.c.bf16 %v1581_v9, %v8068_v54  ;;  %v2926_v52 = vpack.c.bf16 %v8006_v12, %v8006_v12  ;;  %v1615_v18 = vpack.c.bf16 %v1582_v58, %v8072_v50  ;;  %v8297_v4 = vunpack.c.l.b16 %v2928_v37  ;;  %v8305_v12 = vpop.f32.mrf.mxu2 }
 0x191   : > { %v5706_v30 = vunpack.i.h.bf16 %v5704_v53  ;;  %v5705_v56 = vunpack.i.l.bf16 %v5704_v53  ;;  %v5912_v8 = vpack.i.bf16 %v10974_v20, %v7394_v44  ;;  %v5661_v54 = vunpack.i.h.bf16 %v8092_v28  ;;  %11013 = vst [vmem:[#allocation33_spill] sm:$0xff] %v8305_v12 }
 0x192   : > { %5923 = vrot.lane.b32.xlu2 %v11012_v0, %s6297_s23  ;;  %v3049_v38 = vunpack.c.l.b16 %v1613_v3  ;;  %v3050_v21 = vunpack.c.h.b16 %v1613_v3  ;;  %v5660_v31 = vunpack.i.l.bf16 %v8092_v28  ;;  %v3052_v9 = vunpack.c.l.b16 %v1615_v18 }
 0x193   : > { %v3053_v1 = vunpack.c.h.b16 %v1615_v18  ;;  %v5711_v50 = vunpack.i.h.bf16 %v5709_v11  ;;  %v5710_v37 = vunpack.i.l.bf16 %v5709_v11  ;;  %v5776_v58 = vunpack.i.h.bf16 %v5774_v17  ;;  %v11016_v18 = vld [vmem:[#allocation40_spill] sm:$0xff] }
 0x194   : > { %5918 = vrot.lane.b32.xlu1 %v5917_v45, %s6297_s23  ;;  %v5775_v53 = vunpack.i.l.bf16 %v5774_v17  ;;  %v1568_v0 = vsel %vm1453_vm4, %v1536_v24, %v5706_v30  ;;  %v1567_v3 = vsel %vm1453_vm4, %v1535_v22, %v5705_v56  ;;  %v3143_v43 = vpack.c.b16 %v3052_v9, %v3049_v38  ;;  %v8311_v33 = vpop.permute.xlu1 %5723 }
 0x195   : > { %v3144_v19 = vpack.c.b16 %v3053_v1, %v3050_v21  ;;  %v3286_v28 = vunpack.c.l.b16 %v2926_v52  ;;  %v5937_v23 = vpack.i.bf16 %v7394_v44, %v7397_v6  ;;  %v8320_v11 = vsel %vm1484_vm5, %v1568_v0, %v5776_v58 }
 0x196   : > { %5913 = vrot.lane.b32.xlu0 %v5912_v8, %s6296_s22  ;;  %v8317_v45 = vsel %vm1484_vm5, %v1567_v3, %v5775_v53  ;;  %11015 = vst [vmem:[#allocation56_spill] sm:$0xff] %v8320_v11  ;;  %v1539_v24 = vsel %vm1422_vm3, %v11016_v18, %v5630_v2  ;;  %v5651_v22 = vunpack.i.h.bf16 %v7952_v16  ;;  %v5731_v30 = vunpack.i.h.bf16 %v8101_v15  ;;  %3699 = vmatmul.bf16.vlgmr.msra.gmra.mxu0 %v3143_v43  ;;  %v11061_v11 = vld [vmem:[#allocation157_spill] sm:$0xff] }
 0x197   : > { %11014 = vst [vmem:[#allocation105_spill] sm:$0xff] %v8317_v45  ;;  %v5730_v52 = vunpack.i.l.bf16 %v8101_v15  ;;  %3868 = vmatmul.bf16.vlgmr.msra.gmra.mxu1 %v3144_v19  ;;  %v5650_v56 = vunpack.i.l.bf16 %v7952_v16  ;;  %v1552_v17 = vsel %vm1453_vm4, %v8157_v49, %v5661_v54  ;;  %v1551_v8 = vsel %vm1453_vm4, %v8168_v41, %v5660_v31  ;;  %v5789_v9 = vpop.permute.xlu2 %5788 }
 0x198   : > { %v5932_v38 = vpack.i.bf16 %v10969_v55, %v10975_v14  ;;  %v5719_v2 = vpop.permute.xlu0 %5718  ;;  %v1583_v21 = vsel %vm1484_vm5, %v1551_v8, %v5710_v37  ;;  %v1584_v15 = vsel %vm1484_vm5, %v1552_v17, %v5711_v50  ;;  %v3380_v16 = vpack.c.b16 %v8297_v4, %v3286_v28  ;;  %v8359_v53 = vpop.f32.mrf.mxu2  ;;  %v11022_v28 = vld [vmem:[#allocation97_spill] sm:$0xff]  ;;  %v11025_v8 = vld [vmem:[#allocation100_spill] sm:$0xff] }
 0x199   : > { %v5721_v43 = vunpack.i.h.bf16 %v5719_v2  ;;  %v5720_v19 = vunpack.i.l.bf16 %v5719_v2  ;;  %v5791_v49 = vunpack.i.h.bf16 %v5789_v9  ;;  %v5790_v54 = vunpack.i.l.bf16 %v5789_v9  ;;  %11019 = vst [vmem:[#allocation55_spill] sm:$0xff] %v8359_v53  ;;  %v11024_v17 = vld [vmem:[#allocation101_spill] sm:$0xff] }
 0x19a   : > { %5938 = vrot.lane.b32.xlu2 %v5937_v23, %s6297_s23  ;;  %v1573_v41 = vsel %vm1453_vm4, %v1541_v46, %v5730_v52  ;;  %v1574_v31 = vsel %vm1453_vm4, %v8281_v59, %v5731_v30  ;;  %v11017_v50 = vunpack.i.h.bf16 %v11006_v10  ;;  %v11018_v4 = vunpack.i.l.bf16 %v11006_v10  ;;  %5202 = vmatmul.msk.bf16.gmra.mxu2 %vm1422_vm3, %v3380_v16  ;;  %v11023_v52 = vld [vmem:[#allocation102_spill] sm:$0xff]  ;;  %v11052_v53 = vld [vmem:[#allocation141_spill] sm:$0xff] }
 0x19b   : > { %v8343_v29 = vsel %vm1453_vm4, %v1539_v24, %v5720_v19  ;;  %v8346_v1 = vsel %vm1453_vm4, %v1540_v63, %v5721_v43  ;;  %v1605_v59 = vsel %vm1484_vm5, %v1573_v41, %v5790_v54  ;;  %v1606_v46 = vsel %vm1484_vm5, %v1574_v31, %v5791_v49 }
 0x19c   : > { %v1510_v37 = vsel %vm1484_vm5, %v7721_v27, %v11017_v50  ;;  %v1509_v58 = vsel %vm1484_vm5, %v7755_v32, %v11018_v4  ;;  %5933 = vrot.lane.b32.xlu1 %v5932_v38, %s6296_s22  ;;  %v8365_v3 = vpop.permute.xlu1 %5738  ;;  %v1617_v27 = vpack.c.bf16 %v1583_v21, %v8029_v60  ;;  %v1619_v10 = vpack.c.bf16 %v1584_v15, %v8042_v62 }
 0x19d   : > { %v8361_v63 = vpack.c.bf16 %v1605_v59, %v1509_v58  ;;  %v8363_v0 = vpack.c.bf16 %v1606_v46, %v1510_v37  ;;  %v5561_v32 = vunpack.i.h.bf16 %v11022_v28  ;;  %v5952_v23 = vpack.i.bf16 %v7587_v25, %v10971_v34  ;;  %v11027_v58 = vld [vmem:[#allocation45_spill] sm:$0xff]  ;;  %v11028_v46 = vld [vmem:[#allocation119_spill] sm:$0xff] }
 0x19e   : > { %5928 = vrot.lane.b32.xlu0 %v8025_v26, %s6295_s17  ;;  %v10658_v18 = vunpack.i.h.bf16 %v8365_v3  ;;  %v10657_v24 = vunpack.i.l.bf16 %v8365_v3  ;;  %v5560_v30 = vunpack.i.l.bf16 %v11022_v28  ;;  %v5625_v60 = vunpack.i.l.bf16 %v11023_v52  ;;  %v11026_v26 = vld [vmem:[#allocation123_spill] sm:$0xff]  ;;  %v11030_v28 = vld [vmem:[#allocation9_spill] sm:$0xff] }
 0x19f   : > { %11020 = vst [vmem:[#allocation31_spill] sm:$0xff] %v8361_v63  ;;  %v1548_v62 = vsel %vm1422_vm3, %v11024_v17, %v5651_v22  ;;  %v1547_v38 = vsel %vm1422_vm3, %v11025_v8, %v5650_v56  ;;  %v5586_v2 = vunpack.i.h.bf16 %v11026_v26  ;;  %v3055_v19 = vunpack.c.l.b16 %v1617_v27  ;;  %v8396_v49 = vpop.permute.xlu2 %5803  ;;  %v11031_v17 = vld [vmem:[#allocation8_spill] sm:$0xff] }
 0x1a0   : > { %11021 = vst [vmem:[#allocation25_spill] sm:$0xff] %v8363_v0  ;;  %v8387_v21 = vsel %vm1453_vm4, %v1547_v38, %v10657_v24  ;;  %v8392_v15 = vsel %vm1453_vm4, %v1548_v62, %v10658_v18  ;;  %v8394_v43 = vpop.permute.xlu0 %5733  ;;  %v3058_v9 = vunpack.c.l.b16 %v1619_v10  ;;  %v3056_v22 = vunpack.c.h.b16 %v1617_v27  ;;  %v11032_v38 = vld [vmem:[#allocation57_spill] sm:$0xff]  ;;  %v11045_v18 = vld [vmem:[#allocation115_spill] sm:$0xff] }
 0x1a1   : > { %v3059_v16 = vunpack.c.h.b16 %v1619_v10  ;;  %v5585_v56 = vunpack.i.l.bf16 %v11026_v26  ;;  %v2932_v54 = vpack.c.bf16 %v8171_v57, %v8171_v57  ;;  %v2930_v41 = vpack.c.bf16 %v8164_v42, %v8164_v42  ;;  %v11029_v10 = vld [vmem:[#allocation63_spill] sm:$0xff] }
 0x1a2   : > { %5953 = vrot.lane.b32.xlu2 %v5952_v23, %s6296_s22  ;;  %v8406_v31 = vsel %vm1484_vm5, %v7999_v47, %v5560_v30  ;;  %v5626_v50 = vunpack.i.h.bf16 %v11023_v52  ;;  %v5666_v37 = vunpack.i.h.bf16 %v8053_v35  ;;  %v5665_v4 = vunpack.i.l.bf16 %v8053_v35 }
 0x1a3   : > { %v1537_v59 = vsel %vm1422_vm3, %v11027_v58, %v5625_v60  ;;  %v5591_v57 = vunpack.i.h.bf16 %v11028_v46  ;;  %v5726_v27 = vunpack.i.h.bf16 %v8311_v33  ;;  %v5725_v42 = vunpack.i.l.bf16 %v8311_v33  ;;  %v11033_v33 = vld [vmem:[#allocation61_spill] sm:$0xff] }
 0x1a4   : > { %5948 = vrot.lane.b32.xlu1 %v11029_v10, %s6295_s17  ;;  %v5590_v47 = vunpack.i.l.bf16 %v11028_v46  ;;  %v1522_v23 = vsel %vm1422_vm3, %v11030_v28, %v5586_v2  ;;  %v3146_v30 = vpack.c.b16 %v3058_v9, %v3055_v19  ;;  %v3147_v52 = vpack.c.b16 %v3059_v16, %v3056_v22  ;;  %v8421_v35 = vpop.permute.xlu1 %5753  ;;  %v8431_v19 = vpop.f32.mrf.mxu2  ;;  %v11035_v9 = vld [vmem:[#allocation177_spill] sm:$0xff]  ;;  %v11036_v10 = vld [vmem:[#allocation48_spill] sm:$0xff] }
 0x1a5   : > { %v1521_v60 = vsel %vm1422_vm3, %v11031_v17, %v5585_v56  ;;  %v3295_v62 = vunpack.c.l.b16 %v2932_v54  ;;  %v3292_v8 = vunpack.c.l.b16 %v2930_v41  ;;  %v5671_v26 = vunpack.i.h.bf16 %v11033_v33  ;;  %11034 = vst [vmem:[#allocation23_spill] sm:$0xff] %v8431_v19  ;;  %v11037_v17 = vld [vmem:[#allocation94_spill] sm:$0xff] }
 0x1a6   : > { %5943 = vrot.lane.b32.xlu0 %v11032_v38, %s6297_s23  ;;  %v5670_v58 = vunpack.i.l.bf16 %v11033_v33  ;;  %v1553_v46 = vsel %vm1453_vm4, %v1521_v60, %v5665_v4  ;;  %v1554_v2 = vsel %vm1453_vm4, %v1522_v23, %v5666_v37  ;;  %3704 = vmatmul.bf16.gmra.mxu0 %v3146_v30  ;;  %v5715_v22 = vunpack.i.l.bf16 %v11035_v9  ;;  %v11038_v30 = vld [vmem:[#allocation176_spill] sm:$0xff]  ;;  %v11040_v60 = vld [vmem:[#allocation95_spill] sm:$0xff] }
 0x1a7   : > { %3873 = vmatmul.bf16.gmra.mxu1 %v3147_v52  ;;  %v1585_v16 = vsel %vm1484_vm5, %v1553_v46, %v5725_v42  ;;  %v1586_v56 = vsel %vm1484_vm5, %v1554_v2, %v5726_v27  ;;  %v5716_v41 = vunpack.i.h.bf16 %v11035_v9  ;;  %v2936_v28 = vpack.c.bf16 %v11036_v10, %v11036_v10  ;;  %v8442_v23 = vpop.permute.xlu2 %5818  ;;  %v11039_v42 = vld [vmem:[#allocation47_spill] sm:$0xff]  ;;  %v11042_v9 = vld [vmem:[#allocation18_spill] sm:$0xff] }
 0x1a8   : > { %v5749_v54 = vpop.permute.xlu0 %5748  ;;  %v2934_v4 = vpack.c.bf16 %v11037_v17, %v11037_v17  ;;  %v5691_v37 = vunpack.i.h.bf16 %v8221_v51  ;;  %v8446_v52 = vsel %vm1484_vm5, %v11038_v30, %v5561_v32  ;;  %v1538_v27 = vsel %vm1422_vm3, %v11039_v42, %v5626_v50  ;;  %v11041_v46 = vld [vmem:[#allocation19_spill] sm:$0xff]  ;;  %v11043_v17 = vld [vmem:[#allocation164_spill] sm:$0xff]  ;;  %v11044_v32 = vld [vmem:[#allocation165_spill] sm:$0xff] }
 0x1a9   : > { %v5957_v38 = vpack.i.bf16 %v10975_v14, %v10974_v20  ;;  %v3383_v33 = vpack.c.b16 %v3295_v62, %v3292_v8  ;;  %v1524_v2 = vsel %vm1422_vm3, %v11041_v46, %v5591_v57  ;;  %v1523_v10 = vsel %vm1422_vm3, %v11042_v9, %v5590_v47  ;;  %v11046_v62 = vld [vmem:[#allocation43_spill] sm:$0xff]  ;;  %v11048_v9 = vld [vmem:[#allocation174_spill] sm:$0xff] }
 0x1aa   : > { %5968 = vrot.lane.b32.xlu2 %v11040_v60, %s6295_s17  ;;  %v1621_v24 = vpack.c.bf16 %v1585_v16, %v11043_v17  ;;  %v1623_v30 = vpack.c.bf16 %v1586_v56, %v11044_v32  ;;  %v1555_v50 = vsel %vm1453_vm4, %v1523_v10, %v5670_v58  ;;  %v1556_v42 = vsel %vm1453_vm4, %v1524_v2, %v5671_v26  ;;  %v11047_v16 = vld [vmem:[#allocation107_spill] sm:$0xff] }
 0x1ab   : > { %v8464_v60 = vsel %vm1453_vm4, %v1537_v59, %v5715_v22  ;;  %v8469_v57 = vsel %vm1453_vm4, %v1538_v27, %v5716_v41  ;;  %v8471_v47 = vunpack.c.l.b16 %v2936_v28  ;;  %v8473_v8 = vunpack.c.l.b16 %v2934_v4  ;;  %5203 = vmatmul.msk.bf16.gmra.mxu2 %vm1422_vm3, %v3383_v33 }
 0x1ac   : > { %5963 = vrot.lane.b32.xlu1 %v11046_v62, %s6297_s23  ;;  %v1564_v56 = vsel %vm1453_vm4, %v11047_v16, %v5691_v37  ;;  %v5769_v46 = vpop.permute.xlu1 %5768  ;;  %v5690_v58 = vunpack.i.l.bf16 %v8221_v51  ;;  %v5736_v22 = vunpack.i.h.bf16 %v8394_v43  ;;  %v5977_v41 = vpack.i.bf16 %v10971_v34, %v10969_v55  ;;  %v11049_v51 = vld [vmem:[#allocation172_spill] sm:$0xff]  ;;  %v8491_v10 = vpop.f32.mrf.mxu2 }
 0x1ad   : > { %v5771_v59 = vunpack.i.h.bf16 %v5769_v46  ;;  %v5770_v26 = vunpack.i.l.bf16 %v5769_v46  ;;  %v3061_v28 = vunpack.c.l.b16 %v1621_v24  ;;  %v3064_v4 = vunpack.c.l.b16 %v1623_v30  ;;  %11050 = vst [vmem:[#allocation98_spill] sm:$0xff] %v8491_v10 }
 0x1ae   : > { %5958 = vrot.lane.b32.xlu0 %v5957_v38, %s6297_s23  ;;  %v5751_v27 = vunpack.i.h.bf16 %v5749_v54  ;;  %v5750_v2 = vunpack.i.l.bf16 %v5749_v54  ;;  %v3062_v62 = vunpack.c.h.b16 %v1621_v24  ;;  %v3065_v16 = vunpack.c.h.b16 %v1623_v30 }
 0x1af   : > { %v8485_v37 = vsel %vm1484_vm5, %v11048_v9, %v5770_v26  ;;  %v8489_v38 = vsel %vm1484_vm5, %v11049_v51, %v5771_v59  ;;  %v8493_v46 = vpop.permute.xlu2 %5833  ;;  %v1563_v54 = vsel %vm1453_vm4, %v8257_v48, %v5690_v58  ;;  %v11053_v26 = vld [vmem:[#allocation114_spill] sm:$0xff]  ;;  %v5997_v59 = vpack.i.bf16 %v7580_v39, %v7587_v25  ;;  %v11054_v51 = vld [vmem:[#allocation111_spill] sm:$0xff] }
 0x1b0   : > { %v5764_v33 = vpop.permute.xlu0 %5763  ;;  %11051 = vst [vmem:[#allocation51_spill] sm:$0xff] %v8493_v46  ;;  %v5972_v9 = vpack.i.bf16 %v11053_v26, %v7580_v39  ;;  %v5992_v12 = vpack.i.bf16 %v11054_v51, %v10997_v61  ;;  %v5735_v24 = vunpack.i.l.bf16 %v8394_v43  ;;  %v1588_v48 = vsel %vm1484_vm5, %v1556_v42, %v5736_v22  ;;  %v11056_v46 = vld [vmem:[#allocation109_spill] sm:$0xff] }
 0x1b1   : > { %v5766_v17 = vunpack.i.h.bf16 %v5764_v33  ;;  %v5765_v32 = vunpack.i.l.bf16 %v5764_v33  ;;  %v1590_v10 = vsel %vm1484_vm5, %v11056_v46, %v5751_v27  ;;  %v3386_v19 = vpack.c.b16 %v8471_v47, %v8473_v8  ;;  %v11063_v46 = vld [vmem:[#allocation156_spill] sm:$0xff] }
 0x1b2   : > { %5983 = vrot.lane.b32.xlu2 %v11052_v53, %s6297_s23  ;;  %v11055_v53 = vld [vmem:[#allocation12_spill] sm:$0xff]  ;;  %v3149_v43 = vpack.c.b16 %v3064_v4, %v3061_v28  ;;  %v3150_v0 = vpack.c.b16 %v3065_v16, %v3062_v62  ;;  %v5640_v8 = vunpack.i.l.bf16 %v11045_v18  ;;  %v1587_v28 = vsel %vm1484_vm5, %v1555_v50, %v5735_v24 }
 0x1b3   : > { %v8507_v30 = vsel %vm1484_vm5, %v1563_v54, %v5765_v32  ;;  %v8510_v33 = vsel %vm1484_vm5, %v1564_v56, %v5766_v17  ;;  %v1589_v58 = vsel %vm1484_vm5, %v11055_v53, %v5750_v2  ;;  %v11057_v54 = vld [vmem:[#allocation183_spill] sm:$0xff]  ;;  %v11058_v56 = vld [vmem:[#allocation186_spill] sm:$0xff]  ;;  %v11059_v2 = vld [vmem:[#allocation76_spill] sm:$0xff]  ;;  %v5756_v45 = vunpack.i.h.bf16 %v8421_v35 }
 0x1b4   : > { %5978 = vrot.lane.b32.xlu1 %v5977_v41, %s6297_s23  ;;  %v5784_v32 = vpop.permute.xlu1 %5783  ;;  %v2101_v63 = vrot.slane %v11057_v54, 2  ;;  %v10662_v17 = vrot.slane %v11058_v56, 2  ;;  %v11060_v53 = vunpack.i.l.bf16 %v11059_v2  ;;  %v11062_v41 = vunpack.i.h.bf16 %v11059_v2  ;;  %v11089_v54 = vld [vmem:[#allocation189_spill] sm:$0xff] }
 0x1b5   : > { %v5786_v42 = vunpack.i.h.bf16 %v5784_v32  ;;  %v5785_v22 = vunpack.i.l.bf16 %v5784_v32  ;;  %v11066_v32 = vld [vmem:[#allocation118_spill] sm:$0xff] }
 0x1b6   : > { %5973 = vrot.lane.b32.xlu0 %v5972_v9, %s6296_s22  ;;  %v1493_v27 = vsel %vm1484_vm5, %v11061_v11, %v11060_v53  ;;  %v1494_v47 = vsel %vm1484_vm5, %v11063_v46, %v11062_v41  ;;  %3709 = vmatmul.bf16.gmra.mxu0 %v3149_v43  ;;  %v2064_v2 = vrot.slane %v11066_v32, 2  ;;  %v11067_v53 = vld [vmem:[#allocation21_spill] sm:$0xff]  ;;  %v11069_v46 = vld [vmem:[#allocation20_spill] sm:$0xff]  ;;  %v11072_v43 = vld [vmem:[#allocation30_spill] sm:$0xff] }
 0x1b7   : > { %3878 = vmatmul.bf16.gmra.mxu1 %v3150_v0  ;;  %v1629_v4 = vpack.c.bf16 %v1589_v58, %v1493_v27  ;;  %v1631_v62 = vpack.c.bf16 %v1590_v10, %v1494_v47  ;;  %v8535_v16 = vsel %vm1484_vm5, %v8343_v29, %v5785_v22  ;;  %v8539_v11 = vsel %vm1484_vm5, %v8346_v1, %v5786_v42  ;;  %v8552_v1 = vpop.permute.xlu2 %5848  ;;  %v8555_v47 = vpop.f32.mrf.mxu2 }
 0x1b8   : > { %11064 = vst [vmem:[#allocation49_spill] sm:$0xff] %v8535_v16  ;;  %v5779_v9 = vpop.permute.xlu0 %5778  ;;  %v11068_v41 = vunpack.i.h.bf16 %v11067_v53  ;;  %v8550_v29 = vsel %vm720_vm2, %v2101_v63, %v10662_v17  ;;  %v1625_v42 = vpack.c.bf16 %v1587_v28, %v11072_v43  ;;  %v11076_v53 = vunpack.i.h.bf16 %v11045_v18  ;;  %v11081_v18 = vld [vmem:[#allocation110_spill] sm:$0xff] }
 0x1b9   : > { %11065 = vst [vmem:[#allocation65_spill] sm:$0xff] %v8539_v11  ;;  %v5781_v24 = vunpack.i.h.bf16 %v5779_v9  ;;  %v5780_v0 = vunpack.i.l.bf16 %v5779_v9  ;;  %v3073_v58 = vunpack.c.l.b16 %v1629_v4  ;;  %v3076_v10 = vunpack.c.l.b16 %v1631_v62 }
 0x1ba   : > { %v1492_v50 = vsel %vm1484_vm5, %v11069_v46, %v11068_v41  ;;  %5998 = vrot.lane.b32.xlu2 %v5997_v59, %s6297_s23  ;;  %11070 = vst [vmem:[#allocation64_spill] sm:$0xff] %v8550_v29  ;;  %v3074_v27 = vunpack.c.h.b16 %v1629_v4  ;;  %v3077_v63 = vunpack.c.h.b16 %v1631_v62  ;;  %v11077_v41 = vld [vmem:[#allocation62_spill] sm:$0xff]  ;;  %v2938_v46 = vpack.c.bf16 %v8231_v13, %v8231_v13 }
 0x1bb   : > { %11071 = vst [vmem:[#allocation42_spill] sm:$0xff] %v8552_v1  ;;  %v1627_v22 = vpack.c.bf16 %v1588_v48, %v1492_v50  ;;  %v8559_v9 = vsel %vm1484_vm5, %v8469_v57, %v5781_v24  ;;  %v8563_v59 = vsel %vm1484_vm5, %v8464_v60, %v5780_v0  ;;  %v8565_v32 = vpack.c.b16 %v3076_v10, %v3073_v58  ;;  %v11078_v48 = vld [vmem:[#allocation60_spill] sm:$0xff]  ;;  %v11080_v50 = vld [vmem:[#allocation5_spill] sm:$0xff]  ;;  %v11082_v58 = vld [vmem:[#allocation178_spill] sm:$0xff] }
 0x1bc   : > { %11073 = vst [vmem:[#allocation99_spill] sm:$0xff] %v8555_v47  ;;  %v1544_v28 = vsel %vm1422_vm3, %v11077_v41, %v11076_v53  ;;  %v1543_v4 = vsel %vm1422_vm3, %v11078_v48, %v5640_v8  ;;  %5993 = vrot.lane.b32.xlu1 %v5992_v12, %s6296_s22  ;;  %v11079_v57 = vrot.slane %v10997_v61, 2  ;;  %v2940_v62 = vpack.c.bf16 %v11080_v50, %v11080_v50  ;;  %v5799_v0 = vpop.permute.xlu1 %5798  ;;  %v11084_v53 = vld [vmem:[#allocation180_spill] sm:$0xff]  ;;  %v11086_v50 = vld [vmem:[#allocation11_spill] sm:$0xff] }
 0x1bd   : > { %11074 = vst [vmem:[#allocation40_spill] sm:$0xff] %v8559_v9  ;;  %v6012_v24 = vpack.i.bf16 %v8550_v29, %v11081_v18  ;;  %v2106_v10 = vrot.slane %v11082_v58, 2  ;;  %v8586_v8 = vpack.c.b16 %v3077_v63, %v3074_v27  ;;  %5204 = vmatmul.msk.bf16.gmra.mxu2 %vm1422_vm3, %v3386_v19  ;;  %v5801_v13 = vunpack.i.h.bf16 %v5799_v0  ;;  %v11087_v29 = vld [vmem:[#allocation182_spill] sm:$0xff] }
 0x1be   : > { %11075 = vst [vmem:[#allocation97_spill] sm:$0xff] %v8563_v59  ;;  %v8579_v60 = vsel %vm720_vm2, %v11079_v57, %v2064_v2  ;;  %5988 = vrot.lane.b32.xlu0 %v8246_v36, %s6295_s17  ;;  %v5800_v12 = vunpack.i.l.bf16 %v5799_v0  ;;  %v11083_v2 = vld [vmem:[#allocation179_spill] sm:$0xff]  ;;  %v2109_v41 = vrot.slane %v11084_v53, 2  ;;  %v11085_v48 = vunpack.i.h.bf16 %v8365_v3 }
 0x1bf   : > { %v2107_v43 = vrot.slane %v11083_v2, 2  ;;  %v6007_v17 = vpack.i.bf16 %v8579_v60, %v11086_v50  ;;  %v3067_v27 = vunpack.c.l.b16 %v1625_v42  ;;  %v3070_v63 = vunpack.c.l.b16 %v1627_v22 }
 0x1c0   : > { %v1576_v57 = vsel %vm1453_vm4, %v1544_v28, %v11085_v48  ;;  %v1609_v36 = vsel %vm1484_vm5, %v8249_v5, %v5800_v12  ;;  %v1610_v19 = vsel %vm1484_vm5, %v8252_v7, %v5801_v13  ;;  %v5794_v0 = vpop.permute.xlu0 %5793  ;;  %v3068_v1 = vunpack.c.h.b16 %v1625_v42  ;;  %v11103_v13 = vld [vmem:[#allocation4_spill] sm:$0xff] }
 0x1c1   : > { %v3071_v47 = vunpack.c.h.b16 %v1627_v22  ;;  %v8603_v53 = vpack.c.bf16 %v1609_v36, %v11087_v29  ;;  %v8606_v11 = vpack.c.bf16 %v1610_v19, %v11089_v54  ;;  %v5796_v28 = vunpack.i.h.bf16 %v5794_v0 }
 0x1c2   : > { %v5795_v48 = vunpack.i.l.bf16 %v5794_v0  ;;  %v11091_v16 = vunpack.i.l.bf16 %v8365_v3  ;;  %6013 = vrot.lane.b32.xlu2 %v6012_v24, %s6296_s22  ;;  %v8613_v5 = vsel %vm720_vm2, %v2106_v10, %v2107_v43  ;;  %v8616_v7 = vsel %vm720_vm2, %v2107_v43, %v2109_v41  ;;  %v11104_v43 = vld [vmem:[#allocation66_spill] sm:$0xff] }
 0x1c3   : > { %11088 = vst [vmem:[#allocation102_spill] sm:$0xff] %v8603_v53  ;;  %v1608_v29 = vsel %vm1484_vm5, %v1576_v57, %v5796_v28  ;;  %v8621_v54 = vsel %vm1484_vm5, %v8392_v15, %v5796_v28  ;;  %v11105_v41 = vunpack.i.h.bf16 %v11104_v43  ;;  %v11106_v57 = vld [vmem:[#allocation89_spill] sm:$0xff]  ;;  %v3153_v19 = vpack.c.b16 %v3071_v47, %v3068_v1  ;;  %v11109_v28 = vld [vmem:[#allocation90_spill] sm:$0xff]  ;;  %v11111_v1 = vld [vmem:[#allocation72_spill] sm:$0xff] }
 0x1c4   : > { %11090 = vst [vmem:[#allocation101_spill] sm:$0xff] %v8606_v11  ;;  %v1575_v9 = vsel %vm1453_vm4, %v1543_v4, %v11091_v16  ;;  %v8626_v3 = vsel %vm1484_vm5, %v8387_v21, %v5795_v48  ;;  %v11096_v16 = vld [vmem:[#allocation79_spill] sm:$0xff]  ;;  %6008 = vrot.lane.b32.xlu1 %v6007_v17, %s6295_s17  ;;  %v8637_v15 = vpack.c.bf16 %v1608_v29, %v8446_v52  ;;  %v8651_v17 = vpop.f32.mrf.mxu2  ;;  %v8653_v0 = vpop.permute.xlu1 %5813  ;;  %v11108_v52 = vunpack.i.l.bf16 %v11104_v43  ;;  %v11119_v11 = vld [vmem:[#allocation36_spill] sm:$0xff] }
 0x1c5   : > { %11092 = vst [vmem:[#allocation100_spill] sm:$0xff] %v8613_v5  ;;  %v1607_v42 = vsel %vm1484_vm5, %v1575_v9, %v5795_v48  ;;  %v11097_v22 = vunpack.i.h.bf16 %v11096_v16  ;;  %v11098_v4 = vld [vmem:[#allocation3_spill] sm:$0xff]  ;;  %v8639_v9 = vpop.permute.xlu2 %5863  ;;  %v11102_v21 = vunpack.i.l.bf16 %v11096_v16  ;;  %v8649_v36 = vsel %vm1453_vm4, %v11106_v57, %v11105_v41  ;;  %v11110_v16 = vld [vmem:[#allocation130_spill] sm:$0xff]  ;;  %v11118_v57 = vld [vmem:[#allocation37_spill] sm:$0xff] }
 0x1c6   : > { %11093 = vst [vmem:[#allocation123_spill] sm:$0xff] %v8616_v7  ;;  %v8634_v10 = vpack.c.bf16 %v1607_v42, %v8406_v31  ;;  %v3152_v31 = vpack.c.b16 %v3070_v63, %v3067_v27  ;;  %v8659_v48 = vsel %vm1453_vm4, %v11109_v28, %v11108_v52  ;;  %v3307_v29 = vunpack.c.l.b16 %v2940_v62  ;;  %6003 = vrot.lane.b32.xlu0 %v11110_v16, %s6297_s23  ;;  %v5113_v27 = vld [vmem:[%s6366_s16 + $0x1f8] sm:$0xff]  ;;  %v11115_v41 = vld [vmem:[#allocation83_spill] sm:$0xff] }
 0x1c7   : > { %11094 = vst [vmem:[#allocation45_spill] sm:$0xff] %v8621_v54  ;;  %v1432_v24 = vsel %vm1422_vm3, %v11098_v4, %v11097_v22  ;;  %v1431_v12 = vsel %vm1422_vm3, %v11103_v13, %v11102_v21  ;;  %v3304_v42 = vunpack.c.l.b16 %v2938_v46  ;;  %v8665_v22 = vpack.i.bf16 %v8616_v7, %v8613_v5  ;;  %v5112_v4 = vld [vmem:[%s6366_s16 + $0x1f0] sm:$0xff]  ;;  %v11114_v46 = vld [vmem:[#allocation131_spill] sm:$0xff]  ;;  %3883 = vmatmul.bf16.gmra.mxu1 %v3153_v19  ;;  %v11116_v28 = vld [vmem:[#allocation138_spill] sm:$0xff]  ;;  %s5329_s16 = smul.u32 160, %s11350_s13 }
 0x1c8   : > { %11095 = vst [vmem:[#allocation119_spill] sm:$0xff] %v8626_v3  ;;  %v11112_v47 = vunpack.i.h.bf16 %v11111_v1  ;;  %v11113_v21 = vunpack.i.l.bf16 %v11111_v1  ;;  %v5606_v62 = vunpack.i.h.bf16 %v11114_v46  ;;  %v5605_v43 = vunpack.i.l.bf16 %v11114_v46  ;;  %3714 = vmatmul.bf16.gmra.mxu0 %v3152_v31  ;;  %v11120_v53 = vld [vmem:[#allocation187_spill] sm:$0xff]  ;;  %v11123_v7 = vld [vmem:[#allocation129_spill] sm:$0xff] }
 0x1c9   : > { %11099 = vst [vmem:[#allocation63_spill] sm:$0xff] %v8634_v10  ;;  %v5601_v16 = vunpack.i.h.bf16 %v11116_v28  ;;  %v5805_v46 = vunpack.i.l.bf16 %v8396_v49  ;;  %v6017_v31 = vpack.i.bf16 %v10997_v61, %v11053_v26  ;;  %v3389_v19 = vpack.c.b16 %v3307_v29, %v3304_v42  ;;  %v11121_v3 = vld [vmem:[#allocation15_spill] sm:$0xff]  ;;  %v11122_v10 = vld [vmem:[#allocation152_spill] sm:$0xff]  ;;  %s10241_s26 = scalar_lea.vmem %s10415_s8, %s5329_s16 }
 0x1ca   : > { %11100 = vst [vmem:[#allocation9_spill] sm:$0xff] %v8637_v15  ;;  %v8672_v63 = vsel %vm1453_vm4, %v1432_v24, %v11112_v47  ;;  %v8677_v13 = vsel %vm1453_vm4, %v1431_v12, %v11113_v21  ;;  %v11117_v24 = vld [vmem:[#allocation35_spill] sm:$0xff]  ;;  %v1817_v12 = vrot.slane %v5112_v4, 7  ;;  %v1818_v21 = vrot.slane %v5113_v27, 7  ;;  %6028 = vrot.lane.b32.xlu2 %v8665_v22, %s6295_s17 }
 0x1cb   : > { %11101 = vst [vmem:[#allocation8_spill] sm:$0xff] %v8639_v9  ;;  %v8684_v9 = vpop.permute.xlu0 %5808  ;;  %v1530_v52 = vsel %vm1422_vm3, %v11118_v57, %v5606_v62  ;;  %v1529_v47 = vsel %vm1422_vm3, %v11119_v11, %v5605_v43  ;;  %v1739_v1 = vrot.slane %v5112_v4, 1  ;;  %v2104_v54 = vrot.slane %v11120_v53, 2  ;;  %v11124_v62 = vld [vmem:[#allocation17_spill] sm:$0xff] }
 0x1cc   : > { %11107 = vst [vmem:[#allocation57_spill] sm:$0xff] %v8651_v17  ;;  %v5806_v17 = vunpack.i.h.bf16 %v8396_v49  ;;  %v1528_v15 = vsel %vm1422_vm3, %v11121_v3, %v5601_v16  ;;  %v5600_v49 = vunpack.i.l.bf16 %v11116_v28  ;;  %v5686_v5 = vunpack.i.h.bf16 %v11122_v10  ;;  %6023 = vrot.lane.b32.xlu1 %v11123_v7, %s6297_s23  ;;  %v8733_v16 = vpop.permute.xlu1 %5828 }
 0x1cd   : > { %v1882_v29 = vrot.slane %v5113_v27, 5  ;;  %v5685_v42 = vunpack.i.l.bf16 %v11122_v10  ;;  %v5681_v57 = vunpack.i.h.bf16 %v11124_v62  ;;  %v2942_v11 = vpack.c.bf16 %v11086_v50, %v11086_v50  ;;  %5205 = vmatmul.msk.bf16.gmra.mxu2 %vm1422_vm3, %v3389_v19  ;;  %v5879_v50 = vpop.permute.xlu2 %5878  ;;  %v8723_v10 = vpop.f32.mrf.mxu2 }
 0x1ce   : > { %v8710_v53 = vsel %vm454_vm0, %v1817_v12, %v1818_v21  ;;  %v5680_v3 = vunpack.i.l.bf16 %v11124_v62  ;;  %v2738_v4 = vsel %vm1422_vm3, %v7394_v44, %v5806_v17  ;;  %v2737_v43 = vsel %vm1422_vm3, %v7397_v6, %v5805_v46  ;;  %6018 = vrot.lane.b32.xlu0 %v6017_v31, %s6297_s23  ;;  %11125 = vst [vmem:[#allocation61_spill] sm:$0xff] %v8723_v10  ;;  %v11128_v46 = vld [vmem:[#allocation38_spill] sm:$0xff] }
 0x1cf   : > { %v8721_v7 = vpack.i.bf16 %v11083_v2, %v11082_v58  ;;  %v8726_v27 = vsel %vm454_vm0, %v1739_v1, %v1817_v12  ;;  %v11126_v28 = vrot.slane %v11058_v56, 2  ;;  %v5881_v6 = vunpack.i.h.bf16 %v5879_v50 }
 0x1d0   : > { %v5880_v17 = vunpack.i.l.bf16 %v5879_v50  ;;  %v5760_v31 = vunpack.i.l.bf16 %v11128_v46  ;;  %v6037_v19 = vpack.i.bf16 %v8579_v60, %v8710_v53  ;;  %v2066_v62 = vrot.slane %v11054_v51, 2  ;;  %v11130_v50 = vld [vmem:[#allocation113_spill] sm:$0xff] }
 0x1d1   : > { %v8731_v44 = vsel %vm720_vm2, %v11126_v28, %v2104_v54  ;;  %v1930_v10 = vsel %vm454_vm0, %v1818_v21, %v1882_v29  ;;  %v8744_v12 = vsel %vm1453_vm4, %v2738_v4, %v5881_v6  ;;  %v2067_v54 = vrot.slane %v11081_v18, 2 }
 0x1d2   : > { %11127 = vst [vmem:[#allocation177_spill] sm:$0xff] %v8731_v44  ;;  %v8741_v1 = vsel %vm1453_vm4, %v2737_v43, %v5880_v17  ;;  %v2069_v28 = vrot.slane %v11130_v50, 2  ;;  %v2944_v58 = vpack.c.bf16 %v8579_v60, %v8579_v60  ;;  %6043 = vrot.lane.b32.xlu2 %v8721_v7, %s6297_s23  ;;  %v6032_v2 = vpack.i.bf16 %v8726_v27, %v8731_v44  ;;  %v11131_v43 = vld [vmem:[#allocation14_spill] sm:$0xff] }
 0x1d3   : > { %11129 = vst [vmem:[#allocation48_spill] sm:$0xff] %v8741_v1  ;;  %v8754_v21 = vpop.permute.xlu0 %5823  ;;  %v2113_v29 = vrot.slane %v8726_v27, 1  ;;  %v2114_v4 = vrot.slane %v8710_v53, 1  ;;  %v1527_v6 = vsel %vm1422_vm3, %v11131_v43, %v5600_v49  ;;  %v1561_v17 = vsel %vm1453_vm4, %v1529_v47, %v5685_v42  ;;  %v11133_v42 = vld [vmem:[#allocation59_spill] sm:$0xff] }
 0x1d4   : > { %v1562_v50 = vsel %vm1453_vm4, %v1530_v52, %v5686_v5  ;;  %v2116_v60 = vrot.slane %v1930_v10, 1  ;;  %v1559_v61 = vsel %vm1453_vm4, %v1527_v6, %v5680_v3  ;;  %v1560_v56 = vsel %vm1453_vm4, %v1528_v15, %v5681_v57  ;;  %6038 = vrot.lane.b32.xlu1 %v6037_v19, %s6296_s22  ;;  %v11132_v15 = vld [vmem:[#allocation142_spill] sm:$0xff] }
 0x1d5   : > { %v3310_v59 = vunpack.c.l.b16 %v2942_v11  ;;  %v5761_v44 = vunpack.i.h.bf16 %v11128_v46  ;;  %v5755_v1 = vunpack.i.l.bf16 %v8421_v35  ;;  %v8769_v49 = vsel %vm720_vm2, %v2066_v62, %v2067_v54 }
 0x1d6   : > { %v8772_v47 = vsel %vm720_vm2, %v2067_v54, %v2069_v28  ;;  %v1593_v5 = vsel %vm1484_vm5, %v1561_v17, %v5760_v31  ;;  %v3313_v52 = vunpack.c.l.b16 %v2944_v58  ;;  %6033 = vrot.lane.b32.xlu0 %v6032_v2, %s6296_s22  ;;  %v8778_v57 = vpack.i.bf16 %v11133_v42, %v11132_v15 }
 0x1d7   : > { %v8781_v11 = vsel %vm644_vm1, %v2113_v29, %v2114_v4  ;;  %3888 = vmatmul.bf16.gmra.mxu1 %v8586_v8  ;;  %v8786_v35 = vsel %vm644_vm1, %v2114_v4, %v2116_v60  ;;  %v2150_v3 = vrot.slane %v8726_v27, 2  ;;  %v2151_v58 = vrot.slane %v8710_v53, 2  ;;  %v8807_v29 = vpop.f32.mrf.mxu2 }
 0x1d8   : > { %3719 = vmatmul.bf16.gmra.mxu0 %v8565_v32  ;;  %v2153_v46 = vrot.slane %v1930_v10, 2  ;;  %v1594_v2 = vsel %vm1484_vm5, %v1562_v50, %v5761_v44  ;;  %v5821_v31 = vunpack.i.h.bf16 %v8442_v23  ;;  %v5820_v19 = vunpack.i.l.bf16 %v8442_v23  ;;  %11136 = vst [vmem:[#allocation94_spill] sm:$0xff] %v8807_v29  ;;  %v8809_v23 = vpop.permute.xlu1 %5843 }
 0x1d9   : > { %v8795_v62 = vpack.i.bf16 %v8772_v47, %v8769_v49  ;;  %v11134_v32 = vunpack.i.h.bf16 %v11117_v24  ;;  %v11135_v54 = vunpack.i.l.bf16 %v11117_v24  ;;  %v1591_v44 = vsel %vm1484_vm5, %v1559_v61, %v5755_v1  ;;  %11137 = vst [vmem:[#allocation176_spill] sm:$0xff] %v8809_v23 }
 0x1da   : > { %v1592_v28 = vsel %vm1484_vm5, %v1560_v56, %v5756_v45  ;;  %6058 = vrot.lane.b32.xlu2 %v8778_v57, %s6296_s22  ;;  %v6047_v4 = vpack.i.bf16 %v8786_v35, %v8781_v11  ;;  %v11138_v24 = vunpack.i.l.bf16 %v11115_v41  ;;  %v11139_v61 = vunpack.i.h.bf16 %v11115_v41 }
 0x1db   : > { %v1498_v8 = vsel %vm1484_vm5, %v8649_v36, %v11134_v32  ;;  %v1497_v10 = vsel %vm1484_vm5, %v8659_v48, %v11135_v54  ;;  %v3392_v36 = vpack.c.b16 %v3313_v52, %v3310_v59  ;;  %v8824_v56 = vsel %vm720_vm2, %v2150_v3, %v2151_v58  ;;  %v8835_v41 = vpop.permute.xlu0 %5838 }
 0x1dc   : > { %v1495_v48 = vsel %vm1484_vm5, %v8677_v13, %v11138_v24  ;;  %v1496_v45 = vsel %vm1484_vm5, %v8672_v63, %v11139_v61  ;;  %v8827_v1 = vsel %vm720_vm2, %v2151_v58, %v2153_v46  ;;  %v1637_v43 = vpack.c.bf16 %v1593_v5, %v1497_v10  ;;  %6053 = vrot.lane.b32.xlu1 %v8795_v62, %s6295_s17  ;;  %v5894_v13 = vpop.permute.xlu2 %5893 }
 0x1dd   : > { %v1639_v6 = vpack.c.bf16 %v1594_v2, %v1498_v8  ;;  %v2744_v59 = vsel %vm1422_vm3, %v10971_v34, %v5821_v31  ;;  %v2743_v17 = vsel %vm1422_vm3, %v10969_v55, %v5820_v19  ;;  %11140 = vst [vmem:[#allocation47_spill] sm:$0xff] %v8835_v41  ;;  %v1633_v63 = vpack.c.bf16 %v1591_v44, %v1495_v48  ;;  %v11143_v48 = vld [vmem:[#allocation82_spill] sm:$0xff] }
 0x1de   : > { %v1635_v50 = vpack.c.bf16 %v1592_v28, %v1496_v45  ;;  %v5896_v60 = vunpack.i.h.bf16 %v5894_v13  ;;  %v5895_v52 = vunpack.i.l.bf16 %v5894_v13  ;;  %v3085_v3 = vunpack.c.l.b16 %v1637_v43  ;;  %6048 = vrot.lane.b32.xlu0 %v6047_v4, %s6297_s23  ;;  %5206 = vmatmul.msk.bf16.gmra.mxu2 %vm1422_vm3, %v3392_v36 }
 0x1df   : > { %v3088_v58 = vunpack.c.l.b16 %v1639_v6  ;;  %v6072_v34 = vpack.i.bf16 %v8827_v1, %v8824_v56  ;;  %v3086_v55 = vunpack.c.h.b16 %v1637_v43  ;;  %v3089_v5 = vunpack.c.h.b16 %v1639_v6  ;;  %v8858_v36 = vpop.f32.mrf.mxu2  ;;  %v11145_v43 = vld [vmem:[#allocation71_spill] sm:$0xff] }
 0x1e0   : > { %v8842_v46 = vsel %vm1453_vm4, %v2743_v17, %v5895_v52  ;;  %v8845_v2 = vsel %vm1453_vm4, %v2744_v59, %v5896_v60  ;;  %v2948_v32 = vpack.c.bf16 %v8772_v47, %v8772_v47  ;;  %v3079_v8 = vunpack.c.l.b16 %v1633_v63  ;;  %11141 = vst [vmem:[#allocation95_spill] sm:$0xff] %v8858_v36  ;;  %v8860_v24 = vpop.permute.xlu1 %5858  ;;  %v11144_v47 = vld [vmem:[#allocation155_spill] sm:$0xff] }
 0x1e1   : > { %v8847_v31 = vpack.c.b16 %v3088_v58, %v3085_v3  ;;  %v8849_v19 = vpack.c.b16 %v3089_v5, %v3086_v55  ;;  %v3082_v54 = vunpack.c.l.b16 %v1635_v50  ;;  %v2946_v10 = vpack.c.bf16 %v8769_v49, %v8769_v49  ;;  %11142 = vst [vmem:[#allocation19_spill] sm:$0xff] %v8860_v24  ;;  %v11147_v3 = vld [vmem:[#allocation91_spill] sm:$0xff]  ;;  %v11148_v55 = vld [vmem:[#allocation68_spill] sm:$0xff]  ;;  %v11159_v24 = vld [vmem:[#allocation137_spill] sm:$0xff] }
 0x1e2   : > { %6073 = vrot.lane.b32.xlu2 %v6072_v34, %s6295_s17  ;;  %v6062_v44 = vpack.i.bf16 %v11081_v18, %v11054_v51  ;;  %v3080_v28 = vunpack.c.h.b16 %v1633_v63  ;;  %v3083_v4 = vunpack.c.h.b16 %v1635_v50  ;;  %v5376_v61 = vunpack.i.h.bf16 %v11143_v48 }
 0x1e3   : > { %v5375_v49 = vunpack.i.l.bf16 %v11143_v48  ;;  %v5451_v6 = vunpack.i.h.bf16 %v11145_v43  ;;  %v5450_v59 = vunpack.i.l.bf16 %v11145_v43  ;;  %v3158_v17 = vpack.c.b16 %v3082_v54, %v3079_v8  ;;  %v8871_v50 = vpop.permute.xlu0 %5853  ;;  %v11149_v48 = vld [vmem:[#allocation34_spill] sm:$0xff] }
 0x1e4   : > { %6068 = vrot.lane.b32.xlu1 %v11144_v47, %s6297_s23  ;;  %v8865_v45 = vpop.permute.xlu2 %5908  ;;  %v3319_v13 = vunpack.c.l.b16 %v2948_v32  ;;  %v3316_v63 = vunpack.c.l.b16 %v2946_v10  ;;  %11146 = vst [vmem:[#allocation18_spill] sm:$0xff] %v8871_v50  ;;  %v3159_v60 = vpack.c.b16 %v3083_v4, %v3080_v28  ;;  %v6087_v52 = vpack.i.bf16 %v8710_v53, %v8726_v27  ;;  %v11150_v32 = vld [vmem:[#allocation32_spill] sm:$0xff]  ;;  %v11151_v10 = vld [vmem:[#allocation146_spill] sm:$0xff] }
 0x1e5   : > { %v5531_v58 = vunpack.i.h.bf16 %v11147_v3  ;;  %v5530_v34 = vunpack.i.l.bf16 %v11147_v3  ;;  %v5381_v5 = vunpack.i.h.bf16 %v11148_v55  ;;  %v1436_v8 = vsel %vm1422_vm3, %v11149_v48, %v5376_v61  ;;  %v11153_v48 = vld [vmem:[#allocation28_spill] sm:$0xff] }
 0x1e6   : > { %6063 = vrot.lane.b32.xlu0 %v6062_v44, %s6297_s23  ;;  %v1435_v54 = vsel %vm1422_vm3, %v11150_v32, %v5375_v49  ;;  %v2074_v44 = vrot.slane %v11151_v10, 2  ;;  %v2071_v28 = vrot.slane %v11132_v15, 2  ;;  %v2072_v53 = vrot.slane %v11133_v42, 2 }
 0x1e7   : > { %3893 = vmatmul.bf16.gmra.mxu1 %v3159_v60  ;;  %v1466_v27 = vsel %vm1453_vm4, %v1435_v54, %v5450_v59  ;;  %v1467_v4 = vsel %vm1453_vm4, %v1436_v8, %v5451_v6  ;;  %v3395_v47 = vpack.c.b16 %v3319_v13, %v3316_v63  ;;  %v1438_v6 = vsel %vm1422_vm3, %v11153_v48, %v5381_v5  ;;  %v8900_v63 = vpop.f32.mrf.mxu2  ;;  %v11158_v60 = vld [vmem:[#allocation128_spill] sm:$0xff] }
 0x1e8   : > { %3724 = vmatmul.bf16.gmra.mxu0 %v3158_v17  ;;  %v1499_v43 = vsel %vm1484_vm5, %v1466_v27, %v5530_v34  ;;  %v1500_v61 = vsel %vm1484_vm5, %v1467_v4, %v5531_v58  ;;  %v11152_v17 = vld [vmem:[#allocation80_spill] sm:$0xff]  ;;  %v5380_v13 = vunpack.i.l.bf16 %v11148_v55  ;;  %11154 = vst [vmem:[#allocation164_spill] sm:$0xff] %v8900_v63  ;;  %v2073_v58 = vsel %vm720_vm2, %v2071_v28, %v2072_v53 }
 0x1e9   : > { %v1641_v3 = vpack.c.bf16 %v8507_v30, %v1499_v43  ;;  %v1643_v59 = vpack.c.bf16 %v8510_v33, %v1500_v61  ;;  %v2075_v34 = vsel %vm720_vm2, %v2072_v53, %v2074_v44  ;;  %v5816_v55 = vunpack.i.h.bf16 %v8653_v0 }
 0x1ea   : > { %6088 = vrot.lane.b32.xlu2 %v6087_v52, %s6297_s23  ;;  %v8902_v52 = vpop.permute.xlu1 %5873  ;;  %v5815_v10 = vunpack.i.l.bf16 %v8653_v0  ;;  %v5811_v28 = vunpack.i.h.bf16 %v8684_v9  ;;  %v8916_v53 = vpack.i.bf16 %v2075_v34, %v2073_v58  ;;  %v5810_v43 = vunpack.i.l.bf16 %v8684_v9 }
 0x1eb   : > { %v3091_v30 = vunpack.c.l.b16 %v1641_v3  ;;  %v3094_v33 = vunpack.c.l.b16 %v1643_v59  ;;  %v3092_v32 = vunpack.c.h.b16 %v1641_v3  ;;  %v3095_v54 = vunpack.c.h.b16 %v1643_v59  ;;  %v11157_v3 = vld [vmem:[#allocation26_spill] sm:$0xff] }
 0x1ec   : > { %6083 = vrot.lane.b32.xlu1 %v8721_v7, %s6296_s22  ;;  %v8893_v49 = vpop.permute.xlu2 %5923  ;;  %v11155_v7 = vld [vmem:[#allocation70_spill] sm:$0xff]  ;;  %v8914_v44 = vpop.permute.xlu0 %5868  ;;  %v1437_v59 = vsel %vm1422_vm3, %v11157_v3, %v5380_v13  ;;  %v2950_v0 = vpack.c.bf16 %v2073_v58, %v2073_v58  ;;  %v2952_v48 = vpack.c.bf16 %v2075_v34, %v2075_v34  ;;  %v2079_v9 = vrot.slane %v11159_v24, 2 }
 0x1ed   : > { %v5456_v8 = vunpack.i.h.bf16 %v11155_v7  ;;  %v5455_v5 = vunpack.i.l.bf16 %v11155_v7  ;;  %v8918_v27 = vpack.c.b16 %v3094_v33, %v3091_v30  ;;  %v8923_v61 = vpack.c.b16 %v3095_v54, %v3092_v32 }
 0x1ee   : > { %6078 = vrot.lane.b32.xlu0 %v8665_v22, %s6296_s22  ;;  %5207 = vmatmul.msk.bf16.gmra.mxu2 %vm1422_vm3, %v3395_v47  ;;  %v11156_v22 = vld [vmem:[#allocation87_spill] sm:$0xff]  ;;  %v2742_v32 = vsel %vm1422_vm3, %v10975_v14, %v5816_v55  ;;  %v2741_v13 = vsel %vm1422_vm3, %v10974_v20, %v5815_v10  ;;  %v5826_v14 = vunpack.i.h.bf16 %v8754_v21  ;;  %v11161_v20 = vld [vmem:[#allocation188_spill] sm:$0xff]  ;;  %v3325_v54 = vunpack.c.l.b16 %v2952_v48 }
 0x1ef   : > { %v5536_v4 = vunpack.i.h.bf16 %v11156_v22  ;;  %v5535_v47 = vunpack.i.l.bf16 %v11156_v22  ;;  %v1469_v30 = vsel %vm1453_vm4, %v1438_v6, %v5456_v8  ;;  %v1468_v33 = vsel %vm1453_vm4, %v1437_v59, %v5455_v5  ;;  %v11160_v6 = vld [vmem:[#allocation108_spill] sm:$0xff] }
 0x1f0   : > { %v2739_v34 = vsel %vm1422_vm3, %v11160_v6, %v5810_v43  ;;  %v5830_v8 = vunpack.i.l.bf16 %v8733_v16  ;;  %v5825_v10 = vunpack.i.l.bf16 %v8754_v21  ;;  %v11164_v6 = vld [vmem:[#allocation135_spill] sm:$0xff] }
 0x1f1   : > { %v1501_v24 = vsel %vm1484_vm5, %v1468_v33, %v5535_v47  ;;  %v1502_v5 = vsel %vm1484_vm5, %v1469_v30, %v5536_v4  ;;  %v11163_v4 = vld [vmem:[#allocation133_spill] sm:$0xff] }
 0x1f2   : > { %6103 = vrot.lane.b32.xlu2 %v8795_v62, %s6296_s22  ;;  %v2740_v62 = vsel %vm1422_vm3, %v10979_v40, %v5811_v28  ;;  %v3322_v40 = vunpack.c.l.b16 %v2950_v0  ;;  %v8951_v28 = vpop.f32.mrf.mxu2  ;;  %v2076_v30 = vrot.slane %v11163_v4, 2 }
 0x1f3   : > { %11162 = vst [vmem:[#allocation165_spill] sm:$0xff] %v8951_v28 }
 0x1f4   : > { %6098 = vrot.lane.b32.xlu1 %v8916_v53, %s6295_s17  ;;  %v5939_v58 = vpop.permute.xlu2 %5938  ;;  %v3398_v22 = vpack.c.b16 %v3325_v54, %v3322_v40  ;;  %v5925_v54 = vunpack.i.l.bf16 %v8893_v49 }
 0x1f5   : > { %v5941_v59 = vunpack.i.h.bf16 %v5939_v58  ;;  %v5940_v47 = vunpack.i.l.bf16 %v5939_v58  ;;  %v5910_v58 = vunpack.i.l.bf16 %v8865_v45 }
 0x1f6   : > { %6093 = vrot.lane.b32.xlu0 %v11161_v20, %s6297_s23  ;;  %v5889_v55 = vpop.permute.xlu1 %5888  ;;  %v2077_v20 = vrot.slane %v11164_v6, 2 }
 0x1f7   : > { %v5891_v3 = vunpack.i.h.bf16 %v5889_v55  ;;  %v5890_v43 = vunpack.i.l.bf16 %v5889_v55  ;;  %3898 = vmatmul.bf16.gmra.mxu1 %v8849_v19  ;;  %v11165_v55 = vld [vmem:[#allocation147_spill] sm:$0xff]  ;;  %v8970_v19 = vpack.i.bf16 %v11164_v6, %v11163_v4  ;;  %v5926_v6 = vunpack.i.h.bf16 %v8893_v49 }
 0x1f8   : > { %3729 = vmatmul.bf16.gmra.mxu0 %v8847_v31  ;;  %v5884_v33 = vpop.permute.xlu0 %5883  ;;  %v2747_v31 = vsel %vm1422_vm3, %v11053_v26, %v5830_v8 }
 0x1f9   : > { %v8958_v0 = vsel %vm1453_vm4, %v2741_v13, %v5890_v43  ;;  %v8961_v21 = vsel %vm1453_vm4, %v2742_v32, %v5891_v3  ;;  %v5886_v48 = vunpack.i.h.bf16 %v5884_v33  ;;  %v5885_v7 = vunpack.i.l.bf16 %v5884_v33  ;;  %v11166_v43 = vld [vmem:[#allocation127_spill] sm:$0xff]  ;;  %v11167_v33 = vld [vmem:[#allocation126_spill] sm:$0xff] }
 0x1fa   : > { %6118 = vrot.lane.b32.xlu2 %v11165_v55, %s6297_s23  ;;  %v2746_v13 = vsel %vm1422_vm3, %v7580_v39, %v5826_v14  ;;  %v2745_v32 = vsel %vm1422_vm3, %v7587_v25, %v5825_v10  ;;  %v8984_v55 = vpack.i.bf16 %v11167_v33, %v11166_v43  ;;  %v2078_v25 = vsel %vm720_vm2, %v2076_v30, %v2077_v20 }
 0x1fb   : > { %v2769_v3 = vsel %vm1453_vm4, %v2739_v34, %v5885_v7  ;;  %v2770_v26 = vsel %vm1453_vm4, %v2740_v62, %v5886_v48  ;;  %v2080_v7 = vsel %vm720_vm2, %v2077_v20, %v2079_v9  ;;  %v1645_v62 = vpack.c.bf16 %v8485_v37, %v1501_v24  ;;  %v11168_v34 = vld [vmem:[#allocation54_spill] sm:$0xff] }
 0x1fc   : > { %6113 = vrot.lane.b32.xlu1 %v8778_v57, %s6297_s23  ;;  %v8980_v8 = vpop.permute.xlu2 %5953  ;;  %v8987_v40 = vsel %vm1484_vm5, %v2769_v3, %v5940_v47  ;;  %v8990_v39 = vsel %vm1484_vm5, %v2770_v26, %v5941_v59  ;;  %v1647_v57 = vpack.c.bf16 %v8489_v38, %v1502_v5  ;;  %v2829_v14 = vsel %vm1422_vm3, %v11168_v34, %v5910_v58  ;;  %v9006_v3 = vpop.f32.mrf.mxu2 }
 0x1fd   : > { %v2081_v59 = vrot.slane %v11166_v43, 2  ;;  %v2082_v47 = vrot.slane %v11167_v33, 2  ;;  %v3097_v37 = vunpack.c.l.b16 %v1645_v62  ;;  %v9004_v5 = vpack.i.bf16 %v2080_v7, %v2078_v25  ;;  %11169 = vst [vmem:[#allocation115_spill] sm:$0xff] %v9006_v3 }
 0x1fe   : > { %6108 = vrot.lane.b32.xlu0 %v8970_v19, %s6296_s22  ;;  %v5904_v10 = vpop.permute.xlu1 %5903  ;;  %5208 = vmatmul.msk.bf16.gmra.mxu2 %vm1422_vm3, %v3398_v22  ;;  %v3100_v24 = vunpack.c.l.b16 %v1647_v57  ;;  %v2954_v20 = vpack.c.bf16 %v2078_v25, %v2078_v25  ;;  %v3098_v48 = vunpack.c.h.b16 %v1645_v62  ;;  %v3101_v58 = vunpack.c.h.b16 %v1647_v57 }
 0x1ff   : > { %v5906_v9 = vunpack.i.h.bf16 %v5904_v10  ;;  %v5905_v30 = vunpack.i.l.bf16 %v5904_v10  ;;  %v2956_v43 = vpack.c.bf16 %v2080_v7, %v2080_v7  ;;  %v11171_v7 = vunpack.i.h.bf16 %v11152_v17 }
 0x200   : > { %v5899_v38 = vpop.permute.xlu0 %5898  ;;  %v9015_v33 = vpack.c.b16 %v3100_v24, %v3097_v37  ;;  %v9017_v25 = vpack.c.b16 %v3101_v58, %v3098_v48  ;;  %v5911_v37 = vunpack.i.h.bf16 %v8865_v45  ;;  %v11176_v58 = vld [vmem:[#allocation16_spill] sm:$0xff] }
 0x201   : > { %v2861_v26 = vsel %vm1453_vm4, %v2829_v14, %v5906_v9  ;;  %v9010_v22 = vsel %vm1453_vm4, %v2747_v31, %v5905_v30  ;;  %v5901_v34 = vunpack.i.h.bf16 %v5899_v38  ;;  %v5900_v50 = vunpack.i.l.bf16 %v5899_v38 }
 0x202   : > { %6133 = vrot.lane.b32.xlu2 %v8984_v55, %s6296_s22  ;;  %v2893_v10 = vsel %vm1484_vm5, %v2861_v26, %v5925_v54  ;;  %v9026_v31 = vsel %vm720_vm2, %v2081_v59, %v2082_v47  ;;  %v11170_v14 = vrot.slane %v11158_v60, 2  ;;  %v11172_v54 = vld [vmem:[#allocation24_spill] sm:$0xff]  ;;  %v11174_v60 = vld [vmem:[#allocation22_spill] sm:$0xff]  ;;  %v5541_v45 = vunpack.i.h.bf16 %v11176_v58 }
 0x203   : > { %v9020_v62 = vsel %vm1453_vm4, %v2745_v32, %v5900_v50  ;;  %v9023_v57 = vsel %vm1453_vm4, %v2746_v13, %v5901_v34  ;;  %v1440_v30 = vsel %vm1422_vm3, %v11172_v54, %v11171_v7  ;;  %v5956_v50 = vunpack.i.h.bf16 %v8980_v8  ;;  %v11177_v7 = vld [vmem:[#allocation103_spill] sm:$0xff] }
 0x204   : > { %v9031_v9 = vsel %vm720_vm2, %v2082_v47, %v11170_v14  ;;  %6128 = vrot.lane.b32.xlu1 %v8916_v53, %s6296_s22  ;;  %v9041_v13 = vpop.permute.xlu2 %5968  ;;  %v11173_v32 = vunpack.i.l.bf16 %v11152_v17  ;;  %v11175_v47 = vld [vmem:[#allocation74_spill] sm:$0xff]  ;;  %v3328_v17 = vunpack.c.l.b16 %v2954_v20  ;;  %v3331_v34 = vunpack.c.l.b16 %v2956_v43 }
 0x205   : > { %v5461_v24 = vunpack.i.h.bf16 %v11175_v47  ;;  %v5460_v38 = vunpack.i.l.bf16 %v11175_v47  ;;  %v5970_v48 = vunpack.i.l.bf16 %v9041_v13  ;;  %v9055_v53 = vpack.i.bf16 %v9031_v9, %v9026_v31  ;;  %v11178_v47 = vld [vmem:[#allocation58_spill] sm:$0xff] }
 0x206   : > { %v1439_v59 = vsel %vm1422_vm3, %v11174_v60, %v11173_v32  ;;  %6123 = vrot.lane.b32.xlu0 %v9004_v5, %s6295_s17  ;;  %v5919_v26 = vpop.permute.xlu1 %5918  ;;  %v5540_v14 = vunpack.i.l.bf16 %v11176_v58  ;;  %v2830_v4 = vsel %vm1422_vm3, %v11178_v47, %v5911_v37  ;;  %v11179_v58 = vld [vmem:[#allocation48_spill] sm:$0xff]  ;;  %v9078_v37 = vpop.f32.mrf.mxu2  ;;  %v2958_v41 = vpack.c.bf16 %v9026_v31, %v9026_v31  ;;  %v11191_v31 = vld [vmem:[#allocation53_spill] sm:$0xff] }
 0x207   : > { %v2835_v54 = vsel %vm1422_vm3, %v11177_v7, %v5970_v48  ;;  %v5921_v32 = vunpack.i.h.bf16 %v5919_v26  ;;  %v5920_v60 = vunpack.i.l.bf16 %v5919_v26  ;;  %3903 = vmatmul.bf16.gmra.mxu1 %v8923_v61  ;;  %v1471_v49 = vsel %vm1453_vm4, %v1440_v30, %v5461_v24  ;;  %11180 = vst [vmem:[#allocation43_spill] sm:$0xff] %v9078_v37  ;;  %v11183_v24 = vld [vmem:[#allocation105_spill] sm:$0xff] }
 0x208   : > { %3734 = vmatmul.bf16.gmra.mxu0 %v8918_v27  ;;  %v5914_v23 = vpop.permute.xlu0 %5913  ;;  %v2867_v20 = vsel %vm1453_vm4, %v2835_v54, %v5956_v50  ;;  %v3401_v27 = vpack.c.b16 %v3331_v34, %v3328_v17  ;;  %v1470_v61 = vsel %vm1453_vm4, %v1439_v59, %v5460_v38  ;;  %v1504_v54 = vsel %vm1484_vm5, %v1471_v49, %v5541_v45  ;;  %v11182_v17 = vld [vmem:[#allocation73_spill] sm:$0xff]  ;;  %v11184_v34 = vld [vmem:[#allocation56_spill] sm:$0xff]  ;;  %v11187_v49 = vld [vmem:[#allocation27_spill] sm:$0xff] }
 0x209   : > { %v9068_v43 = vsel %vm1484_vm5, %v8744_v12, %v5921_v32  ;;  %v2797_v48 = vsel %vm1484_vm5, %v11179_v58, %v5920_v60  ;;  %v5915_v26 = vunpack.i.l.bf16 %v5914_v23  ;;  %v1503_v32 = vsel %vm1484_vm5, %v1470_v61, %v5540_v14 }
 0x20a   : > { %v9072_v7 = vpack.c.bf16 %v2893_v10, %v2797_v48  ;;  %6148 = vrot.lane.b32.xlu2 %v9055_v53, %s6295_s17  ;;  %v11181_v10 = vld [vmem:[#allocation143_spill] sm:$0xff]  ;;  %v5391_v30 = vunpack.i.h.bf16 %v11182_v17  ;;  %v1649_v38 = vpack.c.bf16 %v11183_v24, %v1503_v32  ;;  %v5390_v45 = vunpack.i.l.bf16 %v11182_v17  ;;  %v11185_v48 = vld [vmem:[#allocation170_spill] sm:$0xff] }
 0x20b   : > { %v2862_v50 = vsel %vm1453_vm4, %v2830_v4, %v5915_v26  ;;  %v1651_v4 = vpack.c.bf16 %v11184_v34, %v1504_v54  ;;  %v2089_v14 = vrot.slane %v11185_v48, 2  ;;  %v11186_v26 = vld [vmem:[#allocation168_spill] sm:$0xff] }
 0x20c   : > { %v9084_v60 = vsel %vm1484_vm5, %v2862_v50, %v5926_v6  ;;  %6143 = vrot.lane.b32.xlu1 %v11181_v10, %s6297_s23  ;;  %v9088_v47 = vpop.permute.xlu2 %5983  ;;  %v9101_v61 = vpack.i.bf16 %v11187_v49, %v11186_v26  ;;  %v5916_v50 = vunpack.i.h.bf16 %v5914_v23  ;;  %v2086_v54 = vrot.slane %v11186_v26, 2  ;;  %v11188_v26 = vld [vmem:[#allocation46_spill] sm:$0xff] }
 0x20d   : > { %v5985_v59 = vunpack.i.l.bf16 %v9088_v47  ;;  %v3103_v32 = vunpack.c.l.b16 %v1649_v38  ;;  %v3106_v34 = vunpack.c.l.b16 %v1651_v4  ;;  %v3104_v48 = vunpack.c.h.b16 %v1649_v38 }
 0x20e   : > { %6138 = vrot.lane.b32.xlu0 %v8970_v19, %s6297_s23  ;;  %v5934_v6 = vpop.permute.xlu1 %5933  ;;  %5209 = vmatmul.msk.bf16.gmra.mxu2 %vm1422_vm3, %v3401_v27  ;;  %v3107_v15 = vunpack.c.h.b16 %v1651_v4  ;;  %v2087_v27 = vrot.slane %v11187_v49, 2  ;;  %v2960_v23 = vpack.c.bf16 %v9031_v9, %v9031_v9  ;;  %v1442_v38 = vsel %vm1422_vm3, %v11188_v26, %v5391_v30  ;;  %v11189_v4 = vld [vmem:[#allocation44_spill] sm:$0xff]  ;;  %v9136_v26 = vpop.f32.mrf.mxu2 }
 0x20f   : > { %v9104_v10 = vsel %vm1484_vm5, %v2867_v20, %v5985_v59  ;;  %v5935_v17 = vunpack.i.l.bf16 %v5934_v6  ;;  %v9114_v20 = vpack.c.b16 %v3106_v34, %v3103_v32  ;;  %v11190_v49 = vld [vmem:[#allocation96_spill] sm:$0xff]  ;;  %v5955_v9 = vunpack.i.l.bf16 %v8980_v8  ;;  %11193 = vst [vmem:[#allocation107_spill] sm:$0xff] %v9136_v26 }
 0x210   : > { %v5929_v24 = vpop.permute.xlu0 %5928  ;;  %v9116_v59 = vpack.c.b16 %v3107_v15, %v3104_v48  ;;  %v9142_v34 = vsel %vm720_vm2, %v2087_v27, %v2089_v14  ;;  %v3334_v8 = vunpack.c.l.b16 %v2958_v41  ;;  %v5936_v48 = vunpack.i.h.bf16 %v5934_v6 }
 0x211   : > { %v5931_v19 = vunpack.i.h.bf16 %v5929_v24  ;;  %v5930_v42 = vunpack.i.l.bf16 %v5929_v24  ;;  %v1441_v24 = vsel %vm1422_vm3, %v11189_v4, %v5390_v45 }
 0x212   : > { %6163 = vrot.lane.b32.xlu2 %v8984_v55, %s6297_s23  ;;  %v11192_v55 = vld [vmem:[#allocation86_spill] sm:$0xff] }
 0x213   : > { %v2832_v51 = vsel %vm1422_vm3, %v11190_v49, %v5931_v19  ;;  %v2831_v18 = vsel %vm1422_vm3, %v11191_v31, %v5930_v42  ;;  %v5466_v37 = vunpack.i.h.bf16 %v11192_v55  ;;  %v9130_v15 = vpop.f32.mrf.mxu0  ;;  %v9139_v42 = vsel %vm720_vm2, %v2086_v54, %v2087_v27  ;;  %v11195_v27 = vld [vmem:[#allocation116_spill] sm:$0xff] }
 0x214   : > { %6158 = vrot.lane.b32.xlu1 %v9101_v61, %s6296_s22  ;;  %v9132_v32 = vpop.f32.mrf.mxu1  ;;  %v2863_v30 = vsel %vm1453_vm4, %v2831_v18, %v5916_v50  ;;  %v2864_v45 = vsel %vm1453_vm4, %v2832_v51, %v5935_v17  ;;  %v5999_v49 = vpop.permute.xlu2 %5998  ;;  %v3337_v18 = vunpack.c.l.b16 %v2960_v23  ;;  %v5465_v51 = vunpack.i.l.bf16 %v11192_v55  ;;  %v11194_v50 = vld [vmem:[#allocation78_spill] sm:$0xff] }
 0x215   : > { %v6001_v19 = vunpack.i.h.bf16 %v5999_v49  ;;  %v6000_v4 = vunpack.i.l.bf16 %v5999_v49  ;;  %v5546_v17 = vunpack.i.h.bf16 %v11194_v50  ;;  %v5545_v14 = vunpack.i.l.bf16 %v11194_v50  ;;  %v11196_v23 = vld [vmem:[#allocation106_spill] sm:$0xff] }
 0x216   : > { %6153 = vrot.lane.b32.xlu0 %v9004_v5, %s6296_s22  ;;  %v5949_v31 = vpop.permute.xlu1 %5948  ;;  %v9161_v54 = vpack.i.bf16 %v9142_v34, %v9139_v42 }
 0x217   : > { %v5951_v26 = vunpack.i.h.bf16 %v5949_v31  ;;  %v5950_v3 = vunpack.i.l.bf16 %v5949_v31  ;;  %v9152_v41 = vsel %vm1484_vm5, %v8842_v46, %v6000_v4  ;;  %v9156_v5 = vsel %vm1484_vm5, %v8845_v2, %v6001_v19  ;;  %3908 = vmatmul.bf16.gmra.mxu1 %v9017_v25 }
 0x218   : > { %3739 = vmatmul.bf16.gmra.mxu0 %v9015_v33  ;;  %v5944_v6 = vpop.permute.xlu0 %5943  ;;  %v3404_v25 = vpack.c.b16 %v3337_v18, %v3334_v8  ;;  %v1472_v4 = vsel %vm1453_vm4, %v1441_v24, %v5465_v51  ;;  %v1473_v31 = vsel %vm1453_vm4, %v1442_v38, %v5466_v37  ;;  %v11198_v8 = vld [vmem:[#allocation75_spill] sm:$0xff] }
 0x219   : > { %v2834_v33 = vsel %vm1422_vm3, %v11195_v27, %v5951_v26  ;;  %v2833_v55 = vsel %vm1422_vm3, %v11196_v23, %v5950_v3  ;;  %v5946_v49 = vunpack.i.h.bf16 %v5944_v6  ;;  %v5945_v46 = vunpack.i.l.bf16 %v5944_v6  ;;  %v11201_v51 = vld [vmem:[#allocation163_spill] sm:$0xff]  ;;  %v11204_v23 = vld [vmem:[#allocation162_spill] sm:$0xff] }
 0x21a   : > { %6178 = vrot.lane.b32.xlu2 %v9055_v53, %s6296_s22  ;;  %v2865_v2 = vsel %vm1453_vm4, %v2833_v55, %v5936_v48  ;;  %v2866_v19 = vsel %vm1453_vm4, %v2834_v33, %v5955_v9  ;;  %v1505_v9 = vsel %vm1484_vm5, %v1472_v4, %v5545_v14  ;;  %v1506_v24 = vsel %vm1484_vm5, %v1473_v31, %v5546_v17  ;;  %v11202_v27 = vld [vmem:[#allocation175_spill] sm:$0xff]  ;;  %v11203_v14 = vld [vmem:[#allocation161_spill] sm:$0xff]  ;;  %v9200_v55 = vpop.f32.mrf.mxu2 }
 0x21b   : > { %v2896_v50 = vsel %vm1484_vm5, %v2864_v45, %v5946_v49  ;;  %v2895_v26 = vsel %vm1484_vm5, %v2863_v30, %v5945_v46  ;;  %v9180_v53 = vpop.f32.mrf.mxu0  ;;  %v5396_v37 = vunpack.i.h.bf16 %v11198_v8  ;;  %v11199_v30 = vld [vmem:[#allocation97_spill] sm:$0xff]  ;;  %v2094_v6 = vrot.slane %v11201_v51, 2  ;;  %11205 = vst [vmem:[#allocation172_spill] sm:$0xff] %v9200_v55 }
 0x21c   : > { %v9176_v3 = vpack.c.bf16 %v2896_v50, %v8990_v39  ;;  %6173 = vrot.lane.b32.xlu1 %v9161_v54, %s6295_s17  ;;  %v9182_v48 = vpop.f32.mrf.mxu1  ;;  %v9188_v38 = vpack.c.bf16 %v2895_v26, %v8987_v40  ;;  %v1653_v45 = vpack.c.bf16 %v11199_v30, %v1505_v9  ;;  %v11200_v39 = vld [vmem:[#allocation40_spill] sm:$0xff]  ;;  %v9198_v17 = vpack.i.bf16 %v11204_v23, %v11203_v14 }
 0x21d   : > { %v1655_v18 = vpack.c.bf16 %v11200_v39, %v1506_v24  ;;  %v2091_v46 = vrot.slane %v11203_v14, 2  ;;  %v2092_v50 = vrot.slane %v11204_v23, 2  ;;  %v2962_v51 = vpack.c.bf16 %v9139_v42, %v9139_v42  ;;  %v11208_v42 = vld [vmem:[#allocation84_spill] sm:$0xff] }
 0x21e   : > { %11197 = vst [vmem:[#allocation174_spill] sm:$0xff] %v9176_v3  ;;  %6168 = vrot.lane.b32.xlu0 %v11202_v27, %s6297_s23  ;;  %v5964_v33 = vpop.permute.xlu1 %5963  ;;  %5210 = vmatmul.msk.bf16.gmra.mxu2 %vm1422_vm3, %v3404_v25  ;;  %v3109_v4 = vunpack.c.l.b16 %v1653_v45  ;;  %v3110_v9 = vunpack.c.h.b16 %v1653_v45  ;;  %v2964_v14 = vpack.c.bf16 %v9142_v34, %v9142_v34  ;;  %v5395_v45 = vunpack.i.l.bf16 %v11198_v8 }
 0x21f   : > { %v5966_v40 = vunpack.i.h.bf16 %v5964_v33  ;;  %v5965_v49 = vunpack.i.l.bf16 %v5964_v33  ;;  %v3112_v26 = vunpack.c.l.b16 %v1655_v18  ;;  %v3113_v24 = vunpack.c.h.b16 %v1655_v18  ;;  %v11206_v33 = vld [vmem:[#allocation29_spill] sm:$0xff] }
 0x220   : > { %v5959_v31 = vpop.permute.xlu0 %5958  ;;  %v5971_v8 = vunpack.i.h.bf16 %v9041_v13  ;;  %v3872_v29 = vadd.f32 %v9182_v48, %v9180_v53 }
 0x221   : > { %v2897_v30 = vsel %vm1484_vm5, %v2865_v2, %v5965_v49  ;;  %v2898_v25 = vsel %vm1484_vm5, %v2866_v19, %v5966_v40  ;;  %v5961_v39 = vunpack.i.h.bf16 %v5959_v31  ;;  %v5960_v27 = vunpack.i.l.bf16 %v5959_v31  ;;  %v11207_v19 = vld [vmem:[#allocation41_spill] sm:$0xff] }
 0x222   : > { %6193 = vrot.lane.b32.xlu2 %v11206_v33, %s6297_s23  ;;  %v9212_v55 = vpack.c.b16 %v3112_v26, %v3109_v4  ;;  %v9214_v23 = vpack.c.b16 %v3113_v24, %v3110_v9  ;;  %v1444_v18 = vsel %vm1422_vm3, %v11207_v19, %v5396_v37  ;;  %v5471_v40 = vunpack.i.h.bf16 %v11208_v42  ;;  %v9257_v19 = vpop.f32.mrf.mxu2 }
 0x223   : > { %v2802_v2 = vsel %vm1484_vm5, %v8744_v12, %v5961_v39  ;;  %v2801_v31 = vsel %vm1484_vm5, %v11179_v58, %v5960_v27  ;;  %v9228_v34 = vpop.f32.mrf.mxu0  ;;  %v9236_v37 = vsel %vm720_vm2, %v2091_v46, %v2092_v50  ;;  %v9239_v26 = vsel %vm720_vm2, %v2092_v50, %v2094_v6  ;;  %v11212_v46 = vld [vmem:[#allocation39_spill] sm:$0xff]  ;;  %11214 = vst [vmem:[#allocation12_spill] sm:$0xff] %v9257_v19 }
 0x224   : > { %v9222_v49 = vpack.c.bf16 %v2898_v25, %v2802_v2  ;;  %6188 = vrot.lane.b32.xlu1 %v9101_v61, %s6297_s23  ;;  %v9230_v4 = vpop.f32.mrf.mxu1  ;;  %v9233_v12 = vpack.c.bf16 %v2897_v30, %v2801_v31  ;;  %v5470_v9 = vunpack.i.l.bf16 %v11208_v42  ;;  %v3340_v61 = vunpack.c.l.b16 %v2962_v51  ;;  %v11211_v25 = vld [vmem:[#allocation88_spill] sm:$0xff] }
 0x225   : > { %v3343_v24 = vunpack.c.l.b16 %v2964_v14  ;;  %v5551_v39 = vunpack.i.h.bf16 %v11211_v25  ;;  %v5550_v13 = vunpack.i.l.bf16 %v11211_v25  ;;  %v1443_v6 = vsel %vm1422_vm3, %v11212_v46, %v5395_v45  ;;  %v11213_v14 = vld [vmem:[#allocation104_spill] sm:$0xff]  ;;  %v11218_v25 = vld [vmem:[#allocation65_spill] sm:$0xff]  ;;  %v11221_v46 = vld [vmem:[#allocation150_spill] sm:$0xff] }
 0x226   : > { %11209 = vst [vmem:[#allocation141_spill] sm:$0xff] %v9222_v49  ;;  %6183 = vrot.lane.b32.xlu0 %v9198_v17, %s6296_s22  ;;  %v5979_v58 = vpop.permute.xlu1 %5978  ;;  %v1475_v50 = vsel %vm1453_vm4, %v1444_v18, %v5471_v40  ;;  %v9253_v51 = vpack.i.bf16 %v9239_v26, %v9236_v37  ;;  %v2836_v2 = vsel %vm1422_vm3, %v11213_v14, %v5971_v8  ;;  %v5986_v42 = vunpack.i.h.bf16 %v9088_v47 }
 0x227   : > { %11210 = vst [vmem:[#allocation114_spill] sm:$0xff] %v9233_v12  ;;  %v5981_v30 = vunpack.i.h.bf16 %v5979_v58  ;;  %v5980_v27 = vunpack.i.l.bf16 %v5979_v58  ;;  %3913 = vmatmul.bf16.gmra.mxu1 %v9116_v59  ;;  %v1474_v59 = vsel %vm1453_vm4, %v1443_v6, %v5470_v9  ;;  %v3407_v31 = vpack.c.b16 %v3343_v24, %v3340_v61  ;;  %v11220_v61 = vld [vmem:[#allocation154_spill] sm:$0xff]  ;;  %v11222_v6 = vld [vmem:[#allocation153_spill] sm:$0xff] }
 0x228   : > { %3744 = vmatmul.bf16.gmra.mxu0 %v9114_v20  ;;  %v5974_v33 = vpop.permute.xlu0 %5973  ;;  %v1507_v8 = vsel %vm1484_vm5, %v1474_v59, %v5550_v13  ;;  %v1508_v47 = vsel %vm1484_vm5, %v1475_v50, %v5551_v39  ;;  %v2099_v24 = vrot.slane %v11220_v61, 2  ;;  %v9292_v50 = vpack.i.bf16 %v11222_v6, %v11221_v46 }
 0x229   : > { %v2803_v20 = vsel %vm1484_vm5, %v8958_v0, %v5980_v27  ;;  %v9264_v45 = vsel %vm1484_vm5, %v8961_v21, %v5981_v30  ;;  %v5975_v40 = vunpack.i.l.bf16 %v5974_v33  ;;  %v1659_v30 = vpack.c.bf16 %v11218_v25, %v1508_v47  ;;  %v9283_v27 = vpop.permute.xlu2 %6013 }
 0x22a   : > { %11215 = vst [vmem:[#allocation109_spill] sm:$0xff] %v9264_v45  ;;  %v9268_v18 = vpack.c.bf16 %v9104_v10, %v2803_v20  ;;  %6203 = vrot.lane.b32.xlu2 %v9161_v54, %s6296_s22  ;;  %v11217_v10 = vld [vmem:[#allocation49_spill] sm:$0xff]  ;;  %v2096_v14 = vrot.slane %v11221_v46, 2  ;;  %v5976_v59 = vunpack.i.h.bf16 %v5974_v33  ;;  %v2968_v61 = vpack.c.bf16 %v9239_v26, %v9239_v26  ;;  %v9306_v33 = vpop.f32.mrf.mxu2 }
 0x22b   : > { %v2868_v0 = vsel %vm1453_vm4, %v2836_v2, %v5975_v40  ;;  %v9277_v21 = vpop.f32.mrf.mxu0  ;;  %v1657_v58 = vpack.c.bf16 %v11217_v10, %v1507_v8  ;;  %v2097_v2 = vrot.slane %v11222_v6, 2  ;;  %v3118_v20 = vunpack.c.l.b16 %v1659_v30  ;;  %11223 = vst [vmem:[#allocation156_spill] sm:$0xff] %v9306_v33  ;;  %v11224_v6 = vld [vmem:[#allocation134_spill] sm:$0xff] }
 0x22c   : > { %11216 = vst [vmem:[#allocation76_spill] sm:$0xff] %v9268_v18  ;;  %6198 = vrot.lane.b32.xlu1 %v9253_v51, %s6295_s17  ;;  %v9279_v9 = vpop.f32.mrf.mxu1  ;;  %v9286_v54 = vsel %vm1484_vm5, %v2868_v0, %v5986_v42  ;;  %v3119_v47 = vunpack.c.h.b16 %v1659_v30  ;;  %v11225_v30 = vld [vmem:[#allocation132_spill] sm:$0xff]  ;;  %v3349_v33 = vunpack.c.l.b16 %v2968_v61 }
 0x22d   : > { %11219 = vst [vmem:[#allocation157_spill] sm:$0xff] %v9286_v54  ;;  %v3115_v13 = vunpack.c.l.b16 %v1657_v58  ;;  %v3116_v42 = vunpack.c.h.b16 %v1657_v58  ;;  %v11230_v61 = vld [vmem:[#allocation124_spill] sm:$0xff]  ;;  %v3875_v54 = vadd.f32 %v9230_v4, %v9228_v34  ;;  %v11244_v34 = vld [vmem:[#allocation117_spill] sm:$0xff] }
 0x22e   : > { %v5994_v39 = vpop.permute.xlu1 %5993  ;;  %5211 = vmatmul.msk.bf16.gmra.mxu2 %vm1422_vm3, %v3407_v31  ;;  %v2966_v31 = vpack.c.bf16 %v9236_v37, %v9236_v37  ;;  %v11226_v37 = vld [vmem:[#allocation81_spill] sm:$0xff] }
 0x22f   : > { %v5995_v40 = vunpack.i.l.bf16 %v5994_v39  ;;  %v9296_v25 = vpack.c.b16 %v3118_v20, %v3115_v13  ;;  %v9304_v46 = vpack.c.b16 %v3119_v47, %v3116_v42  ;;  %v9313_v20 = vsel %vm720_vm2, %v2096_v14, %v2097_v2 }
 0x230   : > { %v5989_v8 = vpop.permute.xlu0 %5988  ;;  %v3870_v14 = vadd.f32 %v9132_v32, %v9130_v15  ;;  %v5415_v15 = vunpack.i.l.bf16 %v11226_v37 }
 0x231   : > { %v5991_v0 = vunpack.i.h.bf16 %v5989_v8  ;;  %v5990_v10 = vunpack.i.l.bf16 %v5989_v8  ;;  %v5416_v8 = vunpack.i.h.bf16 %v11226_v37  ;;  %v9334_v19 = vpop.permute.xlu2 %6028 }
 0x232   : > { %6213 = vrot.lane.b32.xlu2 %v9198_v17, %s6297_s23  ;;  %v9316_v17 = vsel %vm720_vm2, %v2097_v2, %v2099_v24  ;;  %v5996_v24 = vunpack.i.h.bf16 %v5994_v39  ;;  %v11228_v39 = vld [vmem:[#allocation85_spill] sm:$0xff]  ;;  %v9379_v48 = vpop.f32.mrf.mxu2 }
 0x233   : > { %v2838_v58 = vsel %vm1422_vm3, %v11224_v6, %v5991_v0  ;;  %v2837_v13 = vsel %vm1422_vm3, %v11225_v30, %v5990_v10  ;;  %v9321_v26 = vpop.f32.mrf.mxu0  ;;  %v6015_v0 = vunpack.i.l.bf16 %v9283_v27  ;;  %v9332_v10 = vpack.i.bf16 %v9316_v17, %v9313_v20  ;;  %11237 = vst [vmem:[#allocation21_spill] sm:$0xff] %v9379_v48  ;;  %v11243_v48 = vld [vmem:[#allocation13_spill] sm:$0xff] }
 0x234   : > { %6208 = vrot.lane.b32.xlu1 %v9292_v50, %s6296_s22  ;;  %v9323_v42 = vpop.f32.mrf.mxu1  ;;  %v2869_v6 = vsel %vm1453_vm4, %v2837_v13, %v5976_v59  ;;  %v2870_v47 = vsel %vm1453_vm4, %v2838_v58, %v5995_v40  ;;  %v3346_v30 = vunpack.c.l.b16 %v2966_v31  ;;  %v11227_v59 = vld [vmem:[#allocation52_spill] sm:$0xff]  ;;  %v4039_v58 = vadd.f32 %v11228_v39, %v3870_v14  ;;  %v11229_v13 = vld [vmem:[#allocation125_spill] sm:$0xff] }
 0x235   : > { %v9339_v40 = vsel %vm1422_vm3, %v11227_v59, %v5416_v8  ;;  %v11231_v59 = vld [vmem:[#allocation31_spill] sm:$0xff] }
 0x236   : > { %v6009_v2 = vpop.permute.xlu1 %6008  ;;  %v3410_v14 = vpack.c.b16 %v3349_v33, %v3346_v30  ;;  %v3121_v39 = vunpack.c.l.b16 %v11231_v59 }
 0x237   : > { %v6011_v28 = vunpack.i.h.bf16 %v6009_v2  ;;  %v6010_v63 = vunpack.i.l.bf16 %v6009_v2  ;;  %3918 = vmatmul.bf16.gmra.mxu1 %v9214_v23 }
 0x238   : > { %3749 = vmatmul.bf16.gmra.mxu0 %v9212_v55  ;;  %v6004_v32 = vpop.permute.xlu0 %6003  ;;  %v9351_v55 = vld [vmem:[%s10409_s2] ss:$0 sm:$0xff] }
 0x239   : > { %v2840_v31 = vsel %vm1422_vm3, %v11229_v13, %v6011_v28  ;;  %v2839_v36 = vsel %vm1422_vm3, %v11230_v61, %v6010_v63  ;;  %v6006_v2 = vunpack.i.h.bf16 %v6004_v32  ;;  %v6005_v8 = vunpack.i.l.bf16 %v6004_v32  ;;  %v11232_v63 = vld [vmem:[#allocation25_spill] sm:$0xff] }
 0x23a   : > { %6223 = vrot.lane.b32.xlu2 %v9332_v10, %s6295_s17  ;;  %v2871_v23 = vsel %vm1453_vm4, %v2839_v36, %v5996_v24  ;;  %v2872_v37 = vsel %vm1453_vm4, %v2840_v31, %v6015_v0  ;;  %v3124_v13 = vunpack.c.l.b16 %v11232_v63  ;;  %v3122_v61 = vunpack.c.h.b16 %v11231_v59  ;;  %v11234_v36 = vld [vmem:[#allocation160_spill] sm:$0xff]  ;;  %v11235_v24 = vld [vmem:[#allocation50_spill] sm:$0xff]  ;;  %v11236_v31 = vld [vmem:[#allocation69_spill] sm:$0xff] }
 0x23b   : > { %v2902_v28 = vsel %vm1484_vm5, %v2870_v47, %v6006_v2  ;;  %v2901_v32 = vsel %vm1484_vm5, %v2869_v6, %v6005_v8  ;;  %v9369_v33 = vpop.f32.mrf.mxu0  ;;  %v3125_v0 = vunpack.c.h.b16 %v11232_v63  ;;  %v9376_v30 = vsel %vm1422_vm3, %v11235_v24, %v5415_v15  ;;  %v11239_v59 = vld [vmem:[#allocation183_spill] sm:$0xff]  ;;  %v11240_v63 = vld [vmem:[#allocation186_spill] sm:$0xff]  ;;  %v11242_v2 = vld [vmem:[#allocation100_spill] sm:$0xff] }
 0x23c   : > { %v9365_v18 = vpack.c.bf16 %v2902_v28, %v9156_v5  ;;  %6218 = vrot.lane.b32.xlu1 %v11234_v36, %s6297_s23  ;;  %v9371_v47 = vpop.f32.mrf.mxu1  ;;  %v9382_v5 = vpack.c.bf16 %v2901_v32, %v9152_v41  ;;  %v9384_v6 = vpack.c.b16 %v3124_v13, %v3121_v39  ;;  %v4202_v8 = vmul.f32 %v9351_v55, %v4039_v58  ;;  %v9396_v36 = vld [vmem:[%s10410_s3] ss:$0 sm:$0xff]  ;;  %v11241_v24 = vld [vmem:[#allocation123_spill] sm:$0xff] }
 0x23d   : > { %v9391_v15 = vpack.i.bf16 %v11240_v63, %v11239_v59  ;;  %v9398_v41 = vpack.c.b16 %v3125_v0, %v3122_v61  ;;  %v5831_v39 = vunpack.i.h.bf16 %v8733_v16  ;;  %v5870_v13 = vunpack.i.l.bf16 %v8914_v44  ;;  %v9409_v61 = vpop.permute.xlu2 %6043 }
 0x23e   : > { %11233 = vst [vmem:[#allocation118_spill] sm:$0xff] %v9365_v18  ;;  %v6024_v28 = vpop.permute.xlu1 %6023  ;;  %5212 = vmatmul.msk.bf16.gmra.mxu2 %vm1422_vm3, %v3410_v14  ;;  %v2980_v14 = vpack.c.bf16 %v11241_v24, %v11241_v24  ;;  %v2978_v53 = vpack.c.bf16 %v11242_v2, %v11242_v2  ;;  %v4041_v18 = vadd.f32 %v11243_v48, %v3872_v29 }
 0x23f   : > { %11238 = vst [vmem:[#allocation20_spill] sm:$0xff] %v9382_v5  ;;  %v6026_v32 = vunpack.i.h.bf16 %v6024_v28  ;;  %v6025_v58 = vunpack.i.l.bf16 %v6024_v28  ;;  %v4270_v24 = vadd.f32 %v9396_v36, %v4202_v8  ;;  %v2970_v29 = vpack.c.bf16 %v9313_v20, %v9313_v20 }
 0x240   : > { %v6019_v5 = vpop.permute.xlu0 %6018  ;;  %v2972_v48 = vpack.c.bf16 %v9316_v17, %v9316_v17  ;;  %v2748_v4 = vsel %vm1422_vm3, %v11244_v34, %v5831_v39  ;;  %v4203_v2 = vmul.f32 %v9351_v55, %v4041_v18  ;;  %v6016_v8 = vunpack.i.h.bf16 %v9283_v27  ;;  %v11249_v34 = vld [vmem:[#allocation64_spill] sm:$0xff] }
 0x241   : > { %v2903_v16 = vsel %vm1484_vm5, %v2871_v23, %v6025_v58  ;;  %v2904_v0 = vsel %vm1484_vm5, %v2872_v37, %v6026_v32  ;;  %v6021_v45 = vunpack.i.h.bf16 %v6019_v5  ;;  %v6020_v28 = vunpack.i.l.bf16 %v6019_v5 }
 0x242   : > { %6233 = vrot.lane.b32.xlu2 %v9391_v15, %s6296_s22  ;;  %v5871_v23 = vunpack.i.h.bf16 %v8914_v44  ;;  %v2763_v37 = vsel %vm1422_vm3, %v11239_v59, %v5870_v13  ;;  %v11246_v59 = vld [vmem:[#allocation10_spill] sm:$0xff]  ;;  %v4334_v13 = vmax.f32 %v4270_v24, 0.0  ;;  %v3355_v58 = vunpack.c.l.b16 %v2972_v48  ;;  %v11251_v48 = vld [vmem:[#allocation185_spill] sm:$0xff] }
 0x243   : > { %v2808_v5 = vsel %vm1484_vm5, %v9023_v57, %v6021_v45  ;;  %v2807_v20 = vsel %vm1484_vm5, %v9020_v62, %v6020_v28  ;;  %v4044_v39 = vadd.f32 %v11246_v59, %v3875_v54  ;;  %v6031_v57 = vunpack.i.h.bf16 %v9334_v19  ;;  %v11252_v28 = vld [vmem:[#allocation184_spill] sm:$0xff] }
 0x244   : > { %v9431_v32 = vpack.c.bf16 %v2904_v0, %v2808_v5  ;;  %6228 = vrot.lane.b32.xlu1 %v9253_v51, %s6296_s22  ;;  %v9437_v44 = vpop.f32.mrf.mxu1  ;;  %v6030_v45 = vunpack.i.l.bf16 %v9334_v19  ;;  %v9442_v18 = vpack.c.bf16 %v2903_v16, %v2807_v20  ;;  %v3352_v62 = vunpack.c.l.b16 %v2970_v29  ;;  %v11248_v0 = vld [vmem:[#allocation112_spill] sm:$0xff] }
 0x245   : > { %v9435_v17 = vpop.f32.mrf.mxu0  ;;  %v9451_v59 = vunpack.c.l.b16 %v2980_v14  ;;  %v9453_v19 = vunpack.c.l.b16 %v2978_v53  ;;  %v2764_v16 = vsel %vm1422_vm3, %v11240_v63, %v5871_v23  ;;  %v2793_v29 = vsel %vm1453_vm4, %v2763_v37, %v6016_v8  ;;  %v11253_v63 = vld [vmem:[#allocation192_spill] sm:$0xff] }
 0x246   : > { %11245 = vst [vmem:[#allocation30_spill] sm:$0xff] %v9431_v32  ;;  %v6039_v27 = vpop.permute.xlu1 %6038  ;;  %v9448_v32 = vpop.f32.mrf.mxu2  ;;  %v2858_v20 = vsel %vm1422_vm3, %v11251_v48, %v6031_v57  ;;  %v2857_v5 = vsel %vm1422_vm3, %v11252_v28, %v6030_v45  ;;  %v4204_v53 = vmul.f32 %v9351_v55, %v4044_v39  ;;  %v4271_v23 = vadd.f32 %v9396_v36, %v4203_v2  ;;  %v11255_v28 = vld [vmem:[#allocation9_spill] sm:$0xff] }
 0x247   : > { %11247 = vst [vmem:[#allocation62_spill] sm:$0xff] %v9442_v18  ;;  %v6041_v54 = vunpack.i.h.bf16 %v6039_v27  ;;  %3923 = vmatmul.bf16.gmra.mxu1 %v9304_v46  ;;  %v3413_v46 = vpack.c.b16 %v3355_v58, %v3352_v62  ;;  %v3877_v37 = vadd.f32 %v9279_v9, %v9277_v21  ;;  %v6045_v8 = vunpack.i.l.bf16 %v9409_v61  ;;  %v6059_v57 = vpop.permute.xlu2 %6058  ;;  %v11256_v18 = vld [vmem:[#allocation177_spill] sm:$0xff] }
 0x248   : > { %11250 = vst [vmem:[#allocation60_spill] sm:$0xff] %v9448_v32  ;;  %3754 = vmatmul.bf16.gmra.mxu0 %v9296_v25  ;;  %v6034_v24 = vpop.permute.xlu0 %6033  ;;  %4398 = vxpose.xlu0.b32.start [1/16] (narrow) %v4334_v13, 32  ;;  %v11254_v13 = vld [vmem:[#allocation63_spill] sm:$0xff]  ;;  %v3131_v21 = vunpack.c.h.b16 %v11255_v28  ;;  %v6046_v9 = vunpack.i.h.bf16 %v9409_v61  ;;  %v6061_v62 = vunpack.i.h.bf16 %v6059_v57  ;;  %v6060_v51 = vunpack.i.l.bf16 %v6059_v57 }
 0x249   : > { %v9464_v25 = vsel %vm1453_vm4, %v2748_v4, %v6041_v54  ;;  %v6035_v14 = vunpack.i.l.bf16 %v6034_v24  ;;  %v3127_v45 = vunpack.c.l.b16 %v11254_v13  ;;  %v3130_v4 = vunpack.c.l.b16 %v11255_v28 }
 0x24a   : > { %6243 = vrot.lane.b32.xlu2 %v11253_v63, %s6297_s23  ;;  %v6040_v54 = vunpack.i.l.bf16 %v6039_v27  ;;  %v6036_v48 = vunpack.i.h.bf16 %v6034_v24  ;;  %v3128_v2 = vunpack.c.h.b16 %v11254_v13  ;;  %v4335_v32 = vmax.f32 %v4271_v23, 0.0  ;;  %v11257_v13 = vld [vmem:[#allocation77_spill] sm:$0xff] }
 0x24b   : > { %v9484_v58 = vpack.c.b16 %v3130_v4, %v3127_v45  ;;  %v2794_v27 = vsel %vm1453_vm4, %v2764_v16, %v6035_v14  ;;  %v2976_v49 = vpack.c.bf16 %v11256_v18, %v11256_v18  ;;  %v4046_v12 = vadd.f32 %v11257_v13, %v3877_v37 }
 0x24c   : > { %6238 = vrot.lane.b32.xlu1 %v9292_v50, %s6297_s23  ;;  %v9479_v63 = vpop.f32.mrf.mxu1  ;;  %v9488_v50 = vpack.c.b16 %v3131_v21, %v3128_v2  ;;  %v2825_v61 = vsel %vm1484_vm5, %v2793_v29, %v6045_v8  ;;  %v2890_v45 = vsel %vm1453_vm4, %v2858_v20, %v6040_v54  ;;  %v2889_v57 = vsel %vm1453_vm4, %v2857_v5, %v6036_v48  ;;  %v11259_v2 = vld [vmem:[#allocation121_spill] sm:$0xff] }
 0x24d   : > { %v9477_v39 = vpop.f32.mrf.mxu0  ;;  %v6247_v14 = vpack.i.bf16 %v11256_v18, %v11249_v34  ;;  %v2826_v29 = vsel %vm1484_vm5, %v2794_v27, %v6046_v9  ;;  %v4272_v18 = vadd.f32 %v9396_v36, %v4204_v53  ;;  %v11260_v20 = vunpack.i.h.bf16 %v11236_v31 }
 0x24e   : > { %v6054_v24 = vpop.permute.xlu1 %6053  ;;  %5213 = vmatmul.msk.bf16.gmra.mxu2 %vm1422_vm3, %v3413_v46  ;;  %v9498_v23 = vpop.f32.mrf.mxu2  ;;  %v11258_v46 = vld [vmem:[#allocation122_spill] sm:$0xff]  ;;  %v4205_v9 = vmul.f32 %v9351_v55, %v4046_v12  ;;  %v11262_v12 = vunpack.i.l.bf16 %v11248_v0 }
 0x24f   : > { %v6056_v28 = vunpack.i.h.bf16 %v6054_v24  ;;  %v6055_v3 = vunpack.i.l.bf16 %v6054_v24  ;;  %v1483_v54 = vsel %vm1453_vm4, %v9339_v40, %v11260_v20  ;;  %v3361_v24 = vunpack.c.l.b16 %v2976_v49 }
 0x250   : > { %v6049_v16 = vpop.permute.xlu0 %6048  ;;  %4399 = vxpose.xlu0.b32.cont [2/16] (narrow) %v4335_v32, 32 }
 0x251   : > { %v2842_v4 = vsel %vm1422_vm3, %v11258_v46, %v6056_v28  ;;  %v2841_v37 = vsel %vm1422_vm3, %v11259_v2, %v6055_v3  ;;  %v6051_v21 = vunpack.i.h.bf16 %v6049_v16  ;;  %v6050_v8 = vunpack.i.l.bf16 %v6049_v16  ;;  %v11266_v46 = vld [vmem:[#allocation45_spill] sm:$0xff] }
 0x252   : > { %6253 = vrot.lane.b32.xlu2 %v9332_v10, %s6296_s22  ;;  %v2873_v32 = vsel %vm1453_vm4, %v2841_v37, %v6060_v51  ;;  %v2874_v5 = vsel %vm1453_vm4, %v2842_v4, %v6061_v62  ;;  %v11261_v3 = vunpack.i.l.bf16 %v11236_v31  ;;  %v3880_v51 = vadd.f32 %v9323_v42, %v9321_v26 }
 0x253   : > { %v2922_v10 = vsel %vm1484_vm5, %v2890_v45, %v6051_v21  ;;  %v2921_v62 = vsel %vm1484_vm5, %v2889_v57, %v6050_v8  ;;  %v11263_v26 = vpack.c.bf16 %v11249_v34, %v11249_v34  ;;  %v11264_v28 = vunpack.i.h.bf16 %v11248_v0  ;;  %v11265_v57 = vld [vmem:[#allocation119_spill] sm:$0xff] }
 0x254   : > { %v1482_v48 = vsel %vm1453_vm4, %v9376_v30, %v11261_v3  ;;  %6248 = vrot.lane.b32.xlu1 %v6247_v14, %s6295_s17  ;;  %v9526_v27 = vpop.f32.mrf.mxu1  ;;  %v9528_v40 = vpack.c.bf16 %v2922_v10, %v2826_v29  ;;  %v9532_v30 = vpack.c.b16 %v9451_v59, %v9453_v19  ;;  %v9540_v13 = vpack.c.bf16 %v2921_v62, %v2825_v61  ;;  %v11267_v34 = vld [vmem:[#allocation7_spill] sm:$0xff]  ;;  %v11269_v62 = vld [vmem:[#allocation101_spill] sm:$0xff] }
 0x255   : > { %v9524_v53 = vpop.f32.mrf.mxu0  ;;  %v1515_v31 = vsel %vm1484_vm5, %v1482_v48, %v11262_v12  ;;  %v3358_v42 = vunpack.c.l.b16 %v11263_v26  ;;  %v1516_v45 = vsel %vm1484_vm5, %v1483_v54, %v11264_v28  ;;  %v4336_v59 = vmax.f32 %v4272_v18, 0.0  ;;  %v6074_v54 = vpop.permute.xlu2 %6073 }
 0x256   : > { %v1673_v16 = vpack.c.bf16 %v11265_v57, %v1515_v31  ;;  %v6069_v14 = vpop.permute.xlu1 %6068  ;;  %v3371_v19 = vunpack.c.l.b16 %v9528_v40  ;;  %v1674_v4 = vpack.c.bf16 %v11266_v46, %v1516_v45  ;;  %v3368_v49 = vunpack.c.l.b16 %v9540_v13  ;;  %v9559_v31 = vpop.f32.mrf.mxu2 }
 0x257   : > { %v6071_v2 = vunpack.i.h.bf16 %v6069_v14  ;;  %v6070_v37 = vunpack.i.l.bf16 %v6069_v14  ;;  %v4049_v61 = vadd.f32 %v11267_v34, %v3880_v51  ;;  %3928 = vmatmul.bf16.gmra.mxu1 %v9398_v41  ;;  %v4273_v0 = vadd.f32 %v9396_v36, %v4205_v9 }
 0x258   : > { %3759 = vmatmul.bf16.gmra.mxu0 %v9384_v6  ;;  %v6064_v21 = vpop.permute.xlu0 %6063  ;;  %4400 = vxpose.xlu0.b32.cont [3/16] (narrow) %v4336_v59, 32  ;;  %v3416_v20 = vpack.c.b16 %v3361_v24, %v3358_v42  ;;  %v3420_v48 = vpack.c.b16 %v3371_v19, %v3368_v49  ;;  %v11268_v6 = vld [vmem:[#allocation102_spill] sm:$0xff]  ;;  %v3136_v12 = vunpack.c.l.b16 %v11269_v62  ;;  %v2982_v51 = vpack.c.bf16 %v8824_v56, %v8824_v56 }
 0x259   : > { %v2905_v29 = vsel %vm1484_vm5, %v2873_v32, %v6070_v37  ;;  %v2906_v8 = vsel %vm1484_vm5, %v2874_v5, %v6071_v2  ;;  %v6066_v18 = vunpack.i.h.bf16 %v6064_v21  ;;  %v6065_v3 = vunpack.i.l.bf16 %v6064_v21 }
 0x25a   : > { %v3133_v10 = vunpack.c.l.b16 %v11268_v6  ;;  %v3134_v32 = vunpack.c.h.b16 %v11268_v6  ;;  %v3137_v5 = vunpack.c.h.b16 %v11269_v62  ;;  %3849 = vmatmul.bf16.vlgmr.msra.gmra.mxu3 %v3420_v48  ;;  %v2984_v28 = vpack.c.bf16 %v8827_v1, %v8827_v1 }
 0x25b   : > { %v2810_v41 = vsel %vm1484_vm5, %v9464_v25, %v6066_v18  ;;  %v2809_v26 = vsel %vm1484_vm5, %v9010_v22, %v6065_v3  ;;  %v3139_v25 = vunpack.c.l.b16 %v1673_v16  ;;  %v3882_v45 = vadd.f32 %v9371_v47, %v9369_v33 }
 0x25c   : > { %v9565_v9 = vpack.c.bf16 %v2906_v8, %v2810_v41  ;;  %6258 = vrot.lane.b32.xlu1 %v9391_v15, %s6297_s23  ;;  %v9573_v56 = vpop.f32.mrf.mxu1  ;;  %v9575_v24 = vpack.c.b16 %v3136_v12, %v3133_v10  ;;  %v9581_v57 = vpack.c.bf16 %v2905_v29, %v2809_v26  ;;  %v9583_v22 = vpack.c.b16 %v3137_v5, %v3134_v32 }
 0x25d   : > { %v9571_v42 = vpop.f32.mrf.mxu0  ;;  %v4206_v15 = vmul.f32 %v9351_v55, %v4049_v61  ;;  %v4337_v14 = vmax.f32 %v4273_v0, 0.0  ;;  %v3141_v59 = vunpack.c.l.b16 %v1674_v4  ;;  %v3140_v19 = vunpack.c.h.b16 %v1673_v16  ;;  %v11270_v61 = vld [vmem:[#allocation92_spill] sm:$0xff]  ;;  %v6089_v10 = vpop.permute.xlu2 %6088 }
 0x25e   : > { %5214 = vmatmul.msk.bf16.gmra.mxu2 %vm1422_vm3, %v3416_v20  ;;  %v5876_v46 = vunpack.i.h.bf16 %v8902_v52  ;;  %v5875_v2 = vunpack.i.l.bf16 %v8902_v52  ;;  %v3142_v37 = vunpack.c.h.b16 %v1674_v4  ;;  %v6076_v1 = vunpack.i.h.bf16 %v6074_v54  ;;  %v11271_v52 = vld [vmem:[#allocation179_spill] sm:$0xff]  ;;  %v11272_v20 = vld [vmem:[#allocation178_spill] sm:$0xff]  ;;  %v9603_v3 = vpop.permute.xlu1 %6083 }
 0x25f   : > { %v6075_v49 = vunpack.i.l.bf16 %v6074_v54  ;;  %v9589_v33 = vpack.c.b16 %v3141_v59, %v3139_v25  ;;  %v9591_v47 = vunpack.c.l.b16 %v2984_v28  ;;  %v9593_v21 = vunpack.c.l.b16 %v2982_v51 }
 0x260   : > { %v6079_v34 = vpop.permute.xlu0 %6078  ;;  %4401 = vxpose.xlu0.b32.cont [4/16] (narrow) %v4337_v14, 32  ;;  %v4051_v0 = vadd.f32 %v11270_v61, %v3882_v45  ;;  %v4274_v16 = vadd.f32 %v9396_v36, %v4206_v15  ;;  %v9597_v18 = vpack.c.b16 %v3142_v37, %v3140_v19  ;;  %v2766_v4 = vsel %vm1422_vm3, %v11271_v52, %v5876_v46 }
 0x261   : > { %v6081_v29 = vunpack.i.h.bf16 %v6079_v34  ;;  %v6080_v8 = vunpack.i.l.bf16 %v6079_v34  ;;  %v2765_v54 = vsel %vm1422_vm3, %v11272_v20, %v5875_v2  ;;  %v2860_v48 = vsel %vm1422_vm3, %v8786_v35, %v6076_v1  ;;  %v9618_v35 = vpop.f32.mrf.mxu2  ;;  %v11273_v2 = vld [vmem:[#allocation67_spill] sm:$0xff]  ;;  %v11274_v20 = vld [vmem:[#allocation120_spill] sm:$0xff] }
 0x262   : > { %v2859_v6 = vsel %vm1422_vm3, %v8781_v11, %v6075_v49  ;;  %v6086_v62 = vunpack.i.h.bf16 %v9603_v3  ;;  %v6085_v12 = vunpack.i.l.bf16 %v9603_v3  ;;  %v4207_v41 = vmul.f32 %v9351_v55, %v4051_v0 }
 0x263   : > { %v6091_v32 = vunpack.i.h.bf16 %v6089_v10  ;;  %v6090_v5 = vunpack.i.l.bf16 %v6089_v10  ;;  %v3422_v25 = vpack.c.b16 %v9591_v47, %v9593_v21  ;;  %v3885_v11 = vadd.f32 %v9437_v44, %v9435_v17 }
 0x264   : > { %v9614_v26 = vpop.f32.mrf.mxu1  ;;  %v2796_v28 = vsel %vm1453_vm4, %v2766_v4, %v6081_v29  ;;  %v2795_v45 = vsel %vm1453_vm4, %v2765_v54, %v6080_v8  ;;  %v4338_v15 = vmax.f32 %v4274_v16, 0.0  ;;  %v2892_v14 = vsel %vm1453_vm4, %v2860_v48, %v6086_v62 }
 0x265   : > { %v9611_v51 = vpop.f32.mrf.mxu0  ;;  %v2891_v59 = vsel %vm1453_vm4, %v2859_v6, %v6085_v12  ;;  %v2827_v46 = vsel %vm1484_vm5, %v2795_v45, %v6090_v5  ;;  %v4054_v37 = vadd.f32 %v11273_v2, %v3885_v11  ;;  %v4275_v1 = vadd.f32 %v9396_v36, %v4207_v41  ;;  %v11275_v5 = vld [vmem:[#allocation136_spill] sm:$0xff] }
 0x266   : > { %v3887_v29 = vadd.f32 %v9479_v63, %v9477_v39  ;;  %v3890_v39 = vadd.f32 %v9526_v27, %v9524_v53  ;;  %v2927_v53 = vpack.c.bf16 %v9084_v60, %v9068_v43  ;;  %v3285_v2 = vunpack.c.h.b16 %v9072_v7  ;;  %v11276_v60 = vld [vmem:[#allocation151_spill] sm:$0xff] }
 0x267   : > { %3933 = vmatmul.bf16.gmra.mxu1 %v9488_v50  ;;  %v4208_v0 = vmul.f32 %v9351_v55, %v4054_v37  ;;  %v4339_v8 = vmax.f32 %v4275_v1, 0.0 }
 0x268   : > { %3764 = vmatmul.bf16.gmra.mxu0 %v9484_v58  ;;  %v9631_v19 = vpop.permute.xlu0 %6093  ;;  %4402 = vxpose.xlu0.b32.cont [5/16] (narrow) %v4338_v15, 32  ;;  %v2828_v58 = vsel %vm1484_vm5, %v2796_v28, %v6091_v32  ;;  %v4056_v54 = vadd.f32 %v11274_v20, %v3887_v29  ;;  %v4059_v11 = vadd.f32 %v11275_v5, %v3890_v39  ;;  %v3287_v37 = vunpack.c.l.b16 %v2927_v53 }
 0x269   : > { %v6096_v17 = vunpack.i.h.bf16 %v9631_v19  ;;  %v6095_v44 = vunpack.i.l.bf16 %v9631_v19  ;;  %v9661_v4 = vpop.f32.mrf.mxu2  ;;  %v4276_v6 = vadd.f32 %v9396_v36, %v4208_v0  ;;  %v3288_v43 = vunpack.c.h.b16 %v2927_v53  ;;  %v11279_v53 = vld [vmem:[#allocation181_spill] sm:$0xff] }
 0x26a   : > { %v4209_v41 = vmul.f32 %v9351_v55, %v4056_v54  ;;  %v4210_v27 = vmul.f32 %v9351_v55, %v4059_v11  ;;  %v3290_v20 = vunpack.c.l.b16 %v9188_v38  ;;  %v11278_v54 = vld [vmem:[#allocation174_spill] sm:$0xff] }
 0x26b   : > { %v2924_v49 = vsel %vm1484_vm5, %v2892_v14, %v6096_v17  ;;  %v2923_v50 = vsel %vm1484_vm5, %v2891_v59, %v6095_v44  ;;  %v4340_v32 = vmax.f32 %v4276_v6, 0.0  ;;  %v3892_v14 = vadd.f32 %v9573_v56, %v9571_v42 }
 0x26c   : > { %v9648_v47 = vpack.c.bf16 %v2923_v50, %v2827_v46  ;;  %v9650_v21 = vpack.c.bf16 %v2924_v49, %v2828_v58  ;;  %v9652_v61 = vpop.f32.mrf.mxu1  ;;  %v4277_v45 = vadd.f32 %v9396_v36, %v4209_v41  ;;  %v3372_v46 = vunpack.c.h.b16 %v9528_v40 }
 0x26d   : > { %v9646_v34 = vpop.f32.mrf.mxu0  ;;  %v3284_v58 = vunpack.c.l.b16 %v9072_v7  ;;  %v4061_v1 = vadd.f32 %v11276_v60, %v3892_v14  ;;  %v4278_v42 = vadd.f32 %v9396_v36, %v4210_v27  ;;  %v3379_v50 = vpack.c.b16 %v3288_v43, %v3285_v2 }
 0x26e   : > { %v3374_v16 = vunpack.c.l.b16 %v9648_v47  ;;  %5215 = vmatmul.msk.bf16.gmra.mxu2 %vm1422_vm3, %v9532_v30  ;;  %v3376_v52 = vunpack.c.l.b16 %v9650_v21  ;;  %v4341_v59 = vmax.f32 %v4277_v45, 0.0  ;;  %v3897_v5 = vadd.f32 %v9652_v61, %v9646_v34 }
 0x26f   : > { %v3378_v56 = vpack.c.b16 %v3287_v37, %v3284_v58  ;;  %v4211_v7 = vmul.f32 %v9351_v55, %v4061_v1  ;;  %v4342_v29 = vmax.f32 %v4278_v42, 0.0  ;;  %v3375_v45 = vunpack.c.h.b16 %v9648_v47  ;;  %v11282_v1 = vld [vmem:[#allocation114_spill] sm:$0xff]  ;;  %v11283_v42 = vld [vmem:[#allocation141_spill] sm:$0xff] }
 0x270   : > { %4403 = vxpose.xlu0.b32.cont [6/16] (narrow) %v4339_v8, 32  ;;  %v3423_v48 = vpack.c.b16 %v3376_v52, %v3374_v16  ;;  %v11277_v8 = vld [vmem:[#allocation169_spill] sm:$0xff]  ;;  %v4066_v27 = vadd.f32 %v11279_v53, %v3897_v5 }
 0x271   : > { %v9673_v28 = vpop.f32.mrf.mxu2  ;;  %v4279_v52 = vadd.f32 %v9396_v36, %v4211_v7 }
 0x272   : > { %3854 = vmatmul.bf16.gmra.mxu3 %v3423_v48  ;;  %v3293_v48 = vunpack.c.l.b16 %v11278_v54  ;;  %v4213_v34 = vmul.f32 %v9351_v55, %v4066_v27 }
 0x273   : > { %v4343_v11 = vmax.f32 %v4279_v52, 0.0 }
 0x274   : > { %v3899_v63 = vpop.f32.mrf.mxu1  ;;  %v3381_v39 = vpack.c.b16 %v3293_v48, %v3290_v20  ;;  %v4281_v60 = vadd.f32 %v9396_v36, %v4213_v34  ;;  %v11287_v34 = vld [vmem:[#allocation33_spill] sm:$0xff] }
 0x275   : > { %v9665_v10 = vpop.f32.mrf.mxu0 }
 0x277   : > { %3938 = vmatmul.bf16.gmra.mxu1 %v9583_v22  ;;  %v3369_v22 = vunpack.c.h.b16 %v9540_v13 }
 0x278   : > { %3769 = vmatmul.bf16.gmra.mxu0 %v9575_v24  ;;  %4404 = vxpose.xlu0.b32.cont [7/16] (narrow) %v4340_v32, 32 }
 0x279   : > { %v3421_v49 = vpack.c.b16 %v3372_v46, %v3369_v22  ;;  %v9692_v13 = vpop.f32.mrf.mxu2  ;;  %v3900_v46 = vadd.f32 %v3899_v63, %v9665_v10  ;;  %v3299_v10 = vunpack.c.l.b16 %v11283_v42  ;;  %v3297_v63 = vunpack.c.h.b16 %v11282_v1 }
 0x27c   : > { %v9683_v24 = vpop.f32.mrf.mxu1 }
 0x27d   : > { %v9676_v15 = vpop.f32.mrf.mxu0 }
 0x27e   : > { %5216 = vmatmul.msk.bf16.gmra.mxu2 %vm1422_vm3, %v3422_v25  ;;  %v3895_v25 = vadd.f32 %v9614_v26, %v9611_v51  ;;  %v3291_v51 = vunpack.c.h.b16 %v9188_v38  ;;  %v3294_v26 = vunpack.c.h.b16 %v11278_v54  ;;  %v3377_v38 = vunpack.c.h.b16 %v9650_v21  ;;  %v11280_v21 = vld [vmem:[#allocation23_spill] sm:$0xff] }
 0x27f   : > { %v4345_v54 = vmax.f32 %v4281_v60, 0.0 }
 0x280   : > { %4405 = vxpose.xlu0.b32.cont [8/16] (narrow) %v4341_v59, 32  ;;  %v4064_v16 = vadd.f32 %v11277_v8, %v3895_v25  ;;  %v3424_v14 = vpack.c.b16 %v3377_v38, %v3375_v45  ;;  %v3300_v25 = vunpack.c.h.b16 %v11283_v42 }
 0x281   : > { %v9714_v32 = vpop.f32.mrf.mxu2 }
 0x282   : > { %4018 = vmatmul.bf16.vlgmr.msrb.gmra.mxu3 %v3421_v49  ;;  %v3296_v49 = vunpack.c.l.b16 %v11282_v1 }
 0x284   : > { %v9698_v0 = vpop.f32.mrf.mxu1  ;;  %v3384_v8 = vpack.c.b16 %v3299_v10, %v3296_v49 }
 0x285   : > { %v9694_v40 = vpop.f32.mrf.mxu0 }
 0x286   : > { %v3905_v27 = vadd.f32 %v9698_v0, %v9694_v40 }
 0x287   : > { %3943 = vmatmul.bf16.gmra.mxu1 %v9597_v18  ;;  %v3382_v18 = vpack.c.b16 %v3294_v26, %v3291_v51  ;;  %v11284_v51 = vld [vmem:[#allocation98_spill] sm:$0xff] }
 0x288   : > { %3774 = vmatmul.bf16.gmra.mxu0 %v9589_v33  ;;  %4406 = vxpose.xlu0.b32.cont [9/16] (narrow) %v4342_v29, 32  ;;  %v4212_v33 = vmul.f32 %v9351_v55, %v4064_v16  ;;  %v3385_v16 = vpack.c.b16 %v3300_v25, %v3297_v63 }
 0x28a   : > { %v4280_v22 = vadd.f32 %v9396_v36, %v4212_v33  ;;  %v11285_v33 = vld [vmem:[#allocation6_spill] sm:$0xff] }
 0x28c   : > { %v9712_v41 = vpop.f32.mrf.mxu1  ;;  %v4344_v47 = vmax.f32 %v4280_v22, 0.0 }
 0x28d   : > { %v9709_v6 = vpop.f32.mrf.mxu0 }
 0x28e   : > { %5217 = vmatmul.msk.bf16.gmra.mxu2 %vm1422_vm3, %v9532_v30  ;;  %v11281_v30 = vld [vmem:[#allocation93_spill] sm:$0xff] }
 0x28f   : > { %v4069_v37 = vadd.f32 %v11281_v30, %v3900_v46  ;;  %v11286_v46 = vld [vmem:[#allocation99_spill] sm:$0xff]  ;;  %v11289_v30 = vld [vmem:[#allocation157_spill] sm:$0xff] }
 0x290   : > { %4407 = vxpose.xlu0.b32.cont [10/16] (narrow) %v4343_v11, 32 }
 0x291   : > { %v4214_v52 = vmul.f32 %v9351_v55, %v4069_v37 }
 0x292   : > { %4023 = vmatmul.bf16.gmra.mxu3 %v3424_v14 }
 0x293   : > { %v4282_v45 = vadd.f32 %v9396_v36, %v4214_v52 }
 0x294   : > { %v3909_v58 = vpop.f32.mrf.mxu1 }
 0x295   : > { %v3740_v59 = vpop.f32.mrf.mxu0  ;;  %v4346_v22 = vmax.f32 %v4282_v45, 0.0 }
 0x296   : > { %v3910_v61 = vadd.f32 %v3909_v58, %v3740_v59 }
 0x297   : > { %3948 = vmatmul.bf16.gmra.mxu1 %v3379_v50  ;;  %v3902_v50 = vadd.f32 %v9683_v24, %v9676_v15 }
 0x298   : > { %3779 = vmatmul.bf16.gmra.mxu0 %v3378_v56  ;;  %v4079_v2 = vadd.f32 %v11280_v21, %v3910_v61  ;;  %4408 = vxpose.xlu0.b32.cont [11/16] (narrow) %v4344_v47, 32  ;;  %v4074_v61 = vadd.f32 %v11287_v34, %v3905_v27  ;;  %v11294_v27 = vld [vmem:[#allocation20_spill] sm:$0xff] }
 0x299   : > { %v4071_v5 = vadd.f32 %v11285_v33, %v3902_v50 }
 0x29a   : > { %v4218_v43 = vmul.f32 %v9351_v55, %v4079_v2  ;;  %v11288_v2 = vld [vmem:[#allocation109_spill] sm:$0xff]  ;;  %v4216_v10 = vmul.f32 %v9351_v55, %v4074_v61 }
 0x29b   : > { %v4215_v24 = vmul.f32 %v9351_v55, %v4071_v5  ;;  %v2939_v37 = vpack.c.bf16 %v11289_v30, %v11288_v2 }
 0x29c   : > { %v4286_v56 = vadd.f32 %v9396_v36, %v4218_v43  ;;  %v3911_v29 = vpop.f32.mrf.mxu1  ;;  %v11290_v43 = vld [vmem:[#allocation76_spill] sm:$0xff] }
 0x29d   : > { %v3742_v7 = vpop.f32.mrf.mxu0  ;;  %v4283_v21 = vadd.f32 %v9396_v36, %v4215_v24  ;;  %v3302_v40 = vunpack.c.l.b16 %v11290_v43  ;;  %v3303_v0 = vunpack.c.h.b16 %v11290_v43  ;;  %v3305_v1 = vunpack.c.l.b16 %v2939_v37 }
 0x29e   : > { %v3912_v20 = vadd.f32 %v3911_v29, %v3742_v7  ;;  %v4350_v48 = vmax.f32 %v4286_v56, 0.0  ;;  %v3306_v49 = vunpack.c.h.b16 %v2939_v37  ;;  %v11291_v29 = vld [vmem:[#allocation57_spill] sm:$0xff]  ;;  %v11296_v37 = vld [vmem:[#allocation94_spill] sm:$0xff] }
 0x29f   : > { %v4347_v25 = vmax.f32 %v4283_v21, 0.0  ;;  %v3387_v56 = vpack.c.b16 %v3305_v1, %v3302_v40 }
 0x2a0   : > { %v4081_v26 = vadd.f32 %v11284_v51, %v3912_v20  ;;  %4409 = vxpose.xlu0.b32.cont [12/16] (narrow) %v4345_v54, 32  ;;  %4430 = vxpose.xlu2.b32.start [1/16] (narrow) %v4350_v48, 32  ;;  %v3388_v50 = vpack.c.b16 %v3306_v49, %v3303_v0  ;;  %v11292_v20 = vld [vmem:[#allocation55_spill] sm:$0xff]  ;;  %v4284_v51 = vadd.f32 %v9396_v36, %v4216_v10 }
 0x2a2   : > { %v4219_v11 = vmul.f32 %v9351_v55, %v4081_v26 }
 0x2a4   : > { %v4287_v15 = vadd.f32 %v9396_v36, %v4219_v11  ;;  %v3914_v53 = vpop.f32.mrf.mxu1  ;;  %v4348_v11 = vmax.f32 %v4284_v51, 0.0 }
 0x2a5   : > { %v3745_v38 = vpop.f32.mrf.mxu0 }
 0x2a6   : > { %v3915_v14 = vadd.f32 %v3914_v53, %v3745_v38  ;;  %v4351_v59 = vmax.f32 %v4287_v15, 0.0  ;;  %v11293_v38 = vld [vmem:[#allocation61_spill] sm:$0xff] }
 0x2a7   : > { %3953 = vmatmul.bf16.gmra.mxu1 %v3382_v18  ;;  %v3907_v18 = vadd.f32 %v9712_v41, %v9709_v6 }
 0x2a8   : > { %3784 = vmatmul.bf16.gmra.mxu0 %v3381_v39  ;;  %v4084_v58 = vadd.f32 %v11286_v46, %v3915_v14  ;;  %4410 = vxpose.xlu0.b32.cont [13/16] (narrow) %v4346_v22, 32  ;;  %v3308_v14 = vunpack.c.l.b16 %v11294_v27  ;;  %v11295_v22 = vld [vmem:[#allocation118_spill] sm:$0xff]  ;;  %v3309_v46 = vunpack.c.h.b16 %v11294_v27 }
 0x2a9   : > { %4431 = vxpose.xlu2.b32.cont [2/16] (narrow) %v4351_v59, 32  ;;  %v4076_v54 = vadd.f32 %v11292_v20, %v3907_v18  ;;  %v3311_v59 = vunpack.c.l.b16 %v11295_v22  ;;  %v11297_v18 = vld [vmem:[#allocation95_spill] sm:$0xff] }
 0x2aa   : > { %v4220_v47 = vmul.f32 %v9351_v55, %v4084_v58  ;;  %v3312_v58 = vunpack.c.h.b16 %v11295_v22 }
 0x2ab   : > { %v4217_v41 = vmul.f32 %v9351_v55, %v4076_v54  ;;  %v3390_v61 = vpack.c.b16 %v3311_v59, %v3308_v14  ;;  %v11301_v14 = vld [vmem:[#allocation165_spill] sm:$0xff] }
 0x2ac   : > { %v4288_v39 = vadd.f32 %v9396_v36, %v4220_v47  ;;  %v3916_v42 = vpop.f32.mrf.mxu1  ;;  %v3391_v21 = vpack.c.b16 %v3312_v58, %v3309_v46  ;;  %v3320_v58 = vunpack.c.l.b16 %v9581_v57 }
 0x2ad   : > { %v3747_v60 = vpop.f32.mrf.mxu0  ;;  %v4285_v24 = vadd.f32 %v9396_v36, %v4217_v41 }
 0x2ae   : > { %v3917_v63 = vadd.f32 %v3916_v42, %v3747_v60  ;;  %v4352_v7 = vmax.f32 %v4288_v39, 0.0 }
 0x2af   : > { %v4349_v2 = vmax.f32 %v4285_v24, 0.0 }
 0x2b0   : > { %v4086_v52 = vadd.f32 %v11291_v29, %v3917_v63  ;;  %4411 = vxpose.xlu0.b32.cont [14/16] (narrow) %v4347_v25, 32  ;;  %v11298_v63 = vld [vmem:[#allocation62_spill] sm:$0xff] }
 0x2b1   : > { %4432 = vxpose.xlu2.b32.cont [3/16] (narrow) %v4352_v7, 32  ;;  %v3314_v25 = vunpack.c.l.b16 %v11298_v63  ;;  %v11299_v7 = vld [vmem:[#allocation30_spill] sm:$0xff] }
 0x2b2   : > { %v4221_v48 = vmul.f32 %v9351_v55, %v4086_v52  ;;  %v3317_v29 = vunpack.c.l.b16 %v11299_v7  ;;  %v3315_v52 = vunpack.c.h.b16 %v11298_v63 }
 0x2b4   : > { %v4289_v6 = vadd.f32 %v9396_v36, %v4221_v48  ;;  %v3919_v33 = vpop.f32.mrf.mxu1  ;;  %v3318_v48 = vunpack.c.h.b16 %v11299_v7  ;;  %v6109_v7 = vpop.permute.xlu0 %6108 }
 0x2b5   : > { %v3750_v26 = vpop.f32.mrf.mxu0 }
 0x2b6   : > { %v3920_v5 = vadd.f32 %v3919_v33, %v3750_v26  ;;  %v4353_v45 = vmax.f32 %v4289_v6, 0.0  ;;  %v3393_v26 = vpack.c.b16 %v3317_v29, %v3314_v25  ;;  %v3394_v41 = vpack.c.b16 %v3318_v48, %v3315_v52  ;;  %v11300_v33 = vld [vmem:[#allocation164_spill] sm:$0xff] }
 0x2b7   : > { %3958 = vmatmul.bf16.gmra.mxu1 %v3385_v16 }
 0x2b8   : > { %3789 = vmatmul.bf16.gmra.mxu0 %v3384_v8  ;;  %v4089_v15 = vadd.f32 %v11293_v38, %v3920_v5  ;;  %4412 = vxpose.xlu0.b32.cont [15/16] (narrow) %v4348_v11, 32 }
 0x2b9   : > { %4433 = vxpose.xlu2.b32.cont [4/16] (narrow) %v4353_v45, 32 }
 0x2ba   : > { %v4222_v53 = vmul.f32 %v9351_v55, %v4089_v15  ;;  %v9787_v15 = vpop.permute.xlu2 %6103 }
 0x2bc   : > { %v4290_v8 = vadd.f32 %v9396_v36, %v4222_v53  ;;  %v3921_v47 = vpop.f32.mrf.mxu1 }
 0x2bd   : > { %v3752_v34 = vpop.f32.mrf.mxu0 }
 0x2be   : > { %v3922_v16 = vadd.f32 %v3921_v47, %v3752_v34  ;;  %v4354_v30 = vmax.f32 %v4290_v8, 0.0  ;;  %v3323_v34 = vunpack.c.l.b16 %v9565_v9  ;;  %v3321_v8 = vunpack.c.h.b16 %v9581_v57 }
 0x2bf   : > { %v3324_v47 = vunpack.c.h.b16 %v9565_v9 }
 0x2c0   : > { %v4091_v43 = vadd.f32 %v11296_v37, %v3922_v16  ;;  %4413 = vxpose.xlu0.b32.end [16/16] (narrow) %v4349_v2, 32 }
 0x2c1   : > { %4434 = vxpose.xlu2.b32.cont [5/16] (narrow) %v4354_v30, 32  ;;  %v3397_v37 = vpack.c.b16 %v3324_v47, %v3321_v8  ;;  %v6124_v47 = vpop.permute.xlu0 %6123 }
 0x2c2   : > { %v4223_v40 = vmul.f32 %v9351_v55, %v4091_v43 }
 0x2c4   : > { %v4291_v60 = vadd.f32 %v9396_v36, %v4223_v40  ;;  %v3924_v39 = vpop.f32.mrf.mxu1  ;;  %v9798_v40 = vpop.permute.xlu2 %6118 }
 0x2c5   : > { %v3755_v0 = vpop.f32.mrf.mxu0 }
 0x2c6   : > { %v3925_v1 = vadd.f32 %v3924_v39, %v3755_v0  ;;  %v4355_v49 = vmax.f32 %v4291_v60, 0.0  ;;  %v11302_v0 = vld [vmem:[#allocation115_spill] sm:$0xff] }
 0x2c7   : > { %3963 = vmatmul.bf16.gmra.mxu1 %v3388_v50  ;;  %v9782_v50 = vpop.permute.xlu1 %6098 }
 0x2c8   : > { %3794 = vmatmul.bf16.gmra.mxu0 %v3387_v56  ;;  %v4094_v42 = vadd.f32 %v11297_v18, %v3925_v1 }
 0x2c9   : > { %4435 = vxpose.xlu2.b32.cont [6/16] (narrow) %v4355_v49, 32 }
 0x2ca   : > { %v4224_v10 = vmul.f32 %v9351_v55, %v4094_v42 }
 0x2cc   : > { %v4292_v54 = vadd.f32 %v9396_v36, %v4224_v10  ;;  %v3926_v51 = vpop.f32.mrf.mxu1  ;;  %v11303_v10 = vld [vmem:[#allocation43_spill] sm:$0xff]  ;;  %v9806_v25 = vpop.permute.xlu2 %6133 }
 0x2cd   : > { %v3757_v20 = vpop.f32.mrf.mxu0 }
 0x2ce   : > { %v3927_v56 = vadd.f32 %v3926_v51, %v3757_v20  ;;  %v4356_v6 = vmax.f32 %v4292_v54, 0.0 }
 0x2cf   : > { %v9790_v59 = vpop.permute.xlu1 %6113 }
 0x2d0   : > { %v4096_v5 = vadd.f32 %v11300_v33, %v3927_v56 }
 0x2d1   : > { %4436 = vxpose.xlu2.b32.cont [7/16] (narrow) %v4356_v6, 32  ;;  %v11304_v6 = vld [vmem:[#allocation51_spill] sm:$0xff] }
 0x2d2   : > { %v4225_v11 = vmul.f32 %v9351_v55, %v4096_v5  ;;  %v5836_v33 = vunpack.i.h.bf16 %v11304_v6  ;;  %v11305_v5 = vld [vmem:[#allocation107_spill] sm:$0xff] }
 0x2d4   : > { %v4293_v38 = vadd.f32 %v9396_v36, %v4225_v11  ;;  %v3929_v24 = vpop.f32.mrf.mxu1 }
 0x2d5   : > { %v3760_v45 = vpop.f32.mrf.mxu0 }
 0x2d6   : > { %v3930_v53 = vadd.f32 %v3929_v24, %v3760_v45  ;;  %v4357_v27 = vmax.f32 %v4293_v38, 0.0  ;;  %v5835_v45 = vunpack.i.l.bf16 %v11304_v6  ;;  %v11306_v24 = vld [vmem:[#allocation110_spill] sm:$0xff]  ;;  %v6125_v6 = vunpack.i.l.bf16 %v6124_v47 }
 0x2d7   : > { %3968 = vmatmul.bf16.gmra.mxu1 %v3391_v21  ;;  %v9802_v1 = vpop.permute.xlu1 %6128 }
 0x2d8   : > { %3799 = vmatmul.bf16.gmra.mxu0 %v3390_v61  ;;  %v4099_v22 = vadd.f32 %v11301_v14, %v3930_v53  ;;  %v3396_v61 = vpack.c.b16 %v3323_v34, %v3320_v58  ;;  %v2750_v53 = vsel %vm1422_vm3, %v11306_v24, %v5836_v33  ;;  %v6111_v14 = vunpack.i.h.bf16 %v6109_v7  ;;  %v11307_v58 = vld [vmem:[#allocation149_spill] sm:$0xff] }
 0x2d9   : > { %4437 = vxpose.xlu2.b32.cont [8/16] (narrow) %v4357_v27, 32  ;;  %v9820_v27 = vpop.permute.xlu2 %6148  ;;  %v6126_v24 = vunpack.i.h.bf16 %v6124_v47  ;;  %v6136_v47 = vunpack.i.h.bf16 %v9806_v25 }
 0x2da   : > { %v4226_v46 = vmul.f32 %v9351_v55, %v4099_v22  ;;  %v6110_v22 = vunpack.i.l.bf16 %v6109_v7 }
 0x2dc   : > { %v4294_v2 = vadd.f32 %v9396_v36, %v4226_v46  ;;  %v3931_v30 = vpop.f32.mrf.mxu1  ;;  %v6106_v46 = vunpack.i.h.bf16 %v9787_v15 }
 0x2dd   : > { %v3762_v16 = vpop.f32.mrf.mxu0 }
 0x2de   : > { %v3932_v21 = vadd.f32 %v3931_v30, %v3762_v16  ;;  %v4358_v43 = vmax.f32 %v4294_v2, 0.0 }
 0x2df   : > { %v9810_v48 = vpop.permute.xlu1 %6143 }
 0x2e0   : > { %v4101_v60 = vadd.f32 %v11302_v0, %v3932_v21  ;;  %v6105_v21 = vunpack.i.l.bf16 %v9787_v15  ;;  %v6116_v0 = vunpack.i.h.bf16 %v9790_v59  ;;  %v11310_v15 = vld [vmem:[#allocation172_spill] sm:$0xff] }
 0x2e1   : > { %4438 = vxpose.xlu2.b32.cont [9/16] (narrow) %v4358_v43, 32  ;;  %v6121_v43 = vunpack.i.h.bf16 %v9798_v40 }
 0x2e2   : > { %v4227_v39 = vmul.f32 %v9351_v55, %v4101_v60 }
 0x2e4   : > { %v4295_v9 = vadd.f32 %v9396_v36, %v4227_v39  ;;  %v3934_v49 = vpop.f32.mrf.mxu1  ;;  %v6120_v39 = vunpack.i.l.bf16 %v9798_v40 }
 0x2e5   : > { %v3765_v57 = vpop.f32.mrf.mxu0 }
 0x2e6   : > { %v3935_v18 = vadd.f32 %v3934_v49, %v3765_v57  ;;  %v4359_v42 = vmax.f32 %v4295_v9, 0.0  ;;  %v6115_v57 = vunpack.i.l.bf16 %v9790_v59 }
 0x2e7   : > { %3973 = vmatmul.bf16.gmra.mxu1 %v3394_v41  ;;  %v6100_v41 = vunpack.i.l.bf16 %v9782_v50 }
 0x2e8   : > { %3804 = vmatmul.bf16.gmra.mxu0 %v3393_v26  ;;  %v4104_v63 = vadd.f32 %v11303_v10, %v3935_v18  ;;  %v6101_v26 = vunpack.i.h.bf16 %v9782_v50  ;;  %v11308_v50 = vld [vmem:[#allocation148_spill] sm:$0xff]  ;;  %v2780_v10 = vsel %vm1453_vm4, %v2750_v53, %v6106_v46 }
 0x2e9   : > { %4439 = vxpose.xlu2.b32.cont [10/16] (narrow) %v4359_v42, 32  ;;  %v2843_v8 = vsel %vm1422_vm3, %v11308_v50, %v6100_v41  ;;  %v2812_v40 = vsel %vm1484_vm5, %v2780_v10, %v6116_v0  ;;  %v11311_v53 = vld [vmem:[#allocation12_spill] sm:$0xff]  ;;  %v11314_v0 = vld [vmem:[#allocation145_spill] sm:$0xff] }
 0x2ea   : > { %v4228_v29 = vmul.f32 %v9351_v55, %v4104_v63  ;;  %v2844_v34 = vsel %vm1422_vm3, %v11307_v58, %v6101_v26  ;;  %v2875_v42 = vsel %vm1453_vm4, %v2843_v8, %v6110_v22  ;;  %v9838_v63 = vpop.permute.xlu1 %6158  ;;  %v11312_v22 = vld [vmem:[#allocation144_spill] sm:$0xff] }
 0x2eb   : > { %v2876_v18 = vsel %vm1453_vm4, %v2844_v34, %v6111_v14  ;;  %v2845_v46 = vsel %vm1422_vm3, %v11312_v22, %v6125_v6 }
 0x2ec   : > { %v4296_v20 = vadd.f32 %v9396_v36, %v4228_v29  ;;  %v3936_v54 = vpop.f32.mrf.mxu1 }
 0x2ed   : > { %v3767_v52 = vpop.f32.mrf.mxu0 }
 0x2ee   : > { %v3937_v51 = vadd.f32 %v3936_v54, %v3767_v52  ;;  %v4360_v56 = vmax.f32 %v4296_v20, 0.0  ;;  %v2908_v52 = vsel %vm1484_vm5, %v2876_v18, %v6121_v43  ;;  %v2907_v20 = vsel %vm1484_vm5, %v2875_v42, %v6120_v39 }
 0x2ef   : > { %v2955_v41 = vpack.c.bf16 %v2908_v52, %v2812_v40  ;;  %v6130_v43 = vunpack.i.l.bf16 %v9802_v1  ;;  %v6146_v18 = vunpack.i.h.bf16 %v9810_v48 }
 0x2f0   : > { %v4106_v11 = vadd.f32 %v11305_v5, %v3937_v51  ;;  %v6139_v5 = vpop.permute.xlu0 %6138 }
 0x2f1   : > { %4440 = vxpose.xlu2.b32.cont [11/16] (narrow) %v4360_v56, 32  ;;  %v9853_v56 = vpop.permute.xlu2 %6163  ;;  %v6141_v42 = vunpack.i.h.bf16 %v6139_v5 }
 0x2f2   : > { %v4229_v38 = vmul.f32 %v9351_v55, %v4106_v11  ;;  %v11309_v55 = vld [vmem:[#allocation111_spill] sm:$0xff]  ;;  %v9859_v34 = vpop.permute.xlu1 %6173 }
 0x2f3   : > { %v2749_v30 = vsel %vm1422_vm3, %v11309_v55, %v5835_v45 }
 0x2f4   : > { %v4297_v2 = vadd.f32 %v9396_v36, %v4229_v38  ;;  %v3939_v60 = vpop.f32.mrf.mxu1  ;;  %v2779_v29 = vsel %vm1453_vm4, %v2749_v30, %v6105_v21  ;;  %v6135_v38 = vunpack.i.l.bf16 %v9806_v25  ;;  %v6131_v21 = vunpack.i.h.bf16 %v9802_v1 }
 0x2f5   : > { %v3770_v16 = vpop.f32.mrf.mxu0  ;;  %v2811_v59 = vsel %vm1484_vm5, %v2779_v29, %v6115_v57  ;;  %v6145_v25 = vunpack.i.l.bf16 %v9810_v48  ;;  %v11317_v48 = vld [vmem:[#allocation156_spill] sm:$0xff] }
 0x2f6   : > { %v3940_v9 = vadd.f32 %v3939_v60, %v3770_v16  ;;  %v4361_v49 = vmax.f32 %v4297_v2, 0.0  ;;  %v2953_v26 = vpack.c.bf16 %v2907_v20, %v2811_v59  ;;  %v3330_v16 = vunpack.c.h.b16 %v2955_v41  ;;  %v11313_v2 = vld [vmem:[#allocation47_spill] sm:$0xff] }
 0x2f7   : > { %3978 = vmatmul.bf16.gmra.mxu1 %v3397_v37  ;;  %v5841_v55 = vunpack.i.h.bf16 %v11313_v2  ;;  %v5840_v30 = vunpack.i.l.bf16 %v11313_v2  ;;  %v2846_v60 = vsel %vm1422_vm3, %v11314_v0, %v6126_v24  ;;  %v2877_v39 = vsel %vm1453_vm4, %v2845_v46, %v6135_v38  ;;  %v11315_v20 = vld [vmem:[#allocation59_spill] sm:$0xff] }
 0x2f8   : > { %3809 = vmatmul.bf16.gmra.mxu0 %v3396_v61  ;;  %v4109_v7 = vadd.f32 %v11310_v15, %v3940_v9  ;;  %v9849_v61 = vld [vmem:[%s10409_s2] ss:$0 sm:$0xff]  ;;  %v3326_v58 = vunpack.c.l.b16 %v2953_v26  ;;  %v3327_v8 = vunpack.c.h.b16 %v2953_v26  ;;  %v6140_v15 = vunpack.i.l.bf16 %v6139_v5  ;;  %v6154_v6 = vpop.permute.xlu0 %6153 }
 0x2f9   : > { %4441 = vxpose.xlu2.b32.cont [12/16] (narrow) %v4361_v49, 32  ;;  %v9873_v9 = vld [vmem:[%s10410_s3] ss:$0 sm:$0xff]  ;;  %v9878_v59 = vpop.permute.xlu2 %6178  ;;  %v2878_v52 = vsel %vm1453_vm4, %v2846_v60, %v6136_v47  ;;  %v2909_v5 = vsel %vm1484_vm5, %v2877_v39, %v6145_v25  ;;  %v6150_v2 = vunpack.i.l.bf16 %v9820_v27  ;;  %v6161_v25 = vunpack.i.h.bf16 %v9838_v63 }
 0x2fa   : > { %v4230_v54 = vmul.f32 %v9849_v61, %v4109_v7  ;;  %v3400_v29 = vpack.c.b16 %v3330_v16, %v3327_v8  ;;  %v6151_v16 = vunpack.i.h.bf16 %v9820_v27 }
 0x2fc   : > { %v4298_v37 = vadd.f32 %v9396_v36, %v4230_v54  ;;  %v3941_v33 = vpop.f32.mrf.mxu1  ;;  %v3329_v36 = vunpack.c.l.b16 %v2955_v41  ;;  %v2752_v54 = vsel %vm1422_vm3, %v11315_v20, %v5841_v55  ;;  %v11318_v55 = vld [vmem:[#allocation21_spill] sm:$0xff]  ;;  %v6155_v20 = vunpack.i.l.bf16 %v6154_v6 }
 0x2fd   : > { %v3772_v51 = vpop.f32.mrf.mxu0  ;;  %v2782_v41 = vsel %vm1453_vm4, %v2752_v54, %v6131_v21 }
 0x2fe   : > { %v3942_v11 = vadd.f32 %v3941_v33, %v3772_v51  ;;  %v4362_v45 = vmax.f32 %v4298_v37, 0.0  ;;  %v3399_v1 = vpack.c.b16 %v3329_v36, %v3326_v58  ;;  %v11316_v51 = vld [vmem:[#allocation142_spill] sm:$0xff]  ;;  %v2814_v38 = vsel %vm1484_vm5, %v2782_v41, %v6141_v42 }
 0x2ff   : > { %v2751_v37 = vsel %vm1422_vm3, %v11316_v51, %v5840_v30  ;;  %v6160_v42 = vunpack.i.l.bf16 %v9838_v63 }
 0x300   : > { %v4111_v14 = vadd.f32 %v11311_v53, %v3942_v11  ;;  %v2781_v26 = vsel %vm1453_vm4, %v2751_v37, %v6130_v43  ;;  %v2910_v11 = vsel %vm1484_vm5, %v2878_v52, %v6146_v18  ;;  %v9893_v53 = vpop.permute.xlu1 %6188  ;;  %v6169_v0 = vpop.permute.xlu0 %6168  ;;  %v6156_v52 = vunpack.i.h.bf16 %v6154_v6 }
 0x301   : > { %4442 = vxpose.xlu2.b32.cont [13/16] (narrow) %v4362_v45, 32  ;;  %v2813_v45 = vsel %vm1484_vm5, %v2781_v26, %v6140_v15  ;;  %v2959_v58 = vpack.c.bf16 %v2910_v11, %v2814_v38  ;;  %v9899_v47 = vpop.permute.xlu2 %6193  ;;  %v11321_v15 = vld [vmem:[#allocation139_spill] sm:$0xff]  ;;  %v6171_v54 = vunpack.i.h.bf16 %v6169_v0 }
 0x302   : > { %v4231_v50 = vmul.f32 %v9849_v61, %v4111_v14  ;;  %v2957_v46 = vpack.c.bf16 %v2909_v5, %v2813_v45  ;;  %v11322_v5 = vld [vmem:[#allocation135_spill] sm:$0xff] }
 0x303   : > { %v3335_v43 = vunpack.c.l.b16 %v2959_v58 }
 0x304   : > { %v4299_v49 = vadd.f32 %v9873_v9, %v4231_v50  ;;  %v3944_v10 = vpop.f32.mrf.mxu1  ;;  %v3332_v21 = vunpack.c.l.b16 %v2957_v46  ;;  %v3333_v39 = vunpack.c.h.b16 %v2957_v46  ;;  %v11324_v46 = vld [vmem:[#allocation60_spill] sm:$0xff] }
 0x305   : > { %v3775_v57 = vpop.f32.mrf.mxu0 }
 0x306   : > { %v3945_v7 = vadd.f32 %v3944_v10, %v3775_v57  ;;  %v4363_v40 = vmax.f32 %v4299_v49, 0.0  ;;  %v3336_v57 = vunpack.c.h.b16 %v2959_v58  ;;  %v11319_v49 = vld [vmem:[#allocation176_spill] sm:$0xff]  ;;  %v3402_v37 = vpack.c.b16 %v3335_v43, %v3332_v21 }
 0x307   : > { %3983 = vmatmul.bf16.gmra.mxu1 %v3400_v29  ;;  %v5846_v18 = vunpack.i.h.bf16 %v11319_v49  ;;  %v5845_v27 = vunpack.i.l.bf16 %v11319_v49  ;;  %v11320_v10 = vld [vmem:[#allocation140_spill] sm:$0xff] }
 0x308   : > { %3814 = vmatmul.bf16.gmra.mxu0 %v3399_v1  ;;  %v4114_v33 = vadd.f32 %v11317_v48, %v3945_v7  ;;  %v2848_v1 = vsel %vm1422_vm3, %v11320_v10, %v6151_v16  ;;  %v2847_v7 = vsel %vm1422_vm3, %v11321_v15, %v6150_v2  ;;  %v6170_v48 = vunpack.i.l.bf16 %v6169_v0 }
 0x309   : > { %4443 = vxpose.xlu2.b32.cont [14/16] (narrow) %v4363_v40, 32  ;;  %v3403_v26 = vpack.c.b16 %v3336_v57, %v3333_v39  ;;  %v2754_v11 = vsel %vm1422_vm3, %v11322_v5, %v5846_v18  ;;  %v2880_v45 = vsel %vm1453_vm4, %v2848_v1, %v6161_v25  ;;  %v2879_v38 = vsel %vm1453_vm4, %v2847_v7, %v6160_v42  ;;  %v6184_v42 = vpop.permute.xlu0 %6183  ;;  %v9937_v1 = vpop.f32.mrf.mxu2 }
 0x30a   : > { %v4232_v24 = vmul.f32 %v9849_v61, %v4114_v33  ;;  %v9911_v33 = vpop.permute.xlu1 %6198  ;;  %v2911_v16 = vsel %vm1484_vm5, %v2879_v38, %v6170_v48  ;;  %v6176_v18 = vunpack.i.h.bf16 %v9859_v34  ;;  %v6175_v25 = vunpack.i.l.bf16 %v9859_v34 }
 0x30b   : > { %v6181_v34 = vunpack.i.h.bf16 %v9878_v59  ;;  %v6185_v48 = vunpack.i.l.bf16 %v6184_v42  ;;  %v6196_v38 = vunpack.i.h.bf16 %v9899_v47 }
 0x30c   : > { %v4300_v22 = vadd.f32 %v9873_v9, %v4232_v24  ;;  %v3946_v36 = vpop.f32.mrf.mxu1  ;;  %v11323_v24 = vld [vmem:[#allocation133_spill] sm:$0xff] }
 0x30d   : > { %v3777_v14 = vpop.f32.mrf.mxu0  ;;  %v2753_v6 = vsel %vm1422_vm3, %v11323_v24, %v5845_v27  ;;  %v6195_v24 = vunpack.i.l.bf16 %v9899_v47  ;;  %v11329_v47 = vld [vmem:[#allocation127_spill] sm:$0xff] }
 0x30e   : > { %v3947_v50 = vadd.f32 %v3946_v36, %v3777_v14  ;;  %v4364_v8 = vmax.f32 %v4300_v22, 0.0  ;;  %v6166_v14 = vunpack.i.h.bf16 %v9853_v56  ;;  %v6165_v22 = vunpack.i.l.bf16 %v9853_v56 }
 0x30f   : > { %v2784_v36 = vsel %vm1453_vm4, %v2754_v11, %v6156_v52 }
 0x310   : > { %v4116_v30 = vadd.f32 %v11318_v55, %v3947_v50  ;;  %v2783_v50 = vsel %vm1453_vm4, %v2753_v6, %v6155_v20  ;;  %v9927_v55 = vpop.permute.xlu2 %6203  ;;  %v2816_v56 = vsel %vm1484_vm5, %v2784_v36, %v6166_v14  ;;  %v6191_v14 = vunpack.i.h.bf16 %v9893_v53 }
 0x311   : > { %4444 = vxpose.xlu2.b32.cont [15/16] (narrow) %v4364_v8, 32  ;;  %v2912_v8 = vsel %vm1484_vm5, %v2880_v45, %v6171_v54 }
 0x312   : > { %v4233_v60 = vmul.f32 %v9849_v61, %v4116_v30  ;;  %v2815_v30 = vsel %vm1484_vm5, %v2783_v50, %v6165_v22  ;;  %v9934_v27 = vpop.permute.xlu1 %6208 }
 0x313   : > { %v2961_v0 = vpack.c.bf16 %v2911_v16, %v2815_v30 }
 0x314   : > { %v4301_v40 = vadd.f32 %v9873_v9, %v4233_v60  ;;  %v3949_v51 = vpop.f32.mrf.mxu1  ;;  %v2963_v60 = vpack.c.bf16 %v2912_v8, %v2816_v56  ;;  %v11328_v8 = vld [vmem:[#allocation126_spill] sm:$0xff] }
 0x315   : > { %v3780_v29 = vpop.f32.mrf.mxu0  ;;  %v3338_v15 = vunpack.c.l.b16 %v2961_v0  ;;  %v3339_v20 = vunpack.c.h.b16 %v2961_v0 }
 0x316   : > { %v3950_v63 = vadd.f32 %v3949_v51, %v3780_v29  ;;  %v4365_v41 = vmax.f32 %v4301_v40, 0.0  ;;  %v3341_v7 = vunpack.c.l.b16 %v2963_v60  ;;  %v11325_v29 = vld [vmem:[#allocation42_spill] sm:$0xff]  ;;  %v3342_v54 = vunpack.c.h.b16 %v2963_v60 }
 0x317   : > { %3988 = vmatmul.bf16.gmra.mxu1 %v3403_v26  ;;  %v5851_v40 = vunpack.i.h.bf16 %v11325_v29  ;;  %v5850_v51 = vunpack.i.l.bf16 %v11325_v29 }
 0x318   : > { %3819 = vmatmul.bf16.gmra.mxu0 %v3402_v37  ;;  %v4119_v58 = vadd.f32 %v11324_v46, %v3950_v63  ;;  %v6186_v37 = vunpack.i.h.bf16 %v6184_v42  ;;  %v6180_v63 = vunpack.i.l.bf16 %v9878_v59  ;;  %v9951_v6 = vpop.permute.xlu2 %6213  ;;  %v3405_v46 = vpack.c.b16 %v3341_v7, %v3338_v15 }
 0x319   : > { %4445 = vxpose.xlu2.b32.end [16/16] (narrow) %v4365_v41, 32  ;;  %v11327_v41 = vld [vmem:[#allocation171_spill] sm:$0xff]  ;;  %v6190_v59 = vunpack.i.l.bf16 %v9893_v53  ;;  %v3406_v36 = vpack.c.b16 %v3342_v54, %v3339_v20  ;;  %v2756_v16 = vsel %vm1422_vm3, %v11328_v8, %v5851_v40  ;;  %v2755_v56 = vsel %vm1422_vm3, %v11329_v47, %v5850_v51 }
 0x31a   : > { %v4234_v2 = vmul.f32 %v9849_v61, %v4119_v58  ;;  %v2849_v5 = vsel %vm1422_vm3, %v11327_v41, %v6175_v25  ;;  %v2785_v53 = vsel %vm1453_vm4, %v2755_v56, %v6180_v63  ;;  %v9969_v25 = vpop.f32.mrf.mxu2  ;;  %v6201_v20 = vunpack.i.h.bf16 %v9911_v33 }
 0x31b   : > { %v2881_v30 = vsel %vm1453_vm4, %v2849_v5, %v6185_v48  ;;  %v2817_v60 = vsel %vm1484_vm5, %v2785_v53, %v6190_v59  ;;  %v6200_v54 = vunpack.i.l.bf16 %v9911_v33  ;;  %v6210_v41 = vunpack.i.l.bf16 %v9934_v27  ;;  %v11330_v5 = vld [vmem:[#allocation167_spill] sm:$0xff] }
 0x31c   : > { %v4302_v43 = vadd.f32 %v9873_v9, %v4234_v2  ;;  %v3951_v39 = vpop.f32.mrf.mxu1  ;;  %v6205_v47 = vunpack.i.l.bf16 %v9927_v55  ;;  %v6215_v53 = vunpack.i.l.bf16 %v9951_v6 }
 0x31d   : > { %v3782_v21 = vpop.f32.mrf.mxu0 }
 0x31e   : > { %v3952_v57 = vadd.f32 %v3951_v39, %v3782_v21  ;;  %v4366_v49 = vmax.f32 %v4302_v43, 0.0  ;;  %v2786_v21 = vsel %vm1453_vm4, %v2756_v16, %v6181_v34 }
 0x31f   : > { %v2818_v0 = vsel %vm1484_vm5, %v2786_v21, %v6191_v14  ;;  %v11332_v14 = vld [vmem:[#allocation18_spill] sm:$0xff] }
 0x320   : > { %v4121_v10 = vadd.f32 %v9498_v23, %v3952_v57  ;;  %4462 = vxpose.xlu1.b32.start [1/16] (narrow) %v4366_v49, 32  ;;  %v11326_v23 = vld [vmem:[#allocation173_spill] sm:$0xff]  ;;  %v2913_v57 = vsel %vm1484_vm5, %v2881_v30, %v6195_v24  ;;  %v6219_v49 = vpop.permute.xlu1 %6218  ;;  %v6206_v30 = vunpack.i.h.bf16 %v9927_v55 }
 0x321   : > { %v2850_v26 = vsel %vm1422_vm3, %v11326_v23, %v6176_v18  ;;  %v2965_v15 = vpack.c.bf16 %v2913_v57, %v2817_v60  ;;  %v11333_v60 = vld [vmem:[#allocation27_spill] sm:$0xff] }
 0x322   : > { %v4235_v52 = vmul.f32 %v9849_v61, %v4121_v10  ;;  %v2882_v2 = vsel %vm1453_vm4, %v2850_v26, %v6186_v37  ;;  %v6211_v26 = vunpack.i.h.bf16 %v9934_v27  ;;  %v9989_v59 = vpop.f32.mrf.mxu2 }
 0x323   : > { %v2914_v39 = vsel %vm1484_vm5, %v2882_v2, %v6196_v38  ;;  %v3344_v34 = vunpack.c.l.b16 %v2965_v15  ;;  %v3345_v63 = vunpack.c.h.b16 %v2965_v15 }
 0x324   : > { %v4303_v45 = vadd.f32 %v9873_v9, %v4235_v52  ;;  %v3954_v22 = vpop.f32.mrf.mxu1  ;;  %v2967_v7 = vpack.c.bf16 %v2914_v39, %v2818_v0  ;;  %v9972_v52 = vpop.permute.xlu2 %6223 }
 0x325   : > { %v3785_v11 = vpop.f32.mrf.mxu0 }
 0x326   : > { %v3955_v58 = vadd.f32 %v3954_v22, %v3785_v11  ;;  %v4367_v50 = vmax.f32 %v4303_v45, 0.0  ;;  %v3347_v37 = vunpack.c.l.b16 %v2967_v7  ;;  %v3348_v23 = vunpack.c.h.b16 %v2967_v7  ;;  %v11331_v45 = vld [vmem:[#allocation166_spill] sm:$0xff] }
 0x327   : > { %3993 = vmatmul.bf16.gmra.mxu1 %v3406_v36  ;;  %v2852_v11 = vsel %vm1422_vm3, %v11330_v5, %v6201_v20  ;;  %v2851_v38 = vsel %vm1422_vm3, %v11331_v45, %v6200_v54  ;;  %v5856_v22 = vunpack.i.h.bf16 %v11332_v14  ;;  %v11335_v5 = vld [vmem:[#allocation158_spill] sm:$0xff] }
 0x328   : > { %3824 = vmatmul.bf16.gmra.mxu0 %v3405_v46  ;;  %v4124_v43 = vadd.f32 %v9559_v31, %v3955_v58  ;;  %4463 = vxpose.xlu1.b32.cont [2/16] (narrow) %v4367_v50, 32  ;;  %v9984_v33 = vpop.permute.xlu1 %6228  ;;  %v5855_v46 = vunpack.i.l.bf16 %v11332_v14  ;;  %v6221_v58 = vunpack.i.h.bf16 %v6219_v49  ;;  %v3408_v27 = vpack.c.b16 %v3347_v37, %v3344_v34 }
 0x329   : > { %v6220_v50 = vunpack.i.l.bf16 %v6219_v49  ;;  %v3409_v16 = vpack.c.b16 %v3348_v23, %v3345_v63  ;;  %v2883_v56 = vsel %vm1453_vm4, %v2851_v38, %v6210_v41  ;;  %v2884_v21 = vsel %vm1453_vm4, %v2852_v11, %v6211_v26  ;;  %v11334_v49 = vld [vmem:[#allocation168_spill] sm:$0xff] }
 0x32a   : > { %v4236_v18 = vmul.f32 %v9849_v61, %v4124_v43  ;;  %v6216_v43 = vunpack.i.h.bf16 %v9951_v6  ;;  %v2758_v39 = vsel %vm1422_vm3, %v11333_v60, %v5856_v22  ;;  %v2757_v55 = vsel %vm1422_vm3, %v11334_v49, %v5855_v46  ;;  %v10011_v63 = vpop.f32.mrf.mxu2  ;;  %v11336_v22 = vld [vmem:[#allocation19_spill] sm:$0xff] }
 0x32b   : > { %v2788_v6 = vsel %vm1453_vm4, %v2758_v39, %v6206_v30  ;;  %v6226_v23 = vunpack.i.h.bf16 %v9972_v52  ;;  %v5861_v46 = vunpack.i.h.bf16 %v11336_v22 }
 0x32c   : > { %v4304_v31 = vadd.f32 %v9873_v9, %v4236_v18  ;;  %v3956_v10 = vpop.f32.mrf.mxu1  ;;  %v6234_v57 = vpop.permute.xlu2 %6233  ;;  %v2915_v18 = vsel %vm1484_vm5, %v2883_v56, %v6220_v50  ;;  %v2820_v15 = vsel %vm1484_vm5, %v2788_v6, %v6216_v43  ;;  %v6230_v56 = vunpack.i.l.bf16 %v9984_v33 }
 0x32d   : > { %v3787_v42 = vpop.f32.mrf.mxu0  ;;  %v6235_v26 = vunpack.i.l.bf16 %v6234_v57 }
 0x32e   : > { %v3957_v29 = vadd.f32 %v3956_v10, %v3787_v42  ;;  %v4368_v40 = vmax.f32 %v4304_v31, 0.0  ;;  %v2916_v42 = vsel %vm1484_vm5, %v2884_v21, %v6221_v58  ;;  %v2787_v10 = vsel %vm1453_vm4, %v2757_v55, %v6205_v47  ;;  %v11338_v55 = vld [vmem:[#allocation162_spill] sm:$0xff] }
 0x32f   : > { %v2971_v54 = vpack.c.bf16 %v2916_v42, %v2820_v15  ;;  %v5860_v58 = vunpack.i.l.bf16 %v11336_v22  ;;  %v6231_v47 = vunpack.i.h.bf16 %v9984_v33  ;;  %v11339_v42 = vld [vmem:[#allocation161_spill] sm:$0xff] }
 0x330   : > { %v4126_v51 = vadd.f32 %v9618_v35, %v3957_v29  ;;  %4464 = vxpose.xlu1.b32.cont [3/16] (narrow) %v4368_v40, 32  ;;  %v6225_v40 = vunpack.i.l.bf16 %v9972_v52  ;;  %v6239_v34 = vpop.permute.xlu1 %6238 }
 0x331   : > { %v3353_v38 = vunpack.c.l.b16 %v2971_v54  ;;  %v3354_v14 = vunpack.c.h.b16 %v2971_v54  ;;  %v6241_v21 = vunpack.i.h.bf16 %v6239_v34 }
 0x332   : > { %v4237_v48 = vmul.f32 %v9849_v61, %v4126_v51  ;;  %v2853_v11 = vsel %vm1422_vm3, %v11335_v5, %v6225_v40  ;;  %v10032_v33 = vpop.f32.mrf.mxu2 }
 0x334   : > { %v4305_v24 = vadd.f32 %v9873_v9, %v4237_v48  ;;  %v3959_v36 = vpop.f32.mrf.mxu1  ;;  %v6244_v50 = vpop.permute.xlu2 %6243 }
 0x335   : > { %v3790_v35 = vpop.f32.mrf.mxu0 }
 0x336   : > { %v3960_v8 = vadd.f32 %v3959_v36, %v3790_v35  ;;  %v4369_v2 = vmax.f32 %v4305_v24, 0.0  ;;  %v11337_v36 = vld [vmem:[#allocation159_spill] sm:$0xff] }
 0x337   : > { %3998 = vmatmul.bf16.gmra.mxu1 %v3409_v16  ;;  %v2854_v52 = vsel %vm1422_vm3, %v11337_v36, %v6226_v23  ;;  %v6245_v16 = vunpack.i.l.bf16 %v6244_v50 }
 0x338   : > { %3829 = vmatmul.bf16.gmra.mxu0 %v3408_v27  ;;  %v4129_v0 = vadd.f32 %v9661_v4, %v3960_v8  ;;  %4465 = vxpose.xlu1.b32.cont [4/16] (narrow) %v4369_v2, 32  ;;  %v2819_v4 = vsel %vm1484_vm5, %v2787_v10, %v6215_v53  ;;  %v6236_v27 = vunpack.i.h.bf16 %v6234_v57  ;;  %v6246_v8 = vunpack.i.h.bf16 %v6244_v50  ;;  %v6249_v10 = vpop.permute.xlu1 %6248 }
 0x339   : > { %v2969_v20 = vpack.c.bf16 %v2915_v18, %v2819_v4  ;;  %v2760_v18 = vsel %vm1422_vm3, %v11338_v55, %v5861_v46  ;;  %v6250_v23 = vunpack.i.l.bf16 %v6249_v10  ;;  %v6251_v5 = vunpack.i.h.bf16 %v6249_v10  ;;  %v11343_v55 = vld [vmem:[#allocation153_spill] sm:$0xff] }
 0x33a   : > { %v4238_v31 = vmul.f32 %v9849_v61, %v4129_v0  ;;  %v6240_v0 = vunpack.i.l.bf16 %v6239_v34  ;;  %v2886_v57 = vsel %vm1453_vm4, %v2854_v52, %v6236_v27  ;;  %v11341_v52 = vld [vmem:[#allocation8_spill] sm:$0xff]  ;;  %v10047_v50 = vpop.f32.mrf.mxu2 }
 0x33b   : > { %v3350_v45 = vunpack.c.l.b16 %v2969_v20  ;;  %v3351_v24 = vunpack.c.h.b16 %v2969_v20  ;;  %v5866_v27 = vunpack.i.h.bf16 %v11341_v52 }
 0x33c   : > { %v4306_v29 = vadd.f32 %v9873_v9, %v4238_v31  ;;  %v3961_v51 = vpop.f32.mrf.mxu1  ;;  %v2759_v31 = vsel %vm1422_vm3, %v11339_v42, %v5860_v58  ;;  %v11344_v42 = vld [vmem:[#allocation150_spill] sm:$0xff] }
 0x33d   : > { %v3792_v7 = vpop.f32.mrf.mxu0  ;;  %v3411_v53 = vpack.c.b16 %v3353_v38, %v3350_v45  ;;  %v3412_v39 = vpack.c.b16 %v3354_v14, %v3351_v24  ;;  %v2789_v15 = vsel %vm1453_vm4, %v2759_v31, %v6230_v56  ;;  %v6254_v45 = vpop.permute.xlu2 %6253  ;;  %v11340_v24 = vld [vmem:[#allocation190_spill] sm:$0xff] }
 0x33e   : > { %v3962_v37 = vadd.f32 %v3961_v51, %v3792_v7  ;;  %v4370_v48 = vmax.f32 %v4306_v29, 0.0  ;;  %v2790_v7 = vsel %vm1453_vm4, %v2760_v18, %v6231_v47  ;;  %v2918_v29 = vsel %vm1484_vm5, %v2886_v57, %v6246_v8 }
 0x33f   : > { %v2821_v40 = vsel %vm1484_vm5, %v2789_v15, %v6240_v0  ;;  %v2822_v20 = vsel %vm1484_vm5, %v2790_v7, %v6241_v21  ;;  %v2855_v14 = vsel %vm1422_vm3, %v11340_v24, %v6250_v23  ;;  %v6256_v8 = vunpack.i.h.bf16 %v6254_v45  ;;  %v4414_v7 = vpop.trf.xlu0 }
 0x340   : > { %v4131_v41 = vadd.f32 %v9673_v28, %v3962_v37  ;;  %4466 = vxpose.xlu1.b32.cont [5/16] (narrow) %v4370_v48, 32  ;;  %v2885_v28 = vsel %vm1453_vm4, %v2853_v11, %v6235_v26  ;;  %v2975_v37 = vpack.c.bf16 %v2918_v29, %v2822_v20  ;;  %v6259_v22 = vpop.permute.xlu1 %6258  ;;  %v6255_v47 = vunpack.i.l.bf16 %v6254_v45 }
 0x341   : > { %v2917_v4 = vsel %vm1484_vm5, %v2885_v28, %v6245_v16  ;;  %v5865_v28 = vunpack.i.l.bf16 %v11341_v52  ;;  %v2887_v56 = vsel %vm1453_vm4, %v2855_v14, %v6085_v12  ;;  %v6261_v21 = vunpack.i.h.bf16 %v6259_v22 }
 0x342   : > { %v4239_v35 = vmul.f32 %v9849_v61, %v4131_v41  ;;  %v2973_v34 = vpack.c.bf16 %v2917_v4, %v2821_v40  ;;  %v3360_v36 = vunpack.c.h.b16 %v2975_v37  ;;  %v6260_v0 = vunpack.i.l.bf16 %v6259_v22  ;;  %v10076_v20 = vpop.f32.mrf.mxu2 }
 0x343   : > { %v2762_v18 = vsel %vm1422_vm3, %v11343_v55, %v5866_v27  ;;  %v2761_v31 = vsel %vm1422_vm3, %v11344_v42, %v5865_v28  ;;  %v2919_v3 = vsel %vm1484_vm5, %v2887_v56, %v6095_v44 }
 0x344   : > { %v4307_v30 = vadd.f32 %v9873_v9, %v4239_v35  ;;  %v3964_v43 = vpop.f32.mrf.mxu1  ;;  %v3356_v38 = vunpack.c.l.b16 %v2973_v34  ;;  %v3359_v35 = vunpack.c.l.b16 %v2975_v37  ;;  %v3357_v58 = vunpack.c.h.b16 %v2973_v34 }
 0x345   : > { %v3795_v2 = vpop.f32.mrf.mxu0  ;;  %v2791_v10 = vsel %vm1453_vm4, %v2761_v31, %v6255_v47 }
 0x346   : > { %v3965_v60 = vadd.f32 %v3964_v43, %v3795_v2  ;;  %v4371_v49 = vmax.f32 %v4307_v30, 0.0  ;;  %v2823_v4 = vsel %vm1484_vm5, %v2791_v10, %v6260_v0  ;;  %v4446_v0 = vpop.trf.xlu2 }
 0x347   : > { %4003 = vmatmul.bf16.gmra.mxu1 %v3412_v39  ;;  %v3415_v39 = vpack.c.b16 %v3360_v36, %v3357_v58 }
 0x348   : > { %3834 = vmatmul.bf16.gmra.mxu0 %v3411_v53  ;;  %v4134_v6 = vadd.f32 %v9692_v13, %v3965_v60  ;;  %4467 = vxpose.xlu1.b32.cont [6/16] (narrow) %v4371_v49, 32  ;;  %v3414_v53 = vpack.c.b16 %v3359_v35, %v3356_v38 }
 0x34a   : > { %v4240_v54 = vmul.f32 %v9849_v61, %v4134_v6  ;;  %v2792_v6 = vsel %vm1453_vm4, %v2762_v18, %v6256_v8 }
 0x34c   : > { %v4308_v13 = vadd.f32 %v9873_v9, %v4240_v54  ;;  %v3966_v48 = vpop.f32.mrf.mxu1  ;;  %v2977_v54 = vpack.c.bf16 %v2919_v3, %v2823_v4 }
 0x34d   : > { %v3797_v51 = vpop.f32.mrf.mxu0 }
 0x34e   : > { %v3967_v26 = vadd.f32 %v3966_v48, %v3797_v51  ;;  %v4372_v41 = vmax.f32 %v4308_v13, 0.0  ;;  %v3362_v48 = vunpack.c.l.b16 %v2977_v54  ;;  %v3363_v23 = vunpack.c.h.b16 %v2977_v54 }
 0x350   : > { %v4136_v11 = vadd.f32 %v9714_v32, %v3967_v26  ;;  %4468 = vxpose.xlu1.b32.cont [7/16] (narrow) %v4372_v41, 32  ;;  %v11342_v32 = vld [vmem:[#allocation191_spill] sm:$0xff]  ;;  %v4415_v41 = vpop.trf.xlu0 }
 0x351   : > { %v2856_v16 = vsel %vm1422_vm3, %v11342_v32, %v6251_v5  ;;  %v4526_v5 = vpack.c.bf16 %v4415_v41, %v4414_v7 }
 0x352   : > { %v4241_v46 = vmul.f32 %v9849_v61, %v4136_v11  ;;  %v2888_v57 = vsel %vm1453_vm4, %v2856_v16, %v6086_v62  ;;  %v2824_v62 = vsel %vm1484_vm5, %v2792_v6, %v6261_v21 }
 0x353   : > { %v2920_v15 = vsel %vm1484_vm5, %v2888_v57, %v6096_v17  ;;  %4652 = vmatpush.bf16.msra.mxu3 %v4526_v5 }
 0x354   : > { %v4309_v30 = vadd.f32 %v9873_v9, %v4241_v46  ;;  %v3969_v43 = vpop.f32.mrf.mxu1  ;;  %v2979_v51 = vpack.c.bf16 %v2920_v15, %v2824_v62  ;;  %v4155_v46 = vpop.f32.mrf.mxu2 }
 0x355   : > { %v3800_v2 = vpop.f32.mrf.mxu0 }
 0x356   : > { %v3970_v60 = vadd.f32 %v3969_v43, %v3800_v2  ;;  %v4373_v49 = vmax.f32 %v4309_v30, 0.0  ;;  %v3365_v19 = vunpack.c.l.b16 %v2979_v51  ;;  %v3366_v26 = vunpack.c.h.b16 %v2979_v51 }
 0x357   : > { %4008 = vmatmul.bf16.gmra.mxu1 %v3415_v39 }
 0x358   : > { %3839 = vmatmul.bf16.gmra.mxu0 %v3414_v53  ;;  %v4139_v12 = vadd.f32 %v9937_v1, %v3970_v60  ;;  %4469 = vxpose.xlu1.b32.cont [8/16] (narrow) %v4373_v49, 32  ;;  %v3417_v35 = vpack.c.b16 %v3365_v19, %v3362_v48  ;;  %v3418_v14 = vpack.c.b16 %v3366_v26, %v3363_v23  ;;  %v10114_v48 = vld [vmem:[%s10411_s4 + $0x10] sm:$0xff] }
 0x35a   : > { %v4242_v1 = vmul.f32 %v9849_v61, %v4139_v12  ;;  %v4447_v12 = vpop.trf.xlu2 }
 0x35b   : > { %v4527_v10 = vpack.c.bf16 %v4447_v12, %v4446_v0 }
 0x35c   : > { %v4310_v40 = vadd.f32 %v9873_v9, %v4242_v1  ;;  %v3971_v13 = vpop.f32.mrf.mxu1  ;;  %v4158_v16 = vpop.f32.mrf.mxu2 }
 0x35d   : > { %v3802_v29 = vpop.f32.mrf.mxu0  ;;  %4686 = vmatpush.bf16.msrb.mxu3 %v4527_v10 }
 0x35e   : > { %v3972_v44 = vadd.f32 %v3971_v13, %v3802_v29  ;;  %v4374_v34 = vmax.f32 %v4310_v40, 0.0 }
 0x360   : > { %v4141_v37 = vadd.f32 %v9969_v25, %v3972_v44  ;;  %4470 = vxpose.xlu1.b32.cont [9/16] (narrow) %v4374_v34, 32 }
 0x362   : > { %v4243_v17 = vmul.f32 %v9849_v61, %v4141_v37 }
 0x364   : > { %v4311_v45 = vadd.f32 %v9873_v9, %v4243_v17  ;;  %v3974_v38 = vpop.f32.mrf.mxu1  ;;  %v4160_v60 = vpop.f32.mrf.mxu2 }
 0x365   : > { %v3805_v11 = vpop.f32.mrf.mxu0 }
 0x366   : > { %v3975_v24 = vadd.f32 %v3974_v38, %v3805_v11  ;;  %v4375_v22 = vmax.f32 %v4311_v45, 0.0 }
 0x367   : > { %4013 = vmatmul.bf16.gmra.mxu1 %v3418_v14 }
 0x368   : > { %3844 = vmatmul.bf16.gmra.mxu0 %v3417_v35  ;;  %v4144_v25 = vadd.f32 %v9989_v59, %v3975_v24  ;;  %4471 = vxpose.xlu1.b32.cont [10/16] (narrow) %v4375_v22, 32  ;;  %v10089_v59 = vld [vmem:[%s10411_s4] sm:$0xff] }
 0x369   : > { %5238 = vmatmul.msk.bf16.vlgmr.msra.gmra.mxu3 %vm4629_vm6, %v10089_v59 }
 0x36a   : > { %v4244_v58 = vmul.f32 %v9849_v61, %v4144_v25  ;;  %v10125_v25 = vld [vmem:[%s10411_s4 + $0x18] sm:$0xff] }
 0x36c   : > { %v4312_v52 = vadd.f32 %v9873_v9, %v4244_v58  ;;  %v3976_v27 = vpop.f32.mrf.mxu1  ;;  %v4163_v62 = vpop.f32.mrf.mxu2 }
 0x36d   : > { %v3807_v36 = vpop.f32.mrf.mxu0 }
 0x36e   : > { %v3977_v28 = vadd.f32 %v3976_v27, %v3807_v36  ;;  %v4376_v8 = vmax.f32 %v4312_v52, 0.0 }
 0x370   : > { %v4146_v32 = vadd.f32 %v10011_v63, %v3977_v28  ;;  %4472 = vxpose.xlu1.b32.cont [11/16] (narrow) %v4376_v8, 32 }
 0x372   : > { %v4245_v2 = vmul.f32 %v9849_v61, %v4146_v32 }
 0x374   : > { %v4313_v47 = vadd.f32 %v9873_v9, %v4245_v2  ;;  %v3979_v56 = vpop.f32.mrf.mxu1  ;;  %v4165_v44 = vpop.f32.mrf.mxu2 }
 0x375   : > { %v3810_v30 = vpop.f32.mrf.mxu0  ;;  %v10131_v2 = vpop.f32.mrf.mxu3 }
 0x376   : > { %v3980_v21 = vadd.f32 %v3979_v56, %v3810_v30  ;;  %v4377_v43 = vmax.f32 %v4313_v47, 0.0 }
 0x378   : > { %v4149_v63 = vadd.f32 %v10032_v33, %v3980_v21  ;;  %4473 = vxpose.xlu1.b32.cont [12/16] (narrow) %v4377_v43, 32  ;;  %v10102_v33 = vld [vmem:[%s10411_s4 + $0x8] sm:$0xff] }
 0x379   : > { %5239 = vmatmul.msk.bf16.gmra.mxu3 %vm4629_vm6, %v10102_v33 }
 0x37a   : > { %v4246_v53 = vmul.f32 %v9849_v61, %v4149_v63 }
 0x37c   : > { %v4314_v49 = vadd.f32 %v9873_v9, %v4246_v53  ;;  %v3981_v57 = vpop.f32.mrf.mxu1  ;;  %v4168_v5 = vpop.f32.mrf.mxu2 }
 0x37d   : > { %v3812_v39 = vpop.f32.mrf.mxu0 }
 0x37e   : > { %v3982_v55 = vadd.f32 %v3981_v57, %v3812_v39  ;;  %v4378_v18 = vmax.f32 %v4314_v49, 0.0  ;;  %v10143_v57 = vpop.f32.mrf.mxu3 }
 0x380   : > { %v4151_v42 = vadd.f32 %v10047_v50, %v3982_v55  ;;  %4474 = vxpose.xlu1.b32.cont [13/16] (narrow) %v4378_v18, 32 }
 0x382   : > { %v4247_v31 = vmul.f32 %v9849_v61, %v4151_v42 }
 0x384   : > { %v4315_v3 = vadd.f32 %v9873_v9, %v4247_v31  ;;  %v3984_v4 = vpop.f32.mrf.mxu1  ;;  %v4170_v58 = vpop.f32.mrf.mxu2 }
 0x385   : > { %v3815_v6 = vpop.f32.mrf.mxu0 }
 0x386   : > { %v3985_v50 = vadd.f32 %v3984_v4, %v3815_v6  ;;  %v4379_v15 = vmax.f32 %v4315_v3, 0.0 }
 0x388   : > { %v4154_v1 = vadd.f32 %v10076_v20, %v3985_v50  ;;  %4475 = vxpose.xlu1.b32.cont [14/16] (narrow) %v4379_v15, 32 }
 0x389   : > { %5240 = vmatmul.msk.bf16.gmra.mxu3 %vm4629_vm6, %v10114_v48 }
 0x38a   : > { %v4248_v7 = vmul.f32 %v9849_v61, %v4154_v1 }
 0x38c   : > { %v4316_v40 = vadd.f32 %v9873_v9, %v4248_v7  ;;  %v3986_v54 = vpop.f32.mrf.mxu1  ;;  %v4173_v56 = vpop.f32.mrf.mxu2 }
 0x38d   : > { %v3817_v29 = vpop.f32.mrf.mxu0 }
 0x38e   : > { %v3987_v51 = vadd.f32 %v3986_v54, %v3817_v29  ;;  %v4380_v13 = vmax.f32 %v4316_v40, 0.0  ;;  %v4782_v40 = vld [vmem:[#allocation2] sm:$0x1]  ;;  %v6298_v54 = vmov 0  }
 0x38f   : > { %6262 = vset.pattern.permute.xlu2 %v6298_v54 }
 0x390   : > { %v4156_v34 = vadd.f32 %v4155_v46, %v3987_v51  ;;  %4476 = vxpose.xlu1.b32.cont [15/16] (narrow) %v4380_v13, 32  ;;  %4785 = vperm.xlu2 %6262, %v4782_v40  }
 0x392   : > { %v4249_v37 = vmul.f32 %v9849_v61, %v4156_v34 }
 0x394   : > { %v4317_v19 = vadd.f32 %v9873_v9, %v4249_v37  ;;  %v3989_v17 = vpop.f32.mrf.mxu1  ;;  %v4175_v31 = vpop.f32.mrf.mxu2 }
 0x395   : > { %v3820_v20 = vpop.f32.mrf.mxu0 }
 0x396   : > { %v3990_v23 = vadd.f32 %v3989_v17, %v3820_v20  ;;  %v4381_v26 = vmax.f32 %v4317_v19, 0.0 }
 0x398   : > { %v4159_v41 = vadd.f32 %v4158_v16, %v3990_v23  ;;  %4477 = vxpose.xlu1.b32.end [16/16] (narrow) %v4381_v26, 32  ;;  %v4546_v23 = vld [vmem:[%s10412_s5 + $0x10] sm:$0xff] }
 0x399   : > { %5241 = vmatmul.msk.bf16.gmra.mxu3 %vm4629_vm6, %v10125_v25  ;;  %4566 = vperm.xlu2 %6262, %v4546_v23  }
 0x39a   : > { %v4250_v11 = vmul.f32 %v9849_v61, %v4159_v41 }
 0x39c   : > { %v4318_v38 = vadd.f32 %v9873_v9, %v4250_v11  ;;  %v3991_v35 = vpop.f32.mrf.mxu1  ;;  %v4178_v7 = vpop.f32.mrf.mxu2 }
 0x39d   : > { %v3822_v45 = vpop.f32.mrf.mxu0 }
 0x39e   : > { %v3992_v24 = vadd.f32 %v3991_v35, %v3822_v45  ;;  %v4382_v14 = vmax.f32 %v4318_v38, 0.0 }
 0x3a0   : > { %v4161_v22 = vadd.f32 %v4160_v60, %v3992_v24  ;;  %4494 = vxpose.xlu0.b32.start [1/16] (narrow) %v4382_v14, 32  ;;  %v10138_v60 = vld [vmem:[%s10411_s4 + $0x20] sm:$0xff] }
 0x3a2   : > { %v4251_v46 = vmul.f32 %v9849_v61, %v4161_v22 }
 0x3a4   : > { %v4319_v52 = vadd.f32 %v9873_v9, %v4251_v46  ;;  %v3994_v27 = vpop.f32.mrf.mxu1  ;;  %v4180_v41 = vpop.f32.mrf.mxu2 }
 0x3a5   : > { %v3825_v36 = vpop.f32.mrf.mxu0 }
 0x3a6   : > { %v3995_v28 = vadd.f32 %v3994_v27, %v3825_v36  ;;  %v4383_v8 = vmax.f32 %v4319_v52, 0.0 }
 0x3a8   : > { %v4164_v32 = vadd.f32 %v4163_v62, %v3995_v28  ;;  %4495 = vxpose.xlu0.b32.cont [2/16] (narrow) %v4383_v8, 32  ;;  %v10147_v62 = vpop.f32.mrf.mxu3 }
 0x3a9   : > { %5242 = vmatmul.msk.bf16.gmra.mxu3 %vm4629_vm6, %v10138_v60 }
 0x3aa   : > { %v4252_v16 = vmul.f32 %v9849_v61, %v4164_v32 }
 0x3ac   : > { %v4320_v47 = vadd.f32 %v9873_v9, %v4252_v16  ;;  %v3996_v21 = vpop.f32.mrf.mxu1  ;;  %v4183_v28 = vpop.f32.mrf.mxu2 }
 0x3ad   : > { %v3827_v30 = vpop.f32.mrf.mxu0 }
 0x3ae   : > { %v3997_v43 = vadd.f32 %v3996_v21, %v3827_v30  ;;  %v4384_v63 = vmax.f32 %v4320_v47, 0.0 }
 0x3b0   : > { %v4166_v53 = vadd.f32 %v4165_v44, %v3997_v43  ;;  %4496 = vxpose.xlu0.b32.cont [3/16] (narrow) %v4384_v63, 32  ;;  %v10154_v20 = vpop.f32.mrf.mxu3 }
 0x3b2   : > { %v4253_v0 = vmul.f32 %v9849_v61, %v4166_v53 }
 0x3b4   : > { %v4321_v49 = vadd.f32 %v9873_v9, %v4253_v0  ;;  %v3999_v55 = vpop.f32.mrf.mxu1 }
 0x3b5   : > { %v3830_v39 = vpop.f32.mrf.mxu0 }
 0x3b6   : > { %v4000_v18 = vadd.f32 %v3999_v55, %v3830_v39  ;;  %v4385_v42 = vmax.f32 %v4321_v49, 0.0  ;;  %v4185_v39 = vpop.f32.mrf.mxu2 }
 0x3b8   : > { %v4169_v12 = vadd.f32 %v4168_v5, %v4000_v18  ;;  %4497 = vxpose.xlu0.b32.cont [4/16] (narrow) %v4385_v42, 32  ;;  %v4019_v14 = vpop.f32.mrf.mxu3  ;;  %v4550_v18 = vld [vmem:[%s10412_s5 + $0x30] sm:$0xff] }
 0x3b9   : > { %5243 = vmatmul.msk.bf16.vlgmr.msrb.gmra.mxu3 %vm4629_vm6, %v10089_v59  ;;  %v4020_v40 = vadd.f32 %v4019_v14, %v10131_v2  ;;  %v6286_v2 = vld [vmem:[%s10410_s3] ss:$0 sm:$0xff] }
 0x3ba   : > { %v4254_v10 = vmul.f32 %v9849_v61, %v4169_v12 }
 0x3bc   : > { %v4322_v3 = vadd.f32 %v9873_v9, %v4254_v10  ;;  %v4001_v4 = vpop.f32.mrf.mxu1 }
 0x3bd   : > { %v3832_v6 = vpop.f32.mrf.mxu0 }
 0x3be   : > { %v4002_v50 = vadd.f32 %v4001_v4, %v3832_v6  ;;  %v4386_v15 = vmax.f32 %v4322_v3, 0.0 }
 0x3c0   : > { %v4171_v1 = vadd.f32 %v4170_v58, %v4002_v50  ;;  %4498 = vxpose.xlu0.b32.cont [5/16] (narrow) %v4386_v15, 32  ;;  %v4548_v58 = vld [vmem:[%s10412_s5 + $0x20] sm:$0xff]  ;;  %v4188_v50 = vpop.f32.mrf.mxu2 }
 0x3c1   : > { %4576 = vperm.xlu2 %6262, %v4548_v58  }
 0x3c2   : > { %v4255_v29 = vmul.f32 %v9849_v61, %v4171_v1 }
 0x3c4   : > { %v4323_v13 = vadd.f32 %v9873_v9, %v4255_v29  ;;  %v4004_v44 = vpop.f32.mrf.mxu1  ;;  %v4478_v26 = vpop.trf.xlu1 }
 0x3c5   : > { %v3835_v51 = vpop.f32.mrf.mxu0 }
 0x3c6   : > { %v4005_v34 = vadd.f32 %v4004_v44, %v3835_v51  ;;  %v4387_v37 = vmax.f32 %v4323_v13, 0.0 }
 0x3c8   : > { %v4174_v19 = vadd.f32 %v4173_v56, %v4005_v34  ;;  %4499 = vxpose.xlu0.b32.cont [6/16] (narrow) %v4387_v37, 32  ;;  %v4021_v56 = vpop.f32.mrf.mxu3  ;;  %v4544_v34 = vld [vmem:[%s10412_s5] sm:$0xff]  ;;  %v4190_v23 = vpop.f32.mrf.mxu2 }
 0x3c9   : > { %5244 = vmatmul.msk.bf16.gmra.mxu3 %vm4629_vm6, %v10102_v33  ;;  %4586 = vperm.xlu2 %6262, %v4550_v18  }
 0x3ca   : > { %v4256_v17 = vmul.f32 %v9849_v61, %v4174_v19  ;;  %v4189_v19 = vadd.f32 %v4188_v50, %v4020_v40 }
 0x3cc   : > { %v4324_v11 = vadd.f32 %v9873_v9, %v4256_v17  ;;  %v4006_v45 = vpop.f32.mrf.mxu1  ;;  %v4479_v46 = vpop.trf.xlu1 }
 0x3cd   : > { %v3837_v5 = vpop.f32.mrf.mxu0  ;;  %v4528_v36 = vpack.c.bf16 %v4479_v46, %v4478_v26 }
 0x3ce   : > { %v4007_v38 = vadd.f32 %v4006_v45, %v3837_v5  ;;  %v4388_v35 = vmax.f32 %v4324_v11, 0.0  ;;  %v4022_v5 = vadd.f32 %v4021_v56, %v10143_v57  ;;  %v4547_v45 = vld [vmem:[%s10412_s5 + $0x18] sm:$0xff]  ;;  %v4549_v57 = vld [vmem:[%s10412_s5 + $0x28] sm:$0xff] }
 0x3cf   : > { %4720 = vmatpush.bf16.msra.mxu3 %v4528_v36  ;;  %v4551_v56 = vld [vmem:[%s10412_s5 + $0x38] sm:$0xff] }
 0x3d0   : > { %v4176_v24 = vadd.f32 %v4175_v31, %v4007_v38  ;;  %4500 = vxpose.xlu0.b32.cont [7/16] (narrow) %v4388_v35, 32  ;;  %v4024_v12 = vpop.f32.mrf.mxu3  ;;  %v10205_v35 = vpop.trf.xlu2 }
 0x3d1   : > { %v4025_v58 = vadd.f32 %v4024_v12, %v10147_v62 }
 0x3d2   : > { %v4257_v22 = vmul.f32 %v9849_v61, %v4176_v24  ;;  %v10171_v61 = vld [vmem:[%s10409_s2] ss:$0 sm:$0xff]  ;;  %v4191_v24 = vadd.f32 %v4190_v23, %v4022_v5 }
 0x3d4   : > { %v4325_v27 = vadd.f32 %v9873_v9, %v4257_v22  ;;  %v4009_v8 = vpop.f32.mrf.mxu1  ;;  %v4193_v22 = vpop.f32.mrf.mxu2  ;;  %v4263_v46 = vmul.f32 %v10171_v61, %v4191_v24 }
 0x3d5   : > { %v3840_v52 = vpop.f32.mrf.mxu0 }
 0x3d6   : > { %v4010_v32 = vadd.f32 %v4009_v8, %v3840_v52  ;;  %v4389_v16 = vmax.f32 %v4325_v27, 0.0  ;;  %v4194_v8 = vadd.f32 %v4193_v22, %v4025_v58 }
 0x3d8   : > { %v4179_v30 = vadd.f32 %v4178_v7, %v4010_v32  ;;  %4501 = vxpose.xlu0.b32.cont [8/16] (narrow) %v4389_v16, 32  ;;  %v4026_v44 = vpop.f32.mrf.mxu3  ;;  %v10214_v27 = vpop.trf.xlu2  ;;  %v4331_v32 = vadd.f32 %v6286_v2, %v4263_v46  ;;  %v4264_v62 = vmul.f32 %v10171_v61, %v4194_v8 }
 0x3d9   : > { %5245 = vmatmul.msk.bf16.gmra.mxu3 %vm4629_vm6, %v10114_v48  ;;  %v4027_v16 = vadd.f32 %v4026_v44, %v10154_v20 }
 0x3da   : > { %v4258_v47 = vmul.f32 %v10171_v61, %v4179_v30  ;;  %v4395_v30 = vmax.f32 %v4331_v32, 0.0 }
 0x3dc   : > { %v4326_v43 = vadd.f32 %v9873_v9, %v4258_v47  ;;  %v4011_v63 = vpop.f32.mrf.mxu1  ;;  %v4195_v47 = vpop.f32.mrf.mxu2 }
 0x3dd   : > { %v3842_v21 = vpop.f32.mrf.mxu0 }
 0x3de   : > { %v4012_v53 = vadd.f32 %v4011_v63, %v3842_v21  ;;  %v4390_v0 = vmax.f32 %v4326_v43, 0.0  ;;  %v4196_v43 = vadd.f32 %v4195_v47, %v4027_v16  ;;  %v4332_v63 = vadd.f32 %v6286_v2, %v4264_v62 }
 0x3e0   : > { %v4181_v49 = vadd.f32 %v4180_v41, %v4012_v53  ;;  %4502 = vxpose.xlu0.b32.cont [9/16] (narrow) %v4390_v0, 32  ;;  %v4262_v41 = vmul.f32 %v10171_v61, %v4189_v19  ;;  %v4265_v53 = vmul.f32 %v10171_v61, %v4196_v43  ;;  %v4396_v0 = vmax.f32 %v4332_v63, 0.0 }
 0x3e2   : > { %v4259_v55 = vmul.f32 %v10171_v61, %v4181_v49  ;;  %v4330_v14 = vadd.f32 %v6286_v2, %v4262_v41  ;;  %v4333_v49 = vadd.f32 %v6286_v2, %v4265_v53 }
 0x3e4   : > { %v4327_v31 = vadd.f32 %v9873_v9, %v4259_v55  ;;  %v4014_v10 = vpop.f32.mrf.mxu1  ;;  %v4394_v36 = vmax.f32 %v4330_v14, 0.0  ;;  %v4397_v55 = vmax.f32 %v4333_v49, 0.0 }
 0x3e5   : > { %v3845_v42 = vpop.f32.mrf.mxu0 }
 0x3e6   : > { %v4015_v6 = vadd.f32 %v4014_v10, %v3845_v42  ;;  %v4391_v3 = vmax.f32 %v4327_v31, 0.0 }
 0x3e8   : > { %v4184_v4 = vadd.f32 %v4183_v28, %v4015_v6  ;;  %4503 = vxpose.xlu0.b32.cont [10/16] (narrow) %v4391_v3, 32  ;;  %v4531_v28 = vpack.c.bf16 %v10214_v27, %v10205_v35 }
 0x3e9   : > { %5246 = vmatmul.msk.bf16.gmra.mxu3 %vm4629_vm6, %v10125_v25 }
 0x3ea   : > { %v4260_v15 = vmul.f32 %v10171_v61, %v4184_v4  ;;  %v10231_v42 = vpop.permute.xlu2 %4785  ;;  %v10247_v4 = vpop.trf.xlu1 }
 0x3eb   : > { %6263 = vset.pattern.permute.xlu1 %v6298_v54 }
 0x3ec   : > { %v4328_v7 = vadd.f32 %v9873_v9, %v4260_v15  ;;  %v4016_v29 = vpop.f32.mrf.mxu1  ;;  %v4552_v9 = vld [vmem:[%s10412_s5 + $0x40] sm:$0xff]  ;;  %v10203_v38 = vpop.f32.mrf.mxu3 }
 0x3ed   : > { %v3847_v1 = vpop.f32.mrf.mxu0  ;;  %4596 = vperm.xlu2 %6262, %v4552_v9   ;;  %v4416_v15 = vpop.trf.xlu0 }
 0x3ee   : > { %v4017_v51 = vadd.f32 %v4016_v29, %v3847_v1  ;;  %v4392_v13 = vmax.f32 %v4328_v7, 0.0 }
 0x3f0   : > { %v4186_v37 = vadd.f32 %v4185_v39, %v4017_v51  ;;  %4504 = vxpose.xlu0.b32.cont [11/16] (narrow) %v4392_v13, 32  ;;  %v4553_v39 = vld [vmem:[%s10412_s5 + $0x48] sm:$0xff] }
 0x3f2   : > { %v4261_v17 = vmul.f32 %v10171_v61, %v4186_v37  ;;  %4556 = vperm.xlu1 %6263, %v4544_v34   ;;  %v10253_v7 = vpop.trf.xlu1 }
 0x3f3   : > { %v10236_v61 = vpop.permute.xlu2 %4566  ;;  %v4532_v29 = vpack.c.bf16 %v10253_v7, %v10247_v4 }
 0x3f4   : > { %v4329_v26 = vadd.f32 %v6286_v2, %v4261_v17  ;;  %v10212_v52 = vpop.f32.mrf.mxu3 }
 0x3f5   : > { %v4417_v40 = vpop.trf.xlu0 }
 0x3f6   : > { %v4393_v11 = vmax.f32 %v4329_v26, 0.0  ;;  %v4530_v9 = vpack.c.bf16 %v4417_v40, %v4416_v15 }
 0x3f8   : > { %4505 = vxpose.xlu0.b32.cont [12/16] (narrow) %v4393_v11, 32 }
 0x3f9   : > { %5247 = vmatmul.msk.bf16.gmra.mxu3 %vm4629_vm6, %v10138_v60 }
 0x3fa   : > { %4571 = vperm.xlu1 %6263, %v4547_v45  }
 0x3fc   : > { %v4659_v21 = vpop.f32.mrf.mxu3 }
 0x3fd   : > { %v4660_v12 = vadd.f32 %v4659_v21, %v10236_v61 }
 0x3ff   : > { %4924 = vst [vmem:[%s10241_s26 + $0x20] sm:$0xff] %v4660_v12 }
 0x400   : > { %4506 = vxpose.xlu0.b32.cont [13/16] (narrow) %v4394_v36, 32 }
 0x402   : > { %4581 = vperm.xlu1 %6263, %v4549_v57  }
 0x404   : > { %v4661_v20 = vpop.f32.mrf.mxu3 }
 0x408   : > { %4507 = vxpose.xlu0.b32.cont [14/16] (narrow) %v4395_v30, 32  ;;  %v4545_v30 = vld [vmem:[%s10412_s5 + $0x8] sm:$0xff] }
 0x409   : > { %5248 = vmatmul.msk.bf16.vlgmr.msra.gmra.mxu3 %vm4629_vm6, %v10089_v59 }
 0x40a   : > { %4591 = vperm.xlu1 %6263, %v4551_v56  }
 0x40c   : > { %v4664_v18 = vpop.f32.mrf.mxu3 }
 0x410   : > { %4508 = vxpose.xlu0.b32.cont [15/16] (narrow) %v4396_v0, 32 }
 0x412   : > { %4601 = vperm.xlu1 %6263, %v4553_v39  }
 0x414   : > { %v4666_v31 = vpop.f32.mrf.mxu3 }
 0x418   : > { %4509 = vxpose.xlu0.b32.end [16/16] (narrow) %v4397_v55, 32 }
 0x419   : > { %5249 = vmatmul.msk.bf16.gmra.mxu3 %vm4629_vm6, %v10102_v33 }
 0x41b   : > { %v10245_v3 = vpop.permute.xlu2 %4576 }
 0x41c   : > { %v4669_v10 = vpop.f32.mrf.mxu3  ;;  %v4665_v50 = vadd.f32 %v4664_v18, %v10245_v3 }
 0x41e   : > { %4928 = vst [vmem:[%s10241_s26 + $0x40] sm:$0xff] %v4665_v50 }
 0x423   : > { %v10257_v51 = vpop.permute.xlu2 %4586 }
 0x424   : > { %v4671_v6 = vpop.f32.mrf.mxu3  ;;  %v4670_v13 = vadd.f32 %v4669_v10, %v10257_v51 }
 0x426   : > { %4932 = vst [vmem:[%s10241_s26 + $0x60] sm:$0xff] %v4670_v13 }
 0x429   : > { %5250 = vmatmul.msk.bf16.gmra.mxu3 %vm4629_vm6, %v10114_v48 }
 0x42c   : > { %v4674_v1 = vpop.f32.mrf.mxu3 }
 0x434   : > { %v4676_v44 = vpop.f32.mrf.mxu3 }
 0x439   : > { %5251 = vmatmul.msk.bf16.gmra.mxu3 %vm4629_vm6, %v10125_v25 }
 0x43c   : > { %v4688_v37 = vpop.f32.mrf.mxu3 }
 0x444   : > { %v4510_v34 = vpop.trf.xlu0  ;;  %v10263_v23 = vpop.f32.mrf.mxu3 }
 0x447   : > { %v10265_v2 = vpop.permute.xlu2 %4596 }
 0x448   : > { %v4675_v26 = vadd.f32 %v4674_v1, %v10265_v2 }
 0x449   : > { %5252 = vmatmul.msk.bf16.gmra.mxu3 %vm4629_vm6, %v10138_v60 }
 0x44a   : > { %4936 = vst [vmem:[%s10241_s26 + $0x80] sm:$0xff] %v4675_v26 }
 0x44c   : > { %v4511_v19 = vpop.trf.xlu0  ;;  %v4693_v41 = vpop.f32.mrf.mxu3 }
 0x44d   : > { %v4529_v17 = vpack.c.bf16 %v4511_v19, %v4510_v34  ;;  %v4694_v5 = vadd.f32 %v4693_v41, %v10236_v61 }
 0x44f   : > { %4754 = vmatpush.bf16.msrb.mxu3 %v4529_v17  ;;  %4925 = vst [vmem:[%s10241_s26 + $0x28] sm:$0xff] %v4694_v5 }
 0x453   : > { %4799 = vmatpush.bf16.msra.mxu3 %v4530_v9 }
 0x454   : > { %v4695_v11 = vpop.f32.mrf.mxu3  ;;  %v4512_v18 = vpop.trf.xlu0 }
 0x459   : > { %5253 = vmatmul.msk.bf16.vlgmr.msrb.gmra.mxu3 %vm4629_vm6, %v10089_v59 }
 0x45a   : > { %4812 = vmatpush.bf16.msrb.mxu3 %v4531_v28 }
 0x45c   : > { %v4698_v22 = vpop.f32.mrf.mxu3  ;;  %v4513_v12 = vpop.trf.xlu0 }
 0x45d   : > { %v4699_v46 = vadd.f32 %v4698_v22, %v10245_v3  ;;  %v4533_v50 = vpack.c.bf16 %v4513_v12, %v4512_v18 }
 0x45f   : > { %4929 = vst [vmem:[%s10241_s26 + $0x48] sm:$0xff] %v4699_v46 }
 0x464   : > { %v10273_v45 = vpop.permute.xlu1 %4556  ;;  %v4700_v36 = vpop.f32.mrf.mxu3 }
 0x465   : > { %v4655_v24 = vadd.f32 %v10203_v38, %v10273_v45  ;;  %v4689_v14 = vadd.f32 %v4688_v37, %v10273_v45 }
 0x467   : > { %4920 = vst [vmem:[%s10241_s26] sm:$0xff] %v4655_v24 }
 0x468   : > { %4921 = vst [vmem:[%s10241_s26 + $0x8] sm:$0xff] %v4689_v14 }
 0x469   : > { %5254 = vmatmul.msk.bf16.gmra.mxu3 %vm4629_vm6, %v10102_v33 }
 0x46c   : > { %v10287_v58 = vpop.permute.xlu1 %4571  ;;  %v4703_v28 = vpop.f32.mrf.mxu3 }
 0x46d   : > { %v4662_v59 = vadd.f32 %v4661_v20, %v10287_v58  ;;  %v4696_v38 = vadd.f32 %v4695_v11, %v10287_v58  ;;  %v4704_v8 = vadd.f32 %v4703_v28, %v10257_v51  ;;  %v4788_v28 = vperm.slane %v10231_v42, 0 }
 0x46f   : > { %4926 = vst [vmem:[%s10241_s26 + $0x30] sm:$0xff] %v4662_v59 }
 0x470   : > { %4927 = vst [vmem:[%s10241_s26 + $0x38] sm:$0xff] %v4696_v38 }
 0x471   : > { %4933 = vst [vmem:[%s10241_s26 + $0x68] sm:$0xff] %v4704_v8 }
 0x474   : > { %v10293_v35 = vpop.permute.xlu1 %4581  ;;  %v4705_v33 = vpop.f32.mrf.mxu3 }
 0x475   : > { %v4667_v57 = vadd.f32 %v4666_v31, %v10293_v35  ;;  %v4701_v27 = vadd.f32 %v4700_v36, %v10293_v35 }
 0x477   : > { %4930 = vst [vmem:[%s10241_s26 + $0x50] sm:$0xff] %v4667_v57 }
 0x478   : > { %4931 = vst [vmem:[%s10241_s26 + $0x58] sm:$0xff] %v4701_v27 }
 0x479   : > { %5255 = vmatmul.msk.bf16.gmra.mxu3 %vm4629_vm6, %v10114_v48 }
 0x47c   : > { %v10303_v32 = vpop.permute.xlu1 %4591 }
 0x47d   : > { %v4672_v62 = vadd.f32 %v4671_v6, %v10303_v32  ;;  %v4706_v16 = vadd.f32 %v4705_v33, %v10303_v32 }
 0x47f   : > { %4934 = vst [vmem:[%s10241_s26 + $0x70] sm:$0xff] %v4672_v62  ;;  %6264 = vset.pattern.permute.xlu0 %v6298_v54  ;;  %v4708_v54 = vpop.f32.mrf.mxu3 }
 0x480   : > { %4935 = vst [vmem:[%s10241_s26 + $0x78] sm:$0xff] %v4706_v16  ;;  %v4709_v21 = vadd.f32 %v4708_v54, %v10265_v2 }
 0x482   : > { %4937 = vst [vmem:[%s10241_s26 + $0x88] sm:$0xff] %v4709_v21 }
 0x484   : > { %v10313_v47 = vpop.permute.xlu1 %4601 }
 0x485   : > { %v4677_v56 = vadd.f32 %v4676_v44, %v10313_v47 }
 0x486   : > { %4561 = vperm.xlu0 %6264, %v4545_v30  }
 0x487   : > { %4938 = vst [vmem:[%s10241_s26 + $0x90] sm:$0xff] %v4677_v56  ;;  %v4710_v43 = vpop.f32.mrf.mxu3 }
 0x488   : > { %v4711_v63 = vadd.f32 %v4710_v43, %v10313_v47 }
 0x489   : > { %5256 = vmatmul.msk.bf16.gmra.mxu3 %vm4629_vm6, %v10125_v25  ;;  %v4781_v25 = vld [vmem:[%s10413_s6] sm:$0x1] }
 0x48a   : > { %4939 = vst [vmem:[%s10241_s26 + $0x98] sm:$0xff] %v4711_v63 }
 0x48f   : > { %v4722_v53 = vpop.f32.mrf.mxu3 }
 0x490   : > { %v4723_v48 = vadd.f32 %v4722_v53, %v10273_v45 }
 0x492   : > { %5266 = vst [vmem:[%s10241_s26 + $0xa0] sm:$0xff] %v4723_v48 }
 0x497   : > { %v4724_v0 = vpop.f32.mrf.mxu3 }
 0x499   : > { %5257 = vmatmul.msk.bf16.gmra.mxu3 %vm4629_vm6, %v10138_v60 }
 0x49f   : > { %v4727_v39 = vpop.f32.mrf.mxu3 }
 0x4a0   : > { %v4728_v20 = vadd.f32 %v4727_v39, %v10236_v61 }
 0x4a2   : > { %5270 = vst [vmem:[%s10241_s26 + $0xc0] sm:$0xff] %v4728_v20 }
 0x4a7   : > { %v4729_v49 = vpop.f32.mrf.mxu3 }
 0x4a8   : > { %v4730_v55 = vadd.f32 %v4729_v49, %v10287_v58 }
 0x4a9   : > { %5258 = vmatmul.msk.bf16.vlgmr.msra.gmra.mxu3 %vm4629_vm6, %v4781_v25 }
 0x4aa   : > { %5272 = vst [vmem:[%s10241_s26 + $0xd0] sm:$0xff] %v4730_v55  ;;  %4825 = vmatpush.bf16.msra.mxu3 %v4532_v29 }
 0x4af   : > { %v4732_v60 = vpop.f32.mrf.mxu3 }
 0x4b0   : > { %v4733_v31 = vadd.f32 %v4732_v60, %v10245_v3 }
 0x4b2   : > { %5274 = vst [vmem:[%s10241_s26 + $0xe0] sm:$0xff] %v4733_v31 }
 0x4b7   : > { %v4734_v10 = vpop.f32.mrf.mxu3 }
 0x4b8   : > { %v4735_v6 = vadd.f32 %v4734_v10, %v10293_v35 }
 0x4b9   : > { %5259 = vmatmul.msk.bf16.vlgmr.msrb.gmra.mxu3 %vm4629_vm6, %v4781_v25 }
 0x4ba   : > { %5276 = vst [vmem:[%s10241_s26 + $0xf0] sm:$0xff] %v4735_v6  ;;  %4838 = vmatpush.bf16.msrb.mxu3 %v4533_v50 }
 0x4bf   : > { %v4737_v15 = vpop.f32.mrf.mxu3 }
 0x4c0   : > { %v4738_v4 = vadd.f32 %v4737_v15, %v10257_v51  ;;  %v4945_v15 = vlaneseq }
 0x4c2   : > { %5278 = vst [vmem:[%s10241_s26 + $0x100] sm:$0xff] %v4738_v4  ;;  %vm10392_vm15 = vcmp.lt.s32.totalorder %v4945_v15, 256 }
 0x4c7   : > { %v4739_v1 = vpop.f32.mrf.mxu3 }
 0x4c8   : > { %v4740_v7 = vadd.f32 %v4739_v1, %v10303_v32 }
 0x4c9   : > { %5260 = vmatmul.msk.bf16.vlgmr.msra.gmra.mxu3 %vm4629_vm6, %v4781_v25 }
 0x4ca   : > { %5280 = vst [vmem:[%s10241_s26 + $0x110] sm:$0xff] %v4740_v7 }
 0x4cf   : > { %v4742_v29 = vpop.f32.mrf.mxu3 }
 0x4d0   : > { %v4743_v40 = vadd.f32 %v4742_v29, %v10265_v2 }
 0x4d2   : > { %5282 = vst [vmem:[%s10241_s26 + $0x120] sm:$0xff] %v4743_v40 }
 0x4d7   : > { %v4744_v13 = vpop.f32.mrf.mxu3 }
 0x4d8   : > { %v4745_v44 = vadd.f32 %v4744_v13, %v10313_v47 }
 0x4d9   : > { %5261 = vmatmul.msk.bf16.vlgmr.msrb.gmra.mxu3 %vm4629_vm6, %v4781_v25 }
 0x4da   : > { %5284 = vst [vmem:[%s10241_s26 + $0x130] sm:$0xff] %v4745_v44 }
 0x4df   : > { %v4756_v34 = vpop.f32.mrf.mxu3 }
 0x4e0   : > { %v4757_v37 = vadd.f32 %v4756_v34, %v10273_v45 }
 0x4e2   : > { %5267 = vst [vmem:[%s10241_s26 + $0xa8] sm:$0xff] %v4757_v37 }
 0x4e7   : > { %v4758_v19 = vpop.f32.mrf.mxu3 }
 0x4ef   : > { %v4761_v17 = vpop.f32.mrf.mxu3 }
 0x4f0   : > { %v4762_v26 = vadd.f32 %v4761_v17, %v10236_v61 }
 0x4f2   : > { %5271 = vst [vmem:[%s10241_s26 + $0xc8] sm:$0xff] %v4762_v26 }
 0x4f7   : > { %v4763_v45 = vpop.f32.mrf.mxu3 }
 0x4f8   : > { %v4562_v9 = vpop.permute.xlu0 %4561  ;;  %v4764_v14 = vadd.f32 %v4763_v45, %v10287_v58 }
 0x4f9   : > { %v4657_v41 = vadd.f32 %v10212_v52, %v4562_v9  ;;  %v4691_v5 = vadd.f32 %v10263_v23, %v4562_v9  ;;  %v4725_v11 = vadd.f32 %v4724_v0, %v4562_v9  ;;  %v4759_v24 = vadd.f32 %v4758_v19, %v4562_v9 }
 0x4fa   : > { %5273 = vst [vmem:[%s10241_s26 + $0xd8] sm:$0xff] %v4764_v14 }
 0x4fb   : > { %4922 = vst [vmem:[%s10241_s26 + $0x10] sm:$0xff] %v4657_v41 }
 0x4fc   : > { %4923 = vst [vmem:[%s10241_s26 + $0x18] sm:$0xff] %v4691_v5 }
 0x4fd   : > { %5268 = vst [vmem:[%s10241_s26 + $0xb0] sm:$0xff] %v4725_v11 }
 0x4fe   : > { %5269 = vst [vmem:[%s10241_s26 + $0xb8] sm:$0xff] %v4759_v24 }
 0x4ff   : > { %v4766_v61 = vpop.f32.mrf.mxu3 }
 0x500   : > { %v4767_v52 = vadd.f32 %v4766_v61, %v10245_v3 }
 0x502   : > { %5275 = vst [vmem:[%s10241_s26 + $0xe8] sm:$0xff] %v4767_v52 }
 0x507   : > { %v4768_v23 = vpop.f32.mrf.mxu3 }
 0x508   : > { %v4769_v22 = vadd.f32 %v4768_v23, %v10293_v35 }
 0x50a   : > { %5277 = vst [vmem:[%s10241_s26 + $0xf8] sm:$0xff] %v4769_v22 }
 0x50f   : > { %v4771_v46 = vpop.f32.mrf.mxu3 }
 0x510   : > { %v4772_v59 = vadd.f32 %v4771_v46, %v10257_v51 }
 0x512   : > { %5279 = vst [vmem:[%s10241_s26 + $0x108] sm:$0xff] %v4772_v59 }
 0x517   : > { %v4773_v38 = vpop.f32.mrf.mxu3 }
 0x518   : > { %v4774_v36 = vadd.f32 %v4773_v38, %v10303_v32 }
 0x51a   : > { %5281 = vst [vmem:[%s10241_s26 + $0x118] sm:$0xff] %v4774_v36 }
 0x51f   : > { %v4776_v58 = vpop.f32.mrf.mxu3 }
 0x520   : > { %v4777_v57 = vadd.f32 %v4776_v58, %v10265_v2 }
 0x522   : > { %5283 = vst [vmem:[%s10241_s26 + $0x128] sm:$0xff] %v4777_v57 }
 0x527   : > { %v4778_v27 = vpop.f32.mrf.mxu3 }
 0x528   : > { %v4779_v3 = vadd.f32 %v4778_v27, %v10313_v47 }
 0x52a   : > { %5285 = vst [vmem:[%s10241_s26 + $0x138] sm:$0xff] %v4779_v3 }
 0x52f   : > { %v4801_v35 = vpop.f32.mrf.mxu3 }
 0x530   : > { %v4802_v8 = vadd.f32 %v4801_v35, %v4788_v28 }
 0x532   : > { %v5262_v62 = vmul.f32 -1.442695, %v4802_v8 }
 0x534   : > { %6267 = vpow2.f32 %v5262_v62 }
 0x537   : > { %v4803_v51 = vpop.f32.mrf.mxu3 }
 0x53a   : > { %v6268_v33 = vpop.eup %6267 }
 0x53b   : > { %v4856_v16 = vadd.f32 1.0, %v6268_v33 }
 0x53d   : > { %6269 = vrcp.f32 %v4856_v16  ;;  %vm4865_vm9 = vweird.f32 %v4856_v16  ;;  %v4871_v12 = vand.u32 2147483648, %v4856_v16  ;;  %v4869_v6 = vand.u32 2147483647, %v4856_v16 }
 0x53f   : > { %v4814_v30 = vpop.f32.mrf.mxu3  ;;  %v4872_v40 = vor.u32 1.1754944e-38, %v4871_v12  ;;  %vm4870_vm14 = vcmp.eq.f32.partialorder %v4869_v6, 8.507059e+37 }
 0x540   : > { %v4815_v32 = vadd.f32 %v4814_v30, %v4788_v28 }
 0x542   : > { %v5263_v56 = vmul.f32 -1.442695, %v4815_v32 }
 0x543   : > { %v6270_v54 = vpop.eup %6269 }
 0x544   : > { %6271 = vpow2.f32 %v5263_v56  ;;  %v4861_v47 = vmul.f32 %v6270_v54, %v4856_v16  ;;  %vm4866_vm7 = vweird.f32 %v6270_v54 }
 0x545   : > { %vm10380_vm10 = vmor %vm4865_vm9, %vm4866_vm7 }
 0x546   : > { %v4862_v42 = vsub.f32 1.0, %v4861_v47 }
 0x547   : > { %v4816_v2 = vpop.f32.mrf.mxu3 }
 0x548   : > { %v4863_v39 = vmul.f32 %v6270_v54, %v4862_v42 }
 0x54a   : > { %v6272_v21 = vpop.eup %6271  ;;  %v4864_v18 = vadd.f32 %v6270_v54, %v4863_v39 }
 0x54b   : > { %v4857_v43 = vadd.f32 1.0, %v6272_v21 }
 0x54c   : > { %v4868_v7 = vsel %vm10380_vm10, %v6270_v54, %v4864_v18 }
 0x54d   : > { %6273 = vrcp.f32 %v4857_v43  ;;  %v4886_v55 = vand.u32 2147483648, %v4857_v43  ;;  %v4884_v31 = vand.u32 2147483647, %v4857_v43  ;;  %vm4880_vm11 = vweird.f32 %v4857_v43 }
 0x54e   : > { %v4873_v37 = vsel %vm4870_vm14, %v4872_v40, %v4868_v7 }
 0x54f   : > { %v4827_v63 = vpop.f32.mrf.mxu3  ;;  %v4887_v4 = vor.u32 1.1754944e-38, %v4886_v55  ;;  %vm4885_vm13 = vcmp.eq.f32.partialorder %v4884_v31, 8.507059e+37 }
 0x550   : > { %v4828_v53 = vadd.f32 %v4827_v63, %v4788_v28 }
 0x552   : > { %v5264_v48 = vmul.f32 -1.442695, %v4828_v53 }
 0x553   : > { %v6274_v0 = vpop.eup %6273 }
 0x554   : > { %v4876_v20 = vmul.f32 %v6274_v0, %v4857_v43  ;;  %6275 = vpow2.f32 %v5264_v48  ;;  %vm4881_vm8 = vweird.f32 %v6274_v0 }
 0x555   : > { %vm4882_vm12 = vmor %vm4880_vm11, %vm4881_vm8 }
 0x556   : > { %v4877_v49 = vsub.f32 1.0, %v4876_v20 }
 0x557   : > { %v4829_v25 = vpop.f32.mrf.mxu3 }
 0x558   : > { %v4878_v60 = vmul.f32 %v6274_v0, %v4877_v49 }
 0x55a   : > { %v4879_v50 = vadd.f32 %v6274_v0, %v4878_v60  ;;  %v6276_v1 = vpop.eup %6275 }
 0x55b   : > { %v4858_v19 = vadd.f32 1.0, %v6276_v1 }
 0x55c   : > { %v4883_v29 = vsel %vm4882_vm12, %v6274_v0, %v4879_v50 }
 0x55d   : > { %v4888_v13 = vsel %vm4885_vm13, %v4887_v4, %v4883_v29  ;;  %6277 = vrcp.f32 %v4858_v19  ;;  %vm4895_vm3 = vweird.f32 %v4858_v19  ;;  %v4901_v57 = vand.u32 2147483648, %v4858_v19 }
 0x55e   : > { %v4942_v44 = vrot.slane %v4888_v13, 7  ;;  %v4899_v27 = vand.u32 2147483647, %v4858_v19 }
 0x55f   : > { %v4840_v17 = vpop.f32.mrf.mxu3  ;;  %v4902_v62 = vor.u32 1.1754944e-38, %v4901_v57 }
 0x560   : > { %v4943_v9 = vsel %vm454_vm0, %v4873_v37, %v4942_v44  ;;  %v4841_v26 = vadd.f32 %v4840_v17, %v4788_v28  ;;  %vm4900_vm8 = vcmp.eq.f32.partialorder %v4899_v27, 8.507059e+37 }
 0x561   : > { %4949 = vst.msk [vmem:[%s10390_s10] sm:$0x3] %vm10392_vm15, %v4943_v9 }
 0x562   : > { %v5265_v41 = vmul.f32 -1.442695, %v4841_v26 }
 0x563   : > { %v6278_v11 = vpop.eup %6277 }
 0x564   : > { %6279 = vpow2.f32 %v5265_v41  ;;  %v4891_v14 = vmul.f32 %v6278_v11, %v4858_v19  ;;  %vm4896_vm1 = vweird.f32 %v6278_v11 }
 0x565   : > { %vm4897_vm4 = vmor %vm4895_vm3, %vm4896_vm1 }
 0x566   : > { %v4892_v61 = vsub.f32 1.0, %v4891_v14 }
 0x567   : > { %v4842_v5 = vpop.f32.mrf.mxu3 }
 0x568   : > { %v4893_v23 = vmul.f32 %v6278_v11, %v4892_v61 }
 0x56a   : > { %v6280_v24 = vpop.eup %6279  ;;  %v4894_v38 = vadd.f32 %v6278_v11, %v4893_v23 }
 0x56b   : > { %v4859_v45 = vadd.f32 1.0, %v6280_v24 }
 0x56c   : > { %v4898_v35 = vsel %vm4897_vm4, %v6278_v11, %v4894_v38 }
 0x56d   : > { %6281 = vrcp.f32 %v4859_v45  ;;  %v4916_v59 = vand.u32 2147483648, %v4859_v45  ;;  %v4914_v58 = vand.u32 2147483647, %v4859_v45  ;;  %vm4910_vm5 = vweird.f32 %v4859_v45 }
 0x56e   : > { %v4903_v16 = vsel %vm4900_vm8, %v4902_v62, %v4898_v35 }
 0x56f   : > { %v4917_v28 = vor.u32 1.1754944e-38, %v4916_v59  ;;  %vm4915_vm7 = vcmp.eq.f32.partialorder %v4914_v58, 8.507059e+37 }
 0x573   : > { %v6282_v52 = vpop.eup %6281 }
 0x574   : > { %v4906_v22 = vmul.f32 %v6282_v52, %v4859_v45  ;;  %vm4911_vm2 = vweird.f32 %v6282_v52 }
 0x575   : > { %vm4912_vm6 = vmor %vm4910_vm5, %vm4911_vm2 }
 0x576   : > { %v4907_v46 = vsub.f32 1.0, %v4906_v22 }
 0x578   : > { %v4908_v36 = vmul.f32 %v6282_v52, %v4907_v46 }
 0x57a   : > { %v4909_v3 = vadd.f32 %v6282_v52, %v4908_v36 }
 0x57c   : > { %v4913_v8 = vsel %vm4912_vm6, %v6282_v52, %v4909_v3 }
 0x57d   : > { %v4918_v51 = vsel %vm4915_vm7, %v4917_v28, %v4913_v8 }
 0x57e   : > { %v4973_v33 = vrot.slane %v4918_v51, 7 }
 0x580   : > { %v4974_v30 = vsel %vm454_vm0, %v4903_v16, %v4973_v33 }
 0x581   : > { %5286 = vst.msk [vmem:[%s10390_s10 + $0x2] sm:$0x3] %vm10392_vm15, %v4974_v30 }
 0x582 PF: > { %s22_s11 = sadd.s32 1, %s6293_s11  }
 0x583   : > { %p19_p4 = scmp.ge.s32.totalorder %s22_s11, 4  }
 0x585   :  { %21 = sbr.rel (!%p19_p4) target bundleno = 3 (0x3), region = 97 }

</bundles_post_ra>
